<compile_context>
chip_gen: v6e
topology: v6e:2x2x1
jax: 0.10.0
libtpu: 0.0.40
codegen_flags: <defaults>
</compile_context>

<pallas_src>
from functools import partial

import numpy as np
import jax
import jax.numpy as jnp
from jax.experimental import pallas as pl
from jax.experimental.pallas import tpu as pltpu


ANCHORS = [[(10, 13), (16, 30), (33, 23)],
           [(30, 61), (62, 45), (59, 119)],
           [(116, 90), (156, 198), (373, 326)]]
STRIDES = [8.0, 16.0, 32.0]


# ----------------------------------------------------------------------------
# One fused kernel: whole backbone + Detect head for all 3 levels.
# ----------------------------------------------------------------------------
def _model_kernel(x_ref,
                  w0_ref, b0_ref, w1_ref, b1_ref, w2_ref, b2_ref,
                  w3_ref, b3_ref, w4_ref, b4_ref,
                  dw0_ref, db0_ref, dw1_ref, db1_ref, dw2_ref, db2_ref,
                  s1_ref, s2_ref,
                  g0_ref, m0_ref, a0_ref,
                  g1_ref, m1_ref, a1_ref,
                  g2_ref, m2_ref, a2_ref,
                  f0_ref, f1_ref, f2_ref,
                  x0_ref, x1_ref, x2_ref,
                  z_ref,
                  *, batch, level_hw, level_off, na, no):
    def silu(v):
        return v * jax.nn.sigmoid(v)

    # ---- level-0 backbone chain (P3): conv0 -> conv1 -> conv2 (1x1 + SiLU)
    x = x_ref[...]                                        # (P0, 3) f32
    w0 = w0_ref[...]                                      # (3, C) f32
    # Cin = 3: three VPU broadcast FMAs instead of a nearly-empty MXU pass.
    t = (x[:, 0:1] * w0[0:1, :] + x[:, 1:2] * w0[1:2, :]
         + x[:, 2:3] * w0[2:3, :] + b0_ref[...])
    t = silu(t).astype(jnp.bfloat16)

    h1 = jnp.dot(t, w1_ref[...], preferred_element_type=jnp.float32) + b1_ref[...]
    h1 = silu(h1).astype(jnp.bfloat16)
    h2 = jnp.dot(h1, w2_ref[...], preferred_element_type=jnp.float32) + b2_ref[...]
    feat0 = silu(h2)                                      # (P0, 16) f32
    feat0_b = feat0.astype(jnp.bfloat16)

    # ---- level-1 (P4): in-kernel stride-2 subsample (row-select matmul) + conv
    in1 = jnp.dot(s1_ref[...], feat0_b,
                  preferred_element_type=jnp.float32).astype(jnp.bfloat16)
    h3 = jnp.dot(in1, w3_ref[...], preferred_element_type=jnp.float32) + b3_ref[...]
    feat1 = silu(h3)                                      # (P1, 32) f32
    feat1_b = feat1.astype(jnp.bfloat16)

    # ---- level-2 (P5)
    in2 = jnp.dot(s2_ref[...], feat1_b,
                  preferred_element_type=jnp.float32).astype(jnp.bfloat16)
    h4 = jnp.dot(in2, w4_ref[...], preferred_element_type=jnp.float32) + b4_ref[...]
    feat2 = silu(h4)                                      # (P2, 64) f32
    feat2_b = feat2.astype(jnp.bfloat16)

    feats = (feat0, feat1, feat2)
    feats_b = (feat0_b, feat1_b, feat2_b)
    det = ((dw0_ref, db0_ref), (dw1_ref, db1_ref), (dw2_ref, db2_ref))
    dec = ((g0_ref, m0_ref, a0_ref), (g1_ref, m1_ref, a1_ref),
           (g2_ref, m2_ref, a2_ref))
    f_refs = (f0_ref, f1_ref, f2_ref)
    x_refs = (x0_ref, x1_ref, x2_ref)

    # ---- Detect head + decode for every level, outputs in final layout.
    for lvl in range(3):
        h, w = level_hw[lvl]
        hw = h * w
        c = feats[lvl].shape[1]

        # feature map (NHWC) — one contiguous store
        f_refs[lvl][...] = feats[lvl].reshape(batch, h, w, c)

        # Detect 1x1 conv -> raw logits
        dw_ref, db_ref = det[lvl]
        logits = jnp.dot(feats_b[lvl], dw_ref[...],
                         preferred_element_type=jnp.float32) + db_ref[...]
        s = jax.nn.sigmoid(logits)

        # YOLO decode: xy = (2*sig + grid - 0.5)*stride, wh = (2*sig)^2*anchor*stride,
        # conf/cls = sig.  All grid/anchor/stride factors pre-folded host-side so
        # this is y = M*sig + A*sig^2 + G.
        g_ref, m_ref, a_ref = dec[lvl]
        y = m_ref[...] * s + a_ref[...] * (s * s) + g_ref[...]

        off = level_off[lvl]
        for b in range(batch):
            for a in range(na):
                r0, r1 = b * hw, (b + 1) * hw
                c0, c1 = a * no, (a + 1) * no
                # pred_per_feature_map[i]: anchor-major (B, na, h*w, no), pre-sigmoid
                x_refs[lvl][b, a, :, :] = logits[r0:r1, c0:c1]
                # pred_all rows for (level, anchor, batch), columns [0, no)
                z_ref[b, off + a * hw: off + (a + 1) * hw, 0:no] = y[r0:r1, c0:c1]
        # level-id column (last column of pred_all) for this level's rows
        z_ref[:, off: off + na * hw, no:no + 1] = jnp.full(
            (batch, na * hw, 1), float(lvl), jnp.float32)


# ----------------------------------------------------------------------------
# Host-side constant tables (built once, reused across forwards)
# ----------------------------------------------------------------------------
def _subsample_matrix(b, h, w):
    """(P_out, P_in) 0/1 matrix selecting the stride-2 rows of an NHWC flatten."""
    h2, w2 = h // 2, w // 2
    s = np.zeros((b * h2 * w2, b * h * w), np.float32)
    for bi in range(b):
        for i in range(h2):
            for j in range(w2):
                s[bi * h2 * w2 + i * w2 + j,
                  bi * h * w + 2 * i * w + 2 * j] = 1.0
    return jnp.asarray(s, jnp.bfloat16)


def _decode_tables(b, h, w, na, no, anchors_lvl, stride):
    """G (P, na*no) additive grid table and M, A (1, na*no) per-channel rows so
    that y = M*sig + A*sig^2 + G reproduces the YOLO Detect decode."""
    ctot = na * no
    gx = np.tile(np.arange(w, dtype=np.float32), b * h)
    gy = np.tile(np.repeat(np.arange(h, dtype=np.float32), w), b)
    g = np.zeros((b * h * w, ctot), np.float32)
    m = np.zeros((1, ctot), np.float32)
    a = np.zeros((1, ctot), np.float32)
    for ai in range(na):
        g[:, ai * no + 0] = (gx - 0.5) * stride
        g[:, ai * no + 1] = (gy - 0.5) * stride
        m[0, ai * no + 0] = 2.0 * stride
        m[0, ai * no + 1] = 2.0 * stride
        a[0, ai * no + 2] = 4.0 * anchors_lvl[ai][0] * stride
        a[0, ai * no + 3] = 4.0 * anchors_lvl[ai][1] * stride
        m[0, ai * no + 4:(ai + 1) * no] = 1.0        # conf/cls: plain sigmoid
    return jnp.asarray(g), jnp.asarray(m), jnp.asarray(a)


def build_constants(batch, height, width, params):
    na, no = params["na"], params["no"]
    level_hw = [(height // int(s), width // int(s)) for s in STRIDES]
    dec = [_decode_tables(batch, h, w, na, no, ANCHORS[i], STRIDES[i])
           for i, (h, w) in enumerate(level_hw)]
    s1 = _subsample_matrix(batch, *level_hw[0])
    s2 = _subsample_matrix(batch, *level_hw[1])
    level_off, off = [], 0
    for (h, w) in level_hw:
        level_off.append(off)
        off += na * h * w
    return {"level_hw": level_hw, "level_off": level_off, "total": off,
            "dec": dec, "s1": s1, "s2": s2}


# ----------------------------------------------------------------------------
# Parameters (weights pre-cast to bf16 once at build time)
# ----------------------------------------------------------------------------
def init_conv(key, cin, cout, w_dtype):
    kw, kb = jax.random.split(key)
    scale = 1.0 / np.sqrt(cin)
    w = jax.random.uniform(kw, (cin, cout), jnp.float32, -scale, scale)
    b = jax.random.uniform(kb, (1, cout), jnp.float32, -scale, scale)
    return w.astype(w_dtype), b


def build_params(key, nc=3, na=3):
    no = nc + 5
    # backbone: 5 x (1x1 conv, stride 2) producing P3/P4/P5 at strides 8/16/32
    cfg = [(3, 8), (8, 16), (16, 16), (16, 32), (32, 64)]
    backbone = []
    for li, (cin, cout) in enumerate(cfg):
        key, sub = jax.random.split(key)
        # conv0 stays f32 (runs on the VPU, Cin=3); the rest feed the MXU in bf16
        backbone.append(init_conv(sub, cin, cout,
                                  jnp.float32 if li == 0 else jnp.bfloat16))
    detect = []
    for cin in (16, 32, 64):
        key, sub = jax.random.split(key)
        detect.append(init_conv(sub, cin, na * no, jnp.bfloat16))
    return {"backbone": backbone, "detect": detect, "nc": nc, "na": na, "no": no}


# ----------------------------------------------------------------------------
# BaseModel (inference / eval path of _forward_once)
# ----------------------------------------------------------------------------
def base_model_forward(x, params, consts):
    """BaseModel._forward_once, eval mode.

    Returns (pred_all_outputs, pred_per_feature_map, feature_maps), matching
    the PyTorch module's inference return signature.
    """
    # TODO(synk): training-loss branch (compute_loss / targets / HeatMaps) and
    # profiling/visualization hooks are framework glue, not implemented.
    na, no = params["na"], params["no"]
    batch = x.shape[0]
    (h0, w0), (h1, w1), (h2, w2) = consts["level_hw"]

    # Every backbone conv is a 1x1/stride-2 conv, so the whole model only ever
    # reads input pixels on the stride-8 grid: one cheap slice + NHWC flatten.
    s0 = int(STRIDES[0])
    xin = jnp.transpose(x[:, :, ::s0, ::s0], (0, 2, 3, 1)).reshape(-1, x.shape[1])

    bb = params["backbone"]
    det = params["detect"]
    (g0, m0, a0), (g1, m1, a1), (g2, m2, a2) = consts["dec"]
    feat_ch = [bb[2][0].shape[1], bb[3][0].shape[1], bb[4][0].shape[1]]

    out_shape = (
        jax.ShapeDtypeStruct((batch, h0, w0, feat_ch[0]), jnp.float32),   # P3 feat
        jax.ShapeDtypeStruct((batch, h1, w1, feat_ch[1]), jnp.float32),   # P4 feat
        jax.ShapeDtypeStruct((batch, h2, w2, feat_ch[2]), jnp.float32),   # P5 feat
        jax.ShapeDtypeStruct((batch, na, h0 * w0, no), jnp.float32),      # logits P3
        jax.ShapeDtypeStruct((batch, na, h1 * w1, no), jnp.float32),      # logits P4
        jax.ShapeDtypeStruct((batch, na, h2 * w2, no), jnp.float32),      # logits P5
        jax.ShapeDtypeStruct((batch, consts["total"], no + 1), jnp.float32),  # pred_all
    )

    kernel = partial(_model_kernel, batch=batch,
                     level_hw=tuple(consts["level_hw"]),
                     level_off=tuple(consts["level_off"]), na=na, no=no)

    f0, f1, f2, xl0, xl1, xl2, z = pl.pallas_call(
        kernel,
        out_shape=out_shape,
        compiler_params=pltpu.CompilerParams(vmem_limit_bytes=4 * 1024 * 1024),
    )(xin,
      bb[0][0], bb[0][1], bb[1][0], bb[1][1], bb[2][0], bb[2][1],
      bb[3][0], bb[3][1], bb[4][0], bb[4][1],
      det[0][0], det[0][1], det[1][0], det[1][1], det[2][0], det[2][1],
      consts["s1"], consts["s2"],
      g0, m0, a0, g1, m1, a1, g2, m2, a2)

    pred_all_outputs = z
    # free metadata reshapes to the module's (bs, na, ny, nx, no) contract
    pred_per_feature_map = [
        xl0.reshape(batch, na, h0, w0, no),
        xl1.reshape(batch, na, h1, w1, no),
        xl2.reshape(batch, na, h2, w2, no),
    ]
    # the original module's feature maps are NCHW conv outputs
    feature_maps = [jnp.transpose(f, (0, 3, 1, 2)) for f in (f0, f1, f2)]
    return pred_all_outputs, pred_per_feature_map, feature_maps


# ----------------------------------------------------------------------------
if __name__ == "__main__":
    key = jax.random.PRNGKey(0)
    k_img, k_par = jax.random.split(key)
    x = jax.random.normal(k_img, (2, 3, 64, 64), jnp.float32)   # NCHW image
    params = build_params(k_par)
    consts = build_constants(2, 64, 64, params)

    pred_all, pred_per_fm, feats = base_model_forward(x, params, consts)
    jax.block_until_ready(pred_all)
    for t in pred_per_fm + feats:
        jax.block_until_ready(t)

    na, no = params["na"], params["no"]
    n_boxes = na * (8 * 8 + 4 * 4 + 2 * 2)
    assert pred_all.shape == (2, n_boxes, no + 1)
    assert pred_per_fm[0].shape == (2, na, 8, 8, no)
    assert pred_per_fm[1].shape == (2, na, 4, 4, no)
    assert pred_per_fm[2].shape == (2, na, 2, 2, no)
    assert feats[0].shape == (2, 16, 8, 8)
    assert feats[1].shape == (2, 32, 4, 4)
    assert feats[2].shape == (2, 64, 2, 2)
    assert bool(jnp.all(jnp.isfinite(pred_all)))

    print("KERNEL_OK")
</pallas_src>

<mosaic_0001>
module attributes {stable_mosaic.version = 11 : i64} {
  func.func @_model_kernel(%arg0: memref<128x3xf32, #tpu.memory_space<vmem>>, %arg1: memref<3x8xf32, #tpu.memory_space<vmem>>, %arg2: memref<1x8xf32, #tpu.memory_space<vmem>>, %arg3: memref<8x16xbf16, #tpu.memory_space<vmem>>, %arg4: memref<1x16xf32, #tpu.memory_space<vmem>>, %arg5: memref<16x16xbf16, #tpu.memory_space<vmem>>, %arg6: memref<1x16xf32, #tpu.memory_space<vmem>>, %arg7: memref<16x32xbf16, #tpu.memory_space<vmem>>, %arg8: memref<1x32xf32, #tpu.memory_space<vmem>>, %arg9: memref<32x64xbf16, #tpu.memory_space<vmem>>, %arg10: memref<1x64xf32, #tpu.memory_space<vmem>>, %arg11: memref<16x24xbf16, #tpu.memory_space<vmem>>, %arg12: memref<1x24xf32, #tpu.memory_space<vmem>>, %arg13: memref<32x24xbf16, #tpu.memory_space<vmem>>, %arg14: memref<1x24xf32, #tpu.memory_space<vmem>>, %arg15: memref<64x24xbf16, #tpu.memory_space<vmem>>, %arg16: memref<1x24xf32, #tpu.memory_space<vmem>>, %arg17: memref<32x128xbf16, #tpu.memory_space<vmem>>, %arg18: memref<8x32xbf16, #tpu.memory_space<vmem>>, %arg19: memref<128x24xf32, #tpu.memory_space<vmem>>, %arg20: memref<1x24xf32, #tpu.memory_space<vmem>>, %arg21: memref<1x24xf32, #tpu.memory_space<vmem>>, %arg22: memref<32x24xf32, #tpu.memory_space<vmem>>, %arg23: memref<1x24xf32, #tpu.memory_space<vmem>>, %arg24: memref<1x24xf32, #tpu.memory_space<vmem>>, %arg25: memref<8x24xf32, #tpu.memory_space<vmem>>, %arg26: memref<1x24xf32, #tpu.memory_space<vmem>>, %arg27: memref<1x24xf32, #tpu.memory_space<vmem>>, %arg28: memref<2x8x8x16xf32, #tpu.memory_space<vmem>>, %arg29: memref<2x4x4x32xf32, #tpu.memory_space<vmem>>, %arg30: memref<2x2x2x64xf32, #tpu.memory_space<vmem>>, %arg31: memref<2x3x64x8xf32, #tpu.memory_space<vmem>>, %arg32: memref<2x3x16x8xf32, #tpu.memory_space<vmem>>, %arg33: memref<2x3x4x8xf32, #tpu.memory_space<vmem>>, %arg34: memref<2x252x9xf32, #tpu.memory_space<vmem>>) attributes {dimension_semantics = [], scalar_prefetch = 0 : i64, scratch_operands = 0 : i64, tpu.core_type = #tpu.core_type<tc>} {
    %c0 = arith.constant 0 : index
    %c0_0 = arith.constant 0 : index
    %0 = vector.load %arg0[%c0, %c0_0] : memref<128x3xf32, #tpu.memory_space<vmem>>, vector<128x3xf32>
    %c0_1 = arith.constant 0 : index
    %c0_2 = arith.constant 0 : index
    %1 = vector.load %arg1[%c0_1, %c0_2] : memref<3x8xf32, #tpu.memory_space<vmem>>, vector<3x8xf32>
    %2 = vector.extract_strided_slice %0 {offsets = [0, 0], sizes = [128, 1], strides = [1, 1]} : vector<128x3xf32> to vector<128x1xf32>
    %3 = vector.extract_strided_slice %1 {offsets = [0, 0], sizes = [1, 8], strides = [1, 1]} : vector<3x8xf32> to vector<1x8xf32>
    %4 = vector.broadcast %2 : vector<128x1xf32> to vector<128x8xf32>
    %5 = vector.broadcast %3 : vector<1x8xf32> to vector<128x8xf32>
    %6 = arith.mulf %4, %5 : vector<128x8xf32>
    %7 = vector.extract_strided_slice %0 {offsets = [0, 1], sizes = [128, 1], strides = [1, 1]} : vector<128x3xf32> to vector<128x1xf32>
    %8 = vector.extract_strided_slice %1 {offsets = [1, 0], sizes = [1, 8], strides = [1, 1]} : vector<3x8xf32> to vector<1x8xf32>
    %9 = vector.broadcast %7 : vector<128x1xf32> to vector<128x8xf32>
    %10 = vector.broadcast %8 : vector<1x8xf32> to vector<128x8xf32>
    %11 = arith.mulf %9, %10 : vector<128x8xf32>
    %12 = arith.addf %6, %11 : vector<128x8xf32>
    %13 = vector.extract_strided_slice %0 {offsets = [0, 2], sizes = [128, 1], strides = [1, 1]} : vector<128x3xf32> to vector<128x1xf32>
    %14 = vector.extract_strided_slice %1 {offsets = [2, 0], sizes = [1, 8], strides = [1, 1]} : vector<3x8xf32> to vector<1x8xf32>
    %15 = vector.broadcast %13 : vector<128x1xf32> to vector<128x8xf32>
    %16 = vector.broadcast %14 : vector<1x8xf32> to vector<128x8xf32>
    %17 = arith.mulf %15, %16 : vector<128x8xf32>
    %18 = arith.addf %12, %17 : vector<128x8xf32>
    %c0_3 = arith.constant 0 : index
    %c0_4 = arith.constant 0 : index
    %19 = vector.load %arg2[%c0_3, %c0_4] : memref<1x8xf32, #tpu.memory_space<vmem>>, vector<1x8xf32>
    %20 = vector.broadcast %19 : vector<1x8xf32> to vector<128x8xf32>
    %21 = arith.addf %18, %20 : vector<128x8xf32>
    %22 = arith.negf %21 : vector<128x8xf32>
    %23 = math.exp %22 : vector<128x8xf32>
    %cst = arith.constant 1.000000e+00 : f32
    %24 = vector.broadcast %cst : f32 to vector<128x8xf32>
    %25 = arith.addf %24, %23 : vector<128x8xf32>
    %26 = arith.divf %24, %25 : vector<128x8xf32>
    %27 = arith.mulf %21, %26 : vector<128x8xf32>
    %28 = arith.truncf %27 : vector<128x8xf32> to vector<128x8xbf16>
    %c0_5 = arith.constant 0 : index
    %c0_6 = arith.constant 0 : index
    %29 = vector.load %arg3[%c0_5, %c0_6] : memref<8x16xbf16, #tpu.memory_space<vmem>>, vector<8x16xbf16>
    %cst_7 = arith.constant dense<0.000000e+00> : vector<128x16xf32>
    %30 = tpu.matmul %28, %29, %cst_7 {dimension_numbers = #tpu.dot_dimension_numbers<[1], [0], [0], [1], [0, 0, 1, 1], [], []>} : vector<128x8xbf16>, vector<8x16xbf16>, vector<128x16xf32> -> vector<128x16xf32>
    %c0_8 = arith.constant 0 : index
    %c0_9 = arith.constant 0 : index
    %31 = vector.load %arg4[%c0_8, %c0_9] : memref<1x16xf32, #tpu.memory_space<vmem>>, vector<1x16xf32>
    %32 = vector.broadcast %31 : vector<1x16xf32> to vector<128x16xf32>
    %33 = arith.addf %30, %32 : vector<128x16xf32>
    %34 = arith.negf %33 : vector<128x16xf32>
    %35 = math.exp %34 : vector<128x16xf32>
    %cst_10 = arith.constant 1.000000e+00 : f32
    %36 = vector.broadcast %cst_10 : f32 to vector<128x16xf32>
    %37 = arith.addf %36, %35 : vector<128x16xf32>
    %38 = arith.divf %36, %37 : vector<128x16xf32>
    %39 = arith.mulf %33, %38 : vector<128x16xf32>
    %40 = arith.truncf %39 : vector<128x16xf32> to vector<128x16xbf16>
    %c0_11 = arith.constant 0 : index
    %c0_12 = arith.constant 0 : index
    %41 = vector.load %arg5[%c0_11, %c0_12] : memref<16x16xbf16, #tpu.memory_space<vmem>>, vector<16x16xbf16>
    %cst_13 = arith.constant dense<0.000000e+00> : vector<128x16xf32>
    %42 = tpu.matmul %40, %41, %cst_13 {dimension_numbers = #tpu.dot_dimension_numbers<[1], [0], [0], [1], [0, 0, 1, 1], [], []>} : vector<128x16xbf16>, vector<16x16xbf16>, vector<128x16xf32> -> vector<128x16xf32>
    %c0_14 = arith.constant 0 : index
    %c0_15 = arith.constant 0 : index
    %43 = vector.load %arg6[%c0_14, %c0_15] : memref<1x16xf32, #tpu.memory_space<vmem>>, vector<1x16xf32>
    %44 = vector.broadcast %43 : vector<1x16xf32> to vector<128x16xf32>
    %45 = arith.addf %42, %44 : vector<128x16xf32>
    %46 = arith.negf %45 : vector<128x16xf32>
    %47 = math.exp %46 : vector<128x16xf32>
    %cst_16 = arith.constant 1.000000e+00 : f32
    %48 = vector.broadcast %cst_16 : f32 to vector<128x16xf32>
    %49 = arith.addf %48, %47 : vector<128x16xf32>
    %50 = arith.divf %48, %49 : vector<128x16xf32>
    %51 = arith.mulf %45, %50 : vector<128x16xf32>
    %52 = arith.truncf %51 : vector<128x16xf32> to vector<128x16xbf16>
    %c0_17 = arith.constant 0 : index
    %c0_18 = arith.constant 0 : index
    %53 = vector.load %arg17[%c0_17, %c0_18] : memref<32x128xbf16, #tpu.memory_space<vmem>>, vector<32x128xbf16>
    %cst_19 = arith.constant dense<0.000000e+00> : vector<32x16xf32>
    %54 = tpu.matmul %53, %52, %cst_19 {dimension_numbers = #tpu.dot_dimension_numbers<[1], [0], [0], [1], [0, 0, 1, 1], [], []>} : vector<32x128xbf16>, vector<128x16xbf16>, vector<32x16xf32> -> vector<32x16xf32>
    %55 = arith.truncf %54 : vector<32x16xf32> to vector<32x16xbf16>
    %c0_20 = arith.constant 0 : index
    %c0_21 = arith.constant 0 : index
    %56 = vector.load %arg7[%c0_20, %c0_21] : memref<16x32xbf16, #tpu.memory_space<vmem>>, vector<16x32xbf16>
    %cst_22 = arith.constant dense<0.000000e+00> : vector<32x32xf32>
    %57 = tpu.matmul %55, %56, %cst_22 {dimension_numbers = #tpu.dot_dimension_numbers<[1], [0], [0], [1], [0, 0, 1, 1], [], []>} : vector<32x16xbf16>, vector<16x32xbf16>, vector<32x32xf32> -> vector<32x32xf32>
    %c0_23 = arith.constant 0 : index
    %c0_24 = arith.constant 0 : index
    %58 = vector.load %arg8[%c0_23, %c0_24] : memref<1x32xf32, #tpu.memory_space<vmem>>, vector<1x32xf32>
    %59 = vector.broadcast %58 : vector<1x32xf32> to vector<32x32xf32>
    %60 = arith.addf %57, %59 : vector<32x32xf32>
    %61 = arith.negf %60 : vector<32x32xf32>
    %62 = math.exp %61 : vector<32x32xf32>
    %cst_25 = arith.constant 1.000000e+00 : f32
    %63 = vector.broadcast %cst_25 : f32 to vector<32x32xf32>
    %64 = arith.addf %63, %62 : vector<32x32xf32>
    %65 = arith.divf %63, %64 : vector<32x32xf32>
    %66 = arith.mulf %60, %65 : vector<32x32xf32>
    %67 = arith.truncf %66 : vector<32x32xf32> to vector<32x32xbf16>
    %c0_26 = arith.constant 0 : index
    %c0_27 = arith.constant 0 : index
    %68 = vector.load %arg18[%c0_26, %c0_27] : memref<8x32xbf16, #tpu.memory_space<vmem>>, vector<8x32xbf16>
    %cst_28 = arith.constant dense<0.000000e+00> : vector<8x32xf32>
    %69 = tpu.matmul %68, %67, %cst_28 {dimension_numbers = #tpu.dot_dimension_numbers<[1], [0], [0], [1], [0, 0, 1, 1], [], []>} : vector<8x32xbf16>, vector<32x32xbf16>, vector<8x32xf32> -> vector<8x32xf32>
    %70 = arith.truncf %69 : vector<8x32xf32> to vector<8x32xbf16>
    %c0_29 = arith.constant 0 : index
    %c0_30 = arith.constant 0 : index
    %71 = vector.load %arg9[%c0_29, %c0_30] : memref<32x64xbf16, #tpu.memory_space<vmem>>, vector<32x64xbf16>
    %cst_31 = arith.constant dense<0.000000e+00> : vector<8x64xf32>
    %72 = tpu.matmul %70, %71, %cst_31 {dimension_numbers = #tpu.dot_dimension_numbers<[1], [0], [0], [1], [0, 0, 1, 1], [], []>} : vector<8x32xbf16>, vector<32x64xbf16>, vector<8x64xf32> -> vector<8x64xf32>
    %c0_32 = arith.constant 0 : index
    %c0_33 = arith.constant 0 : index
    %73 = vector.load %arg10[%c0_32, %c0_33] : memref<1x64xf32, #tpu.memory_space<vmem>>, vector<1x64xf32>
    %74 = vector.broadcast %73 : vector<1x64xf32> to vector<8x64xf32>
    %75 = arith.addf %72, %74 : vector<8x64xf32>
    %76 = arith.negf %75 : vector<8x64xf32>
    %77 = math.exp %76 : vector<8x64xf32>
    %cst_34 = arith.constant 1.000000e+00 : f32
    %78 = vector.broadcast %cst_34 : f32 to vector<8x64xf32>
    %79 = arith.addf %78, %77 : vector<8x64xf32>
    %80 = arith.divf %78, %79 : vector<8x64xf32>
    %81 = arith.mulf %75, %80 : vector<8x64xf32>
    %82 = arith.truncf %81 : vector<8x64xf32> to vector<8x64xbf16>
    %83 = vector.shape_cast %51 : vector<128x16xf32> to vector<2x8x8x16xf32>
    %c0_35 = arith.constant 0 : index
    %c0_36 = arith.constant 0 : index
    %c0_37 = arith.constant 0 : index
    %c0_38 = arith.constant 0 : index
    %84 = vector.load %arg28[%c0_35, %c0_36, %c0_37, %c0_38] : memref<2x8x8x16xf32, #tpu.memory_space<vmem>>, vector<2x8x8x16xf32>
    tpu.vector_store %arg28[%c0_35, %c0_36, %c0_37, %c0_38], %83 {strides = array<i32>} : memref<2x8x8x16xf32, #tpu.memory_space<vmem>>, vector<2x8x8x16xf32>,
    %c0_39 = arith.constant 0 : index
    %c0_40 = arith.constant 0 : index
    %85 = vector.load %arg11[%c0_39, %c0_40] : memref<16x24xbf16, #tpu.memory_space<vmem>>, vector<16x24xbf16>
    %cst_41 = arith.constant dense<0.000000e+00> : vector<128x24xf32>
    %86 = tpu.matmul %52, %85, %cst_41 {dimension_numbers = #tpu.dot_dimension_numbers<[1], [0], [0], [1], [0, 0, 1, 1], [], []>} : vector<128x16xbf16>, vector<16x24xbf16>, vector<128x24xf32> -> vector<128x24xf32>
    %c0_42 = arith.constant 0 : index
    %c0_43 = arith.constant 0 : index
    %87 = vector.load %arg12[%c0_42, %c0_43] : memref<1x24xf32, #tpu.memory_space<vmem>>, vector<1x24xf32>
    %88 = vector.broadcast %87 : vector<1x24xf32> to vector<128x24xf32>
    %89 = arith.addf %86, %88 : vector<128x24xf32>
    %90 = arith.negf %89 : vector<128x24xf32>
    %91 = math.exp %90 : vector<128x24xf32>
    %cst_44 = arith.constant 1.000000e+00 : f32
    %92 = vector.broadcast %cst_44 : f32 to vector<128x24xf32>
    %93 = arith.addf %92, %91 : vector<128x24xf32>
    %94 = arith.divf %92, %93 : vector<128x24xf32>
    %c0_45 = arith.constant 0 : index
    %c0_46 = arith.constant 0 : index
    %95 = vector.load %arg20[%c0_45, %c0_46] : memref<1x24xf32, #tpu.memory_space<vmem>>, vector<1x24xf32>
    %96 = vector.broadcast %95 : vector<1x24xf32> to vector<128x24xf32>
    %97 = arith.mulf %96, %94 : vector<128x24xf32>
    %c0_47 = arith.constant 0 : index
    %c0_48 = arith.constant 0 : index
    %98 = vector.load %arg21[%c0_47, %c0_48] : memref<1x24xf32, #tpu.memory_space<vmem>>, vector<1x24xf32>
    %99 = arith.mulf %94, %94 : vector<128x24xf32>
    %100 = vector.broadcast %98 : vector<1x24xf32> to vector<128x24xf32>
    %101 = arith.mulf %100, %99 : vector<128x24xf32>
    %102 = arith.addf %97, %101 : vector<128x24xf32>
    %c0_49 = arith.constant 0 : index
    %c0_50 = arith.constant 0 : index
    %103 = vector.load %arg19[%c0_49, %c0_50] : memref<128x24xf32, #tpu.memory_space<vmem>>, vector<128x24xf32>
    %104 = arith.addf %102, %103 : vector<128x24xf32>
    %105 = vector.extract_strided_slice %89 {offsets = [0, 0], sizes = [64, 8], strides = [1, 1]} : vector<128x24xf32> to vector<64x8xf32>
    %c0_51 = arith.constant 0 : index
    %c0_52 = arith.constant 0 : index
    %c0_53 = arith.constant 0 : index
    %c0_54 = arith.constant 0 : index
    %106 = vector.load %arg31[%c0_51, %c0_52, %c0_53, %c0_54] : memref<2x3x64x8xf32, #tpu.memory_space<vmem>>, vector<1x1x64x8xf32>
    %107 = vector.shape_cast %106 : vector<1x1x64x8xf32> to vector<64x8xf32>
    %108 = vector.shape_cast %105 : vector<64x8xf32> to vector<1x1x64x8xf32>
    tpu.vector_store %arg31[%c0_51, %c0_52, %c0_53, %c0_54], %108 {strides = array<i32>} : memref<2x3x64x8xf32, #tpu.memory_space<vmem>>, vector<1x1x64x8xf32>,
    %109 = vector.extract_strided_slice %104 {offsets = [0, 0], sizes = [64, 8], strides = [1, 1]} : vector<128x24xf32> to vector<64x8xf32>
    %c0_55 = arith.constant 0 : index
    %c0_56 = arith.constant 0 : index
    %c0_57 = arith.constant 0 : index
    %110 = vector.load %arg34[%c0_55, %c0_56, %c0_57] : memref<2x252x9xf32, #tpu.memory_space<vmem>>, vector<1x64x8xf32>
    %111 = vector.shape_cast %110 : vector<1x64x8xf32> to vector<64x8xf32>
    %112 = vector.shape_cast %109 : vector<64x8xf32> to vector<1x64x8xf32>
    tpu.vector_store %arg34[%c0_55, %c0_56, %c0_57], %112 {strides = array<i32>} : memref<2x252x9xf32, #tpu.memory_space<vmem>>, vector<1x64x8xf32>,
    %113 = vector.extract_strided_slice %89 {offsets = [0, 8], sizes = [64, 8], strides = [1, 1]} : vector<128x24xf32> to vector<64x8xf32>
    %c0_58 = arith.constant 0 : index
    %c1 = arith.constant 1 : index
    %c0_59 = arith.constant 0 : index
    %c0_60 = arith.constant 0 : index
    %114 = vector.load %arg31[%c0_58, %c1, %c0_59, %c0_60] : memref<2x3x64x8xf32, #tpu.memory_space<vmem>>, vector<1x1x64x8xf32>
    %115 = vector.shape_cast %114 : vector<1x1x64x8xf32> to vector<64x8xf32>
    %116 = vector.shape_cast %113 : vector<64x8xf32> to vector<1x1x64x8xf32>
    tpu.vector_store %arg31[%c0_58, %c1, %c0_59, %c0_60], %116 {strides = array<i32>} : memref<2x3x64x8xf32, #tpu.memory_space<vmem>>, vector<1x1x64x8xf32>,
    %117 = vector.extract_strided_slice %104 {offsets = [0, 8], sizes = [64, 8], strides = [1, 1]} : vector<128x24xf32> to vector<64x8xf32>
    %c0_61 = arith.constant 0 : index
    %c64 = arith.constant 64 : index
    %c0_62 = arith.constant 0 : index
    %118 = vector.load %arg34[%c0_61, %c64, %c0_62] : memref<2x252x9xf32, #tpu.memory_space<vmem>>, vector<1x64x8xf32>
    %119 = vector.shape_cast %118 : vector<1x64x8xf32> to vector<64x8xf32>
    %120 = vector.shape_cast %117 : vector<64x8xf32> to vector<1x64x8xf32>
    tpu.vector_store %arg34[%c0_61, %c64, %c0_62], %120 {strides = array<i32>} : memref<2x252x9xf32, #tpu.memory_space<vmem>>, vector<1x64x8xf32>,
    %121 = vector.extract_strided_slice %89 {offsets = [0, 16], sizes = [64, 8], strides = [1, 1]} : vector<128x24xf32> to vector<64x8xf32>
    %c0_63 = arith.constant 0 : index
    %c2 = arith.constant 2 : index
    %c0_64 = arith.constant 0 : index
    %c0_65 = arith.constant 0 : index
    %122 = vector.load %arg31[%c0_63, %c2, %c0_64, %c0_65] : memref<2x3x64x8xf32, #tpu.memory_space<vmem>>, vector<1x1x64x8xf32>
    %123 = vector.shape_cast %122 : vector<1x1x64x8xf32> to vector<64x8xf32>
    %124 = vector.shape_cast %121 : vector<64x8xf32> to vector<1x1x64x8xf32>
    tpu.vector_store %arg31[%c0_63, %c2, %c0_64, %c0_65], %124 {strides = array<i32>} : memref<2x3x64x8xf32, #tpu.memory_space<vmem>>, vector<1x1x64x8xf32>,
    %125 = vector.extract_strided_slice %104 {offsets = [0, 16], sizes = [64, 8], strides = [1, 1]} : vector<128x24xf32> to vector<64x8xf32>
    %c0_66 = arith.constant 0 : index
    %c128 = arith.constant 128 : index
    %c0_67 = arith.constant 0 : index
    %126 = vector.load %arg34[%c0_66, %c128, %c0_67] : memref<2x252x9xf32, #tpu.memory_space<vmem>>, vector<1x64x8xf32>
    %127 = vector.shape_cast %126 : vector<1x64x8xf32> to vector<64x8xf32>
    %128 = vector.shape_cast %125 : vector<64x8xf32> to vector<1x64x8xf32>
    tpu.vector_store %arg34[%c0_66, %c128, %c0_67], %128 {strides = array<i32>} : memref<2x252x9xf32, #tpu.memory_space<vmem>>, vector<1x64x8xf32>,
    %129 = vector.extract_strided_slice %89 {offsets = [64, 0], sizes = [64, 8], strides = [1, 1]} : vector<128x24xf32> to vector<64x8xf32>
    %c1_68 = arith.constant 1 : index
    %c0_69 = arith.constant 0 : index
    %c0_70 = arith.constant 0 : index
    %c0_71 = arith.constant 0 : index
    %130 = vector.load %arg31[%c1_68, %c0_69, %c0_70, %c0_71] : memref<2x3x64x8xf32, #tpu.memory_space<vmem>>, vector<1x1x64x8xf32>
    %131 = vector.shape_cast %130 : vector<1x1x64x8xf32> to vector<64x8xf32>
    %132 = vector.shape_cast %129 : vector<64x8xf32> to vector<1x1x64x8xf32>
    tpu.vector_store %arg31[%c1_68, %c0_69, %c0_70, %c0_71], %132 {strides = array<i32>} : memref<2x3x64x8xf32, #tpu.memory_space<vmem>>, vector<1x1x64x8xf32>,
    %133 = vector.extract_strided_slice %104 {offsets = [64, 0], sizes = [64, 8], strides = [1, 1]} : vector<128x24xf32> to vector<64x8xf32>
    %c1_72 = arith.constant 1 : index
    %c0_73 = arith.constant 0 : index
    %c0_74 = arith.constant 0 : index
    %134 = vector.load %arg34[%c1_72, %c0_73, %c0_74] : memref<2x252x9xf32, #tpu.memory_space<vmem>>, vector<1x64x8xf32>
    %135 = vector.shape_cast %134 : vector<1x64x8xf32> to vector<64x8xf32>
    %136 = vector.shape_cast %133 : vector<64x8xf32> to vector<1x64x8xf32>
    tpu.vector_store %arg34[%c1_72, %c0_73, %c0_74], %136 {strides = array<i32>} : memref<2x252x9xf32, #tpu.memory_space<vmem>>, vector<1x64x8xf32>,
    %137 = vector.extract_strided_slice %89 {offsets = [64, 8], sizes = [64, 8], strides = [1, 1]} : vector<128x24xf32> to vector<64x8xf32>
    %c1_75 = arith.constant 1 : index
    %c1_76 = arith.constant 1 : index
    %c0_77 = arith.constant 0 : index
    %c0_78 = arith.constant 0 : index
    %138 = vector.load %arg31[%c1_75, %c1_76, %c0_77, %c0_78] : memref<2x3x64x8xf32, #tpu.memory_space<vmem>>, vector<1x1x64x8xf32>
    %139 = vector.shape_cast %138 : vector<1x1x64x8xf32> to vector<64x8xf32>
    %140 = vector.shape_cast %137 : vector<64x8xf32> to vector<1x1x64x8xf32>
    tpu.vector_store %arg31[%c1_75, %c1_76, %c0_77, %c0_78], %140 {strides = array<i32>} : memref<2x3x64x8xf32, #tpu.memory_space<vmem>>, vector<1x1x64x8xf32>,
    %141 = vector.extract_strided_slice %104 {offsets = [64, 8], sizes = [64, 8], strides = [1, 1]} : vector<128x24xf32> to vector<64x8xf32>
    %c1_79 = arith.constant 1 : index
    %c64_80 = arith.constant 64 : index
    %c0_81 = arith.constant 0 : index
    %142 = vector.load %arg34[%c1_79, %c64_80, %c0_81] : memref<2x252x9xf32, #tpu.memory_space<vmem>>, vector<1x64x8xf32>
    %143 = vector.shape_cast %142 : vector<1x64x8xf32> to vector<64x8xf32>
    %144 = vector.shape_cast %141 : vector<64x8xf32> to vector<1x64x8xf32>
    tpu.vector_store %arg34[%c1_79, %c64_80, %c0_81], %144 {strides = array<i32>} : memref<2x252x9xf32, #tpu.memory_space<vmem>>, vector<1x64x8xf32>,
    %145 = vector.extract_strided_slice %89 {offsets = [64, 16], sizes = [64, 8], strides = [1, 1]} : vector<128x24xf32> to vector<64x8xf32>
    %c1_82 = arith.constant 1 : index
    %c2_83 = arith.constant 2 : index
    %c0_84 = arith.constant 0 : index
    %c0_85 = arith.constant 0 : index
    %146 = vector.load %arg31[%c1_82, %c2_83, %c0_84, %c0_85] : memref<2x3x64x8xf32, #tpu.memory_space<vmem>>, vector<1x1x64x8xf32>
    %147 = vector.shape_cast %146 : vector<1x1x64x8xf32> to vector<64x8xf32>
    %148 = vector.shape_cast %145 : vector<64x8xf32> to vector<1x1x64x8xf32>
    tpu.vector_store %arg31[%c1_82, %c2_83, %c0_84, %c0_85], %148 {strides = array<i32>} : memref<2x3x64x8xf32, #tpu.memory_space<vmem>>, vector<1x1x64x8xf32>,
    %149 = vector.extract_strided_slice %104 {offsets = [64, 16], sizes = [64, 8], strides = [1, 1]} : vector<128x24xf32> to vector<64x8xf32>
    %c1_86 = arith.constant 1 : index
    %c128_87 = arith.constant 128 : index
    %c0_88 = arith.constant 0 : index
    %150 = vector.load %arg34[%c1_86, %c128_87, %c0_88] : memref<2x252x9xf32, #tpu.memory_space<vmem>>, vector<1x64x8xf32>
    %151 = vector.shape_cast %150 : vector<1x64x8xf32> to vector<64x8xf32>
    %152 = vector.shape_cast %149 : vector<64x8xf32> to vector<1x64x8xf32>
    tpu.vector_store %arg34[%c1_86, %c128_87, %c0_88], %152 {strides = array<i32>} : memref<2x252x9xf32, #tpu.memory_space<vmem>>, vector<1x64x8xf32>,
    %cst_89 = arith.constant 0.000000e+00 : f32
    %153 = vector.broadcast %cst_89 : f32 to vector<2x192x1xf32>
    %c0_90 = arith.constant 0 : index
    %c0_91 = arith.constant 0 : index
    %c8 = arith.constant 8 : index
    %154 = vector.load %arg34[%c0_90, %c0_91, %c8] : memref<2x252x9xf32, #tpu.memory_space<vmem>>, vector<2x192x1xf32>
    tpu.vector_store %arg34[%c0_90, %c0_91, %c8], %153 {strides = array<i32>} : memref<2x252x9xf32, #tpu.memory_space<vmem>>, vector<2x192x1xf32>,
    %155 = vector.shape_cast %66 : vector<32x32xf32> to vector<2x4x4x32xf32>
    %c0_92 = arith.constant 0 : index
    %c0_93 = arith.constant 0 : index
    %c0_94 = arith.constant 0 : index
    %c0_95 = arith.constant 0 : index
    %156 = vector.load %arg29[%c0_92, %c0_93, %c0_94, %c0_95] : memref<2x4x4x32xf32, #tpu.memory_space<vmem>>, vector<2x4x4x32xf32>
    tpu.vector_store %arg29[%c0_92, %c0_93, %c0_94, %c0_95], %155 {strides = array<i32>} : memref<2x4x4x32xf32, #tpu.memory_space<vmem>>, vector<2x4x4x32xf32>,
    %c0_96 = arith.constant 0 : index
    %c0_97 = arith.constant 0 : index
    %157 = vector.load %arg13[%c0_96, %c0_97] : memref<32x24xbf16, #tpu.memory_space<vmem>>, vector<32x24xbf16>
    %cst_98 = arith.constant dense<0.000000e+00> : vector<32x24xf32>
    %158 = tpu.matmul %67, %157, %cst_98 {dimension_numbers = #tpu.dot_dimension_numbers<[1], [0], [0], [1], [0, 0, 1, 1], [], []>} : vector<32x32xbf16>, vector<32x24xbf16>, vector<32x24xf32> -> vector<32x24xf32>
    %c0_99 = arith.constant 0 : index
    %c0_100 = arith.constant 0 : index
    %159 = vector.load %arg14[%c0_99, %c0_100] : memref<1x24xf32, #tpu.memory_space<vmem>>, vector<1x24xf32>
    %160 = vector.broadcast %159 : vector<1x24xf32> to vector<32x24xf32>
    %161 = arith.addf %158, %160 : vector<32x24xf32>
    %162 = arith.negf %161 : vector<32x24xf32>
    %163 = math.exp %162 : vector<32x24xf32>
    %cst_101 = arith.constant 1.000000e+00 : f32
    %164 = vector.broadcast %cst_101 : f32 to vector<32x24xf32>
    %165 = arith.addf %164, %163 : vector<32x24xf32>
    %166 = arith.divf %164, %165 : vector<32x24xf32>
    %c0_102 = arith.constant 0 : index
    %c0_103 = arith.constant 0 : index
    %167 = vector.load %arg23[%c0_102, %c0_103] : memref<1x24xf32, #tpu.memory_space<vmem>>, vector<1x24xf32>
    %168 = vector.broadcast %167 : vector<1x24xf32> to vector<32x24xf32>
    %169 = arith.mulf %168, %166 : vector<32x24xf32>
    %c0_104 = arith.constant 0 : index
    %c0_105 = arith.constant 0 : index
    %170 = vector.load %arg24[%c0_104, %c0_105] : memref<1x24xf32, #tpu.memory_space<vmem>>, vector<1x24xf32>
    %171 = arith.mulf %166, %166 : vector<32x24xf32>
    %172 = vector.broadcast %170 : vector<1x24xf32> to vector<32x24xf32>
    %173 = arith.mulf %172, %171 : vector<32x24xf32>
    %174 = arith.addf %169, %173 : vector<32x24xf32>
    %c0_106 = arith.constant 0 : index
    %c0_107 = arith.constant 0 : index
    %175 = vector.load %arg22[%c0_106, %c0_107] : memref<32x24xf32, #tpu.memory_space<vmem>>, vector<32x24xf32>
    %176 = arith.addf %174, %175 : vector<32x24xf32>
    %177 = vector.extract_strided_slice %161 {offsets = [0, 0], sizes = [16, 8], strides = [1, 1]} : vector<32x24xf32> to vector<16x8xf32>
    %c0_108 = arith.constant 0 : index
    %c0_109 = arith.constant 0 : index
    %c0_110 = arith.constant 0 : index
    %c0_111 = arith.constant 0 : index
    %178 = vector.load %arg32[%c0_108, %c0_109, %c0_110, %c0_111] : memref<2x3x16x8xf32, #tpu.memory_space<vmem>>, vector<1x1x16x8xf32>
    %179 = vector.shape_cast %178 : vector<1x1x16x8xf32> to vector<16x8xf32>
    %180 = vector.shape_cast %177 : vector<16x8xf32> to vector<1x1x16x8xf32>
    tpu.vector_store %arg32[%c0_108, %c0_109, %c0_110, %c0_111], %180 {strides = array<i32>} : memref<2x3x16x8xf32, #tpu.memory_space<vmem>>, vector<1x1x16x8xf32>,
    %181 = vector.extract_strided_slice %176 {offsets = [0, 0], sizes = [16, 8], strides = [1, 1]} : vector<32x24xf32> to vector<16x8xf32>
    %c0_112 = arith.constant 0 : index
    %c192 = arith.constant 192 : index
    %c0_113 = arith.constant 0 : index
    %182 = vector.load %arg34[%c0_112, %c192, %c0_113] : memref<2x252x9xf32, #tpu.memory_space<vmem>>, vector<1x16x8xf32>
    %183 = vector.shape_cast %182 : vector<1x16x8xf32> to vector<16x8xf32>
    %184 = vector.shape_cast %181 : vector<16x8xf32> to vector<1x16x8xf32>
    tpu.vector_store %arg34[%c0_112, %c192, %c0_113], %184 {strides = array<i32>} : memref<2x252x9xf32, #tpu.memory_space<vmem>>, vector<1x16x8xf32>,
    %185 = vector.extract_strided_slice %161 {offsets = [0, 8], sizes = [16, 8], strides = [1, 1]} : vector<32x24xf32> to vector<16x8xf32>
    %c0_114 = arith.constant 0 : index
    %c1_115 = arith.constant 1 : index
    %c0_116 = arith.constant 0 : index
    %c0_117 = arith.constant 0 : index
    %186 = vector.load %arg32[%c0_114, %c1_115, %c0_116, %c0_117] : memref<2x3x16x8xf32, #tpu.memory_space<vmem>>, vector<1x1x16x8xf32>
    %187 = vector.shape_cast %186 : vector<1x1x16x8xf32> to vector<16x8xf32>
    %188 = vector.shape_cast %185 : vector<16x8xf32> to vector<1x1x16x8xf32>
    tpu.vector_store %arg32[%c0_114, %c1_115, %c0_116, %c0_117], %188 {strides = array<i32>} : memref<2x3x16x8xf32, #tpu.memory_space<vmem>>, vector<1x1x16x8xf32>,
    %189 = vector.extract_strided_slice %176 {offsets = [0, 8], sizes = [16, 8], strides = [1, 1]} : vector<32x24xf32> to vector<16x8xf32>
    %c0_118 = arith.constant 0 : index
    %c208 = arith.constant 208 : index
    %c0_119 = arith.constant 0 : index
    %190 = vector.load %arg34[%c0_118, %c208, %c0_119] : memref<2x252x9xf32, #tpu.memory_space<vmem>>, vector<1x16x8xf32>
    %191 = vector.shape_cast %190 : vector<1x16x8xf32> to vector<16x8xf32>
    %192 = vector.shape_cast %189 : vector<16x8xf32> to vector<1x16x8xf32>
    tpu.vector_store %arg34[%c0_118, %c208, %c0_119], %192 {strides = array<i32>} : memref<2x252x9xf32, #tpu.memory_space<vmem>>, vector<1x16x8xf32>,
    %193 = vector.extract_strided_slice %161 {offsets = [0, 16], sizes = [16, 8], strides = [1, 1]} : vector<32x24xf32> to vector<16x8xf32>
    %c0_120 = arith.constant 0 : index
    %c2_121 = arith.constant 2 : index
    %c0_122 = arith.constant 0 : index
    %c0_123 = arith.constant 0 : index
    %194 = vector.load %arg32[%c0_120, %c2_121, %c0_122, %c0_123] : memref<2x3x16x8xf32, #tpu.memory_space<vmem>>, vector<1x1x16x8xf32>
    %195 = vector.shape_cast %194 : vector<1x1x16x8xf32> to vector<16x8xf32>
    %196 = vector.shape_cast %193 : vector<16x8xf32> to vector<1x1x16x8xf32>
    tpu.vector_store %arg32[%c0_120, %c2_121, %c0_122, %c0_123], %196 {strides = array<i32>} : memref<2x3x16x8xf32, #tpu.memory_space<vmem>>, vector<1x1x16x8xf32>,
    %197 = vector.extract_strided_slice %176 {offsets = [0, 16], sizes = [16, 8], strides = [1, 1]} : vector<32x24xf32> to vector<16x8xf32>
    %c0_124 = arith.constant 0 : index
    %c224 = arith.constant 224 : index
    %c0_125 = arith.constant 0 : index
    %198 = vector.load %arg34[%c0_124, %c224, %c0_125] : memref<2x252x9xf32, #tpu.memory_space<vmem>>, vector<1x16x8xf32>
    %199 = vector.shape_cast %198 : vector<1x16x8xf32> to vector<16x8xf32>
    %200 = vector.shape_cast %197 : vector<16x8xf32> to vector<1x16x8xf32>
    tpu.vector_store %arg34[%c0_124, %c224, %c0_125], %200 {strides = array<i32>} : memref<2x252x9xf32, #tpu.memory_space<vmem>>, vector<1x16x8xf32>,
    %201 = vector.extract_strided_slice %161 {offsets = [16, 0], sizes = [16, 8], strides = [1, 1]} : vector<32x24xf32> to vector<16x8xf32>
    %c1_126 = arith.constant 1 : index
    %c0_127 = arith.constant 0 : index
    %c0_128 = arith.constant 0 : index
    %c0_129 = arith.constant 0 : index
    %202 = vector.load %arg32[%c1_126, %c0_127, %c0_128, %c0_129] : memref<2x3x16x8xf32, #tpu.memory_space<vmem>>, vector<1x1x16x8xf32>
    %203 = vector.shape_cast %202 : vector<1x1x16x8xf32> to vector<16x8xf32>
    %204 = vector.shape_cast %201 : vector<16x8xf32> to vector<1x1x16x8xf32>
    tpu.vector_store %arg32[%c1_126, %c0_127, %c0_128, %c0_129], %204 {strides = array<i32>} : memref<2x3x16x8xf32, #tpu.memory_space<vmem>>, vector<1x1x16x8xf32>,
    %205 = vector.extract_strided_slice %176 {offsets = [16, 0], sizes = [16, 8], strides = [1, 1]} : vector<32x24xf32> to vector<16x8xf32>
    %c1_130 = arith.constant 1 : index
    %c192_131 = arith.constant 192 : index
    %c0_132 = arith.constant 0 : index
    %206 = vector.load %arg34[%c1_130, %c192_131, %c0_132] : memref<2x252x9xf32, #tpu.memory_space<vmem>>, vector<1x16x8xf32>
    %207 = vector.shape_cast %206 : vector<1x16x8xf32> to vector<16x8xf32>
    %208 = vector.shape_cast %205 : vector<16x8xf32> to vector<1x16x8xf32>
    tpu.vector_store %arg34[%c1_130, %c192_131, %c0_132], %208 {strides = array<i32>} : memref<2x252x9xf32, #tpu.memory_space<vmem>>, vector<1x16x8xf32>,
    %209 = vector.extract_strided_slice %161 {offsets = [16, 8], sizes = [16, 8], strides = [1, 1]} : vector<32x24xf32> to vector<16x8xf32>
    %c1_133 = arith.constant 1 : index
    %c1_134 = arith.constant 1 : index
    %c0_135 = arith.constant 0 : index
    %c0_136 = arith.constant 0 : index
    %210 = vector.load %arg32[%c1_133, %c1_134, %c0_135, %c0_136] : memref<2x3x16x8xf32, #tpu.memory_space<vmem>>, vector<1x1x16x8xf32>
    %211 = vector.shape_cast %210 : vector<1x1x16x8xf32> to vector<16x8xf32>
    %212 = vector.shape_cast %209 : vector<16x8xf32> to vector<1x1x16x8xf32>
    tpu.vector_store %arg32[%c1_133, %c1_134, %c0_135, %c0_136], %212 {strides = array<i32>} : memref<2x3x16x8xf32, #tpu.memory_space<vmem>>, vector<1x1x16x8xf32>,
    %213 = vector.extract_strided_slice %176 {offsets = [16, 8], sizes = [16, 8], strides = [1, 1]} : vector<32x24xf32> to vector<16x8xf32>
    %c1_137 = arith.constant 1 : index
    %c208_138 = arith.constant 208 : index
    %c0_139 = arith.constant 0 : index
    %214 = vector.load %arg34[%c1_137, %c208_138, %c0_139] : memref<2x252x9xf32, #tpu.memory_space<vmem>>, vector<1x16x8xf32>
    %215 = vector.shape_cast %214 : vector<1x16x8xf32> to vector<16x8xf32>
    %216 = vector.shape_cast %213 : vector<16x8xf32> to vector<1x16x8xf32>
    tpu.vector_store %arg34[%c1_137, %c208_138, %c0_139], %216 {strides = array<i32>} : memref<2x252x9xf32, #tpu.memory_space<vmem>>, vector<1x16x8xf32>,
    %217 = vector.extract_strided_slice %161 {offsets = [16, 16], sizes = [16, 8], strides = [1, 1]} : vector<32x24xf32> to vector<16x8xf32>
    %c1_140 = arith.constant 1 : index
    %c2_141 = arith.constant 2 : index
    %c0_142 = arith.constant 0 : index
    %c0_143 = arith.constant 0 : index
    %218 = vector.load %arg32[%c1_140, %c2_141, %c0_142, %c0_143] : memref<2x3x16x8xf32, #tpu.memory_space<vmem>>, vector<1x1x16x8xf32>
    %219 = vector.shape_cast %218 : vector<1x1x16x8xf32> to vector<16x8xf32>
    %220 = vector.shape_cast %217 : vector<16x8xf32> to vector<1x1x16x8xf32>
    tpu.vector_store %arg32[%c1_140, %c2_141, %c0_142, %c0_143], %220 {strides = array<i32>} : memref<2x3x16x8xf32, #tpu.memory_space<vmem>>, vector<1x1x16x8xf32>,
    %221 = vector.extract_strided_slice %176 {offsets = [16, 16], sizes = [16, 8], strides = [1, 1]} : vector<32x24xf32> to vector<16x8xf32>
    %c1_144 = arith.constant 1 : index
    %c224_145 = arith.constant 224 : index
    %c0_146 = arith.constant 0 : index
    %222 = vector.load %arg34[%c1_144, %c224_145, %c0_146] : memref<2x252x9xf32, #tpu.memory_space<vmem>>, vector<1x16x8xf32>
    %223 = vector.shape_cast %222 : vector<1x16x8xf32> to vector<16x8xf32>
    %224 = vector.shape_cast %221 : vector<16x8xf32> to vector<1x16x8xf32>
    tpu.vector_store %arg34[%c1_144, %c224_145, %c0_146], %224 {strides = array<i32>} : memref<2x252x9xf32, #tpu.memory_space<vmem>>, vector<1x16x8xf32>,
    %cst_147 = arith.constant 1.000000e+00 : f32
    %225 = vector.broadcast %cst_147 : f32 to vector<2x48x1xf32>
    %c0_148 = arith.constant 0 : index
    %c192_149 = arith.constant 192 : index
    %c8_150 = arith.constant 8 : index
    %226 = vector.load %arg34[%c0_148, %c192_149, %c8_150] : memref<2x252x9xf32, #tpu.memory_space<vmem>>, vector<2x48x1xf32>
    tpu.vector_store %arg34[%c0_148, %c192_149, %c8_150], %225 {strides = array<i32>} : memref<2x252x9xf32, #tpu.memory_space<vmem>>, vector<2x48x1xf32>,
    %227 = vector.shape_cast %81 : vector<8x64xf32> to vector<2x2x2x64xf32>
    %c0_151 = arith.constant 0 : index
    %c0_152 = arith.constant 0 : index
    %c0_153 = arith.constant 0 : index
    %c0_154 = arith.constant 0 : index
    %228 = vector.load %arg30[%c0_151, %c0_152, %c0_153, %c0_154] : memref<2x2x2x64xf32, #tpu.memory_space<vmem>>, vector<2x2x2x64xf32>
    tpu.vector_store %arg30[%c0_151, %c0_152, %c0_153, %c0_154], %227 {strides = array<i32>} : memref<2x2x2x64xf32, #tpu.memory_space<vmem>>, vector<2x2x2x64xf32>,
    %c0_155 = arith.constant 0 : index
    %c0_156 = arith.constant 0 : index
    %229 = vector.load %arg15[%c0_155, %c0_156] : memref<64x24xbf16, #tpu.memory_space<vmem>>, vector<64x24xbf16>
    %cst_157 = arith.constant dense<0.000000e+00> : vector<8x24xf32>
    %230 = tpu.matmul %82, %229, %cst_157 {dimension_numbers = #tpu.dot_dimension_numbers<[1], [0], [0], [1], [0, 0, 1, 1], [], []>} : vector<8x64xbf16>, vector<64x24xbf16>, vector<8x24xf32> -> vector<8x24xf32>
    %c0_158 = arith.constant 0 : index
    %c0_159 = arith.constant 0 : index
    %231 = vector.load %arg16[%c0_158, %c0_159] : memref<1x24xf32, #tpu.memory_space<vmem>>, vector<1x24xf32>
    %232 = vector.broadcast %231 : vector<1x24xf32> to vector<8x24xf32>
    %233 = arith.addf %230, %232 : vector<8x24xf32>
    %234 = arith.negf %233 : vector<8x24xf32>
    %235 = math.exp %234 : vector<8x24xf32>
    %cst_160 = arith.constant 1.000000e+00 : f32
    %236 = vector.broadcast %cst_160 : f32 to vector<8x24xf32>
    %237 = arith.addf %236, %235 : vector<8x24xf32>
    %238 = arith.divf %236, %237 : vector<8x24xf32>
    %c0_161 = arith.constant 0 : index
    %c0_162 = arith.constant 0 : index
    %239 = vector.load %arg26[%c0_161, %c0_162] : memref<1x24xf32, #tpu.memory_space<vmem>>, vector<1x24xf32>
    %240 = vector.broadcast %239 : vector<1x24xf32> to vector<8x24xf32>
    %241 = arith.mulf %240, %238 : vector<8x24xf32>
    %c0_163 = arith.constant 0 : index
    %c0_164 = arith.constant 0 : index
    %242 = vector.load %arg27[%c0_163, %c0_164] : memref<1x24xf32, #tpu.memory_space<vmem>>, vector<1x24xf32>
    %243 = arith.mulf %238, %238 : vector<8x24xf32>
    %244 = vector.broadcast %242 : vector<1x24xf32> to vector<8x24xf32>
    %245 = arith.mulf %244, %243 : vector<8x24xf32>
    %246 = arith.addf %241, %245 : vector<8x24xf32>
    %c0_165 = arith.constant 0 : index
    %c0_166 = arith.constant 0 : index
    %247 = vector.load %arg25[%c0_165, %c0_166] : memref<8x24xf32, #tpu.memory_space<vmem>>, vector<8x24xf32>
    %248 = arith.addf %246, %247 : vector<8x24xf32>
    %249 = vector.extract_strided_slice %233 {offsets = [0, 0], sizes = [4, 8], strides = [1, 1]} : vector<8x24xf32> to vector<4x8xf32>
    %c0_167 = arith.constant 0 : index
    %c0_168 = arith.constant 0 : index
    %c0_169 = arith.constant 0 : index
    %c0_170 = arith.constant 0 : index
    %250 = vector.load %arg33[%c0_167, %c0_168, %c0_169, %c0_170] : memref<2x3x4x8xf32, #tpu.memory_space<vmem>>, vector<1x1x4x8xf32>
    %251 = vector.shape_cast %250 : vector<1x1x4x8xf32> to vector<4x8xf32>
    %252 = vector.shape_cast %249 : vector<4x8xf32> to vector<1x1x4x8xf32>
    tpu.vector_store %arg33[%c0_167, %c0_168, %c0_169, %c0_170], %252 {strides = array<i32>} : memref<2x3x4x8xf32, #tpu.memory_space<vmem>>, vector<1x1x4x8xf32>,
    %253 = vector.extract_strided_slice %248 {offsets = [0, 0], sizes = [4, 8], strides = [1, 1]} : vector<8x24xf32> to vector<4x8xf32>
    %c0_171 = arith.constant 0 : index
    %c240 = arith.constant 240 : index
    %c0_172 = arith.constant 0 : index
    %254 = vector.load %arg34[%c0_171, %c240, %c0_172] : memref<2x252x9xf32, #tpu.memory_space<vmem>>, vector<1x4x8xf32>
    %255 = vector.shape_cast %254 : vector<1x4x8xf32> to vector<4x8xf32>
    %256 = vector.shape_cast %253 : vector<4x8xf32> to vector<1x4x8xf32>
    tpu.vector_store %arg34[%c0_171, %c240, %c0_172], %256 {strides = array<i32>} : memref<2x252x9xf32, #tpu.memory_space<vmem>>, vector<1x4x8xf32>,
    %257 = vector.extract_strided_slice %233 {offsets = [0, 8], sizes = [4, 8], strides = [1, 1]} : vector<8x24xf32> to vector<4x8xf32>
    %c0_173 = arith.constant 0 : index
    %c1_174 = arith.constant 1 : index
    %c0_175 = arith.constant 0 : index
    %c0_176 = arith.constant 0 : index
    %258 = vector.load %arg33[%c0_173, %c1_174, %c0_175, %c0_176] : memref<2x3x4x8xf32, #tpu.memory_space<vmem>>, vector<1x1x4x8xf32>
    %259 = vector.shape_cast %258 : vector<1x1x4x8xf32> to vector<4x8xf32>
    %260 = vector.shape_cast %257 : vector<4x8xf32> to vector<1x1x4x8xf32>
    tpu.vector_store %arg33[%c0_173, %c1_174, %c0_175, %c0_176], %260 {strides = array<i32>} : memref<2x3x4x8xf32, #tpu.memory_space<vmem>>, vector<1x1x4x8xf32>,
    %261 = vector.extract_strided_slice %248 {offsets = [0, 8], sizes = [4, 8], strides = [1, 1]} : vector<8x24xf32> to vector<4x8xf32>
    %c0_177 = arith.constant 0 : index
    %c244 = arith.constant 244 : index
    %c0_178 = arith.constant 0 : index
    %262 = vector.load %arg34[%c0_177, %c244, %c0_178] : memref<2x252x9xf32, #tpu.memory_space<vmem>>, vector<1x4x8xf32>
    %263 = vector.shape_cast %262 : vector<1x4x8xf32> to vector<4x8xf32>
    %264 = vector.shape_cast %261 : vector<4x8xf32> to vector<1x4x8xf32>
    tpu.vector_store %arg34[%c0_177, %c244, %c0_178], %264 {strides = array<i32>} : memref<2x252x9xf32, #tpu.memory_space<vmem>>, vector<1x4x8xf32>,
    %265 = vector.extract_strided_slice %233 {offsets = [0, 16], sizes = [4, 8], strides = [1, 1]} : vector<8x24xf32> to vector<4x8xf32>
    %c0_179 = arith.constant 0 : index
    %c2_180 = arith.constant 2 : index
    %c0_181 = arith.constant 0 : index
    %c0_182 = arith.constant 0 : index
    %266 = vector.load %arg33[%c0_179, %c2_180, %c0_181, %c0_182] : memref<2x3x4x8xf32, #tpu.memory_space<vmem>>, vector<1x1x4x8xf32>
    %267 = vector.shape_cast %266 : vector<1x1x4x8xf32> to vector<4x8xf32>
    %268 = vector.shape_cast %265 : vector<4x8xf32> to vector<1x1x4x8xf32>
    tpu.vector_store %arg33[%c0_179, %c2_180, %c0_181, %c0_182], %268 {strides = array<i32>} : memref<2x3x4x8xf32, #tpu.memory_space<vmem>>, vector<1x1x4x8xf32>,
    %269 = vector.extract_strided_slice %248 {offsets = [0, 16], sizes = [4, 8], strides = [1, 1]} : vector<8x24xf32> to vector<4x8xf32>
    %c0_183 = arith.constant 0 : index
    %c248 = arith.constant 248 : index
    %c0_184 = arith.constant 0 : index
    %270 = vector.load %arg34[%c0_183, %c248, %c0_184] : memref<2x252x9xf32, #tpu.memory_space<vmem>>, vector<1x4x8xf32>
    %271 = vector.shape_cast %270 : vector<1x4x8xf32> to vector<4x8xf32>
    %272 = vector.shape_cast %269 : vector<4x8xf32> to vector<1x4x8xf32>
    tpu.vector_store %arg34[%c0_183, %c248, %c0_184], %272 {strides = array<i32>} : memref<2x252x9xf32, #tpu.memory_space<vmem>>, vector<1x4x8xf32>,
    %273 = vector.extract_strided_slice %233 {offsets = [4, 0], sizes = [4, 8], strides = [1, 1]} : vector<8x24xf32> to vector<4x8xf32>
    %c1_185 = arith.constant 1 : index
    %c0_186 = arith.constant 0 : index
    %c0_187 = arith.constant 0 : index
    %c0_188 = arith.constant 0 : index
    %274 = vector.load %arg33[%c1_185, %c0_186, %c0_187, %c0_188] : memref<2x3x4x8xf32, #tpu.memory_space<vmem>>, vector<1x1x4x8xf32>
    %275 = vector.shape_cast %274 : vector<1x1x4x8xf32> to vector<4x8xf32>
    %276 = vector.shape_cast %273 : vector<4x8xf32> to vector<1x1x4x8xf32>
    tpu.vector_store %arg33[%c1_185, %c0_186, %c0_187, %c0_188], %276 {strides = array<i32>} : memref<2x3x4x8xf32, #tpu.memory_space<vmem>>, vector<1x1x4x8xf32>,
    %277 = vector.extract_strided_slice %248 {offsets = [4, 0], sizes = [4, 8], strides = [1, 1]} : vector<8x24xf32> to vector<4x8xf32>
    %c1_189 = arith.constant 1 : index
    %c240_190 = arith.constant 240 : index
    %c0_191 = arith.constant 0 : index
    %278 = vector.load %arg34[%c1_189, %c240_190, %c0_191] : memref<2x252x9xf32, #tpu.memory_space<vmem>>, vector<1x4x8xf32>
    %279 = vector.shape_cast %278 : vector<1x4x8xf32> to vector<4x8xf32>
    %280 = vector.shape_cast %277 : vector<4x8xf32> to vector<1x4x8xf32>
    tpu.vector_store %arg34[%c1_189, %c240_190, %c0_191], %280 {strides = array<i32>} : memref<2x252x9xf32, #tpu.memory_space<vmem>>, vector<1x4x8xf32>,
    %281 = vector.extract_strided_slice %233 {offsets = [4, 8], sizes = [4, 8], strides = [1, 1]} : vector<8x24xf32> to vector<4x8xf32>
    %c1_192 = arith.constant 1 : index
    %c1_193 = arith.constant 1 : index
    %c0_194 = arith.constant 0 : index
    %c0_195 = arith.constant 0 : index
    %282 = vector.load %arg33[%c1_192, %c1_193, %c0_194, %c0_195] : memref<2x3x4x8xf32, #tpu.memory_space<vmem>>, vector<1x1x4x8xf32>
    %283 = vector.shape_cast %282 : vector<1x1x4x8xf32> to vector<4x8xf32>
    %284 = vector.shape_cast %281 : vector<4x8xf32> to vector<1x1x4x8xf32>
    tpu.vector_store %arg33[%c1_192, %c1_193, %c0_194, %c0_195], %284 {strides = array<i32>} : memref<2x3x4x8xf32, #tpu.memory_space<vmem>>, vector<1x1x4x8xf32>,
    %285 = vector.extract_strided_slice %248 {offsets = [4, 8], sizes = [4, 8], strides = [1, 1]} : vector<8x24xf32> to vector<4x8xf32>
    %c1_196 = arith.constant 1 : index
    %c244_197 = arith.constant 244 : index
    %c0_198 = arith.constant 0 : index
    %286 = vector.load %arg34[%c1_196, %c244_197, %c0_198] : memref<2x252x9xf32, #tpu.memory_space<vmem>>, vector<1x4x8xf32>
    %287 = vector.shape_cast %286 : vector<1x4x8xf32> to vector<4x8xf32>
    %288 = vector.shape_cast %285 : vector<4x8xf32> to vector<1x4x8xf32>
    tpu.vector_store %arg34[%c1_196, %c244_197, %c0_198], %288 {strides = array<i32>} : memref<2x252x9xf32, #tpu.memory_space<vmem>>, vector<1x4x8xf32>,
    %289 = vector.extract_strided_slice %233 {offsets = [4, 16], sizes = [4, 8], strides = [1, 1]} : vector<8x24xf32> to vector<4x8xf32>
    %c1_199 = arith.constant 1 : index
    %c2_200 = arith.constant 2 : index
    %c0_201 = arith.constant 0 : index
    %c0_202 = arith.constant 0 : index
    %290 = vector.load %arg33[%c1_199, %c2_200, %c0_201, %c0_202] : memref<2x3x4x8xf32, #tpu.memory_space<vmem>>, vector<1x1x4x8xf32>
    %291 = vector.shape_cast %290 : vector<1x1x4x8xf32> to vector<4x8xf32>
    %292 = vector.shape_cast %289 : vector<4x8xf32> to vector<1x1x4x8xf32>
    tpu.vector_store %arg33[%c1_199, %c2_200, %c0_201, %c0_202], %292 {strides = array<i32>} : memref<2x3x4x8xf32, #tpu.memory_space<vmem>>, vector<1x1x4x8xf32>,
    %293 = vector.extract_strided_slice %248 {offsets = [4, 16], sizes = [4, 8], strides = [1, 1]} : vector<8x24xf32> to vector<4x8xf32>
    %c1_203 = arith.constant 1 : index
    %c248_204 = arith.constant 248 : index
    %c0_205 = arith.constant 0 : index
    %294 = vector.load %arg34[%c1_203, %c248_204, %c0_205] : memref<2x252x9xf32, #tpu.memory_space<vmem>>, vector<1x4x8xf32>
    %295 = vector.shape_cast %294 : vector<1x4x8xf32> to vector<4x8xf32>
    %296 = vector.shape_cast %293 : vector<4x8xf32> to vector<1x4x8xf32>
    tpu.vector_store %arg34[%c1_203, %c248_204, %c0_205], %296 {strides = array<i32>} : memref<2x252x9xf32, #tpu.memory_space<vmem>>, vector<1x4x8xf32>,
    %cst_206 = arith.constant 2.000000e+00 : f32
    %297 = vector.broadcast %cst_206 : f32 to vector<2x12x1xf32>
    %c0_207 = arith.constant 0 : index
    %c240_208 = arith.constant 240 : index
    %c8_209 = arith.constant 8 : index
    %298 = vector.load %arg34[%c0_207, %c240_208, %c8_209] : memref<2x252x9xf32, #tpu.memory_space<vmem>>, vector<2x12x1xf32>
    tpu.vector_store %arg34[%c0_207, %c240_208, %c8_209], %297 {strides = array<i32>} : memref<2x252x9xf32, #tpu.memory_space<vmem>>, vector<2x12x1xf32>,
    return
  }
}

</mosaic_0001>

<bundles_post_ra>
// kernel: tpu_custom_call.1
= control target key start
LH: loop header
LB: loop body
LE: loop exit
PB: predicated region body
PF: predicated region fallthrough
CT: control target
= control target key end

     0   :  { %s3526_s6 = smov 1   ;;  %s3527_s10 = smov 2   ;;  %s4871_s0 = inlined_call_operand.smem [shape: u32[35], index: -1, kind: input, shape index: {}] }
   0x1   :  { %s3588_s5 = sld [smem:[%s4871_s0]]   ;;  %s3528_s14 = smov 3  }
   0x2   :  { %s3593_s9 = sld [smem:[%s4871_s0 + %s3526_s6]]   ;;  %s3529_s18 = smov 4  }
   0x3   :  { %s3598_s13 = sld [smem:[%s4871_s0 + %s3527_s10]]   ;;  %s3530_s22 = smov 5  }
   0x4   :  { %s3603_s17 = sld [smem:[%s4871_s0 + %s3528_s14]]   ;;  %s3531_s26 = smov 6  }
   0x5   :  { %s3608_s21 = sld [smem:[%s4871_s0 + %s3529_s18]]   ;;  %s3532_s30 = smov 7  }
   0x6   :  { %s3613_s25 = sld [smem:[%s4871_s0 + %s3530_s22]]   ;;  %s3533_s4 = smov 8  }
   0x7   :  { %s3618_s29 = sld [smem:[%s4871_s0 + %s3531_s26]]   ;;  %s3534_s10 = smov 9  }
   0x8   :  { %s3623_s3 = sld [smem:[%s4871_s0 + %s3532_s30]]   ;;  %s3535_s15 = smov 10  }
   0x9   :  { %s3628_s8 = sld [smem:[%s4871_s0 + %s3533_s4]]   ;;  %s3536_s20 = smov 11  }
   0xa   :  { %s3633_s14 = sld [smem:[%s4871_s0 + %s3534_s10]]   ;;  %s3537_s26 = smov 12  }
   0xb   :  { %s3638_s19 = sld [smem:[%s4871_s0 + %s3535_s15]]   ;;  %s3538_s1 = smov 13  }
   0xc   :  { %s3643_s24 = sld [smem:[%s4871_s0 + %s3536_s20]]   ;;  %s3539_s7 = smov 14  }
   0xd   :  { %s3648_s30 = sld [smem:[%s4871_s0 + %s3537_s26]]   ;;  %s3540_s15 = smov 15  }
   0xe   :  { %s3653_s6 = sld [smem:[%s4871_s0 + %s3538_s1]]   ;;  %s3541_s22 = smov 16  }
   0xf   :  { %s3658_s12 = sld [smem:[%s4871_s0 + %s3539_s7]]   ;;  %s3542_s28 = smov 17  }
  0x10   :  { %s3663_s20 = sld [smem:[%s4871_s0 + %s3540_s15]]   ;;  %s3543_s7 = smov 18  }
  0x11   :  { %4875 = sst [smem:[#allocation12_spill]] %s3638_s19  ;;  %s3544_s15 = smov 19  }
  0x12   :  { %s3668_s27 = sld [smem:[%s4871_s0 + %s3541_s22]]   ;;  %s3545_s22 = smov 20  }
  0x13   :  { %4876 = sst [smem:[#allocation13_spill]] %s3648_s30 }
  0x14   :  { %s3673_s4 = sld [smem:[%s4871_s0 + %s3542_s28]]   ;;  %s3546_s28 = smov 21  }
  0x15   :  { %4877 = sst [smem:[#allocation14_spill]] %s3658_s12 }
  0x16   :  { %4878 = sst [smem:[#allocation15_spill]] %s3663_s20 }
  0x17   :  { %s3678_s12 = sld [smem:[%s4871_s0 + %s3543_s7]]   ;;  %s3547_s7 = smov 22  }
  0x18   :  { %4879 = sst [smem:[#allocation16_spill]] %s3668_s27 }
  0x19   :  { %s3683_s19 = sld [smem:[%s4871_s0 + %s3544_s15]]   ;;  %s3548_s15 = smov 23  }
  0x1a   :  { %s3688_s27 = sld [smem:[%s4871_s0 + %s3545_s22]]   ;;  %s3549_s22 = smov 24  }
  0x1b   :  { %s3693_s20 = sld [smem:[%s4871_s0 + %s3546_s28]]   ;;  %s3550_s28 = smov 25  }
  0x1c   :  { %s3698_s30 = sld [smem:[%s4871_s0 + %s3547_s7]]   ;;  %s3551_s7 = smov 26  }
  0x1f   :  { %4880 = sst [smem:[#allocation17_spill]] %s3683_s19 }
  0x20   :  { %4881 = sst [smem:[#allocation18_spill]] %s3688_s27 }
  0x21   :  { %4882 = sst [smem:[#allocation19_spill]] %s3693_s20 }
  0x22   :  { %4883 = sst [smem:[#allocation20_spill]] %s3698_s30 }
  0x23   :  { %s3703_s19 = sld [smem:[%s4871_s0 + %s3548_s15]]   ;;  %s3552_s15 = smov 27  }
  0x24   :  { %s3708_s27 = sld [smem:[%s4871_s0 + %s3549_s22]]   ;;  %s3553_s22 = smov 28  }
  0x25   :  { %s3713_s20 = sld [smem:[%s4871_s0 + %s3550_s28]]   ;;  %s3554_s28 = smov 29  }
  0x26   :  { %s3718_s30 = sld [smem:[%s4871_s0 + %s3551_s7]]   ;;  %s3555_s7 = smov 30  }
  0x29   :  { %4884 = sst [smem:[#allocation21_spill]] %s3703_s19 }
  0x2a   :  { %4885 = sst [smem:[#allocation22_spill]] %s3708_s27 }
  0x2b   :  { %4886 = sst [smem:[#allocation23_spill]] %s3713_s20 }
  0x2c   :  { %4887 = sst [smem:[#allocation24_spill]] %s3718_s30 }
  0x2d   :  { %s3723_s19 = sld [smem:[%s4871_s0 + %s3552_s15]]   ;;  %s3556_s15 = smov 31  }
  0x2e   :  { %s3728_s27 = sld [smem:[%s4871_s0 + %s3553_s22]]   ;;  %s3557_s22 = smov 32  }
  0x2f   :  { %s3733_s20 = sld [smem:[%s4871_s0 + %s3554_s28]]   ;;  %s3558_s28 = smov 33  }
  0x30   :  { %s3738_s30 = sld [smem:[%s4871_s0 + %s3555_s7]]   ;;  %s3559_s7 = smov 34  }
  0x33   :  { %4888 = sst [smem:[#allocation25_spill]] %s3723_s19 }
  0x34   :  { %4889 = sst [smem:[#allocation26_spill]] %s3728_s27 }
  0x35   :  { %4890 = sst [smem:[#allocation27_spill]] %s3733_s20 }
  0x36   :  { %4891 = sst [smem:[#allocation28_spill]] %s3738_s30 }
  0x37   :  { %s3743_s19 = sld [smem:[%s4871_s0 + %s3556_s15]]  }
  0x38   :  { %s3748_s27 = sld [smem:[%s4871_s0 + %s3557_s22]]  }
  0x39   :  { %s3753_s20 = sld [smem:[%s4871_s0 + %s3558_s28]]  }
  0x3a   :  { %s3758_s30 = sld [smem:[%s4871_s0 + %s3559_s7]]  }
  0x3b   :  { %75 = vsyncpa [#allocation3], 0 }
  0x3c   :  { %76 = vsyncpa [#allocation5], 0  ;;  %v136_v0 = vld [vmem:[%s3588_s5 + $0x8] sm:$0xff]  ;;  %v135_v1 = vld [vmem:[%s3588_s5] sm:$0xff]  ;;  %v3560_v2 = vmov 2   ;;  %v3561_v3 = vmov 1  }
  0x3d   :  { %3112 = vset.pattern.permute.xlu0 %v3560_v2  ;;  %3108 = vset.pattern.permute.xlu1 %v3561_v3  ;;  %v139_v4 = vld [vmem:[%s3588_s5 + $0x20] sm:$0xff]  ;;  %v142_v5 = vld [vmem:[%s3588_s5 + $0x38] sm:$0xff]  ;;  %v144_v7 = vld [vmem:[%s3588_s5 + $0x48] sm:$0xff]  ;;  %v3562_v8 = vmov 0  }
  0x3e   :  { %357 = vperm.xlu0 %3112, %v136_v0   ;;  %253 = vperm.xlu1 %3108, %v135_v1   ;;  %v138_v6 = vld [vmem:[%s3588_s5 + $0x18] sm:$0xff] }
  0x42   :  { %369 = vperm.xlu0 %3112, %v139_v4   ;;  %257 = vperm.xlu1 %3108, %v136_v0  }
  0x46   :  { %381 = vperm.xlu0 %3112, %v142_v5   ;;  %3109 = vset.pattern.permute.xlu1 %v3562_v8 }
  0x47   :  { %169 = vperm.xlu1 %3109, %v138_v6  }
  0x4a   :  { %389 = vperm.xlu0 %3112, %v144_v7  }
  0x4b   :  { %77 = vsyncpa [#allocation8], 0  ;;  %3110 = vset.pattern.permute.xlu1 %v3561_v3  ;;  %v137_v9 = vld [vmem:[%s3588_s5 + $0x10] sm:$0xff]  ;;  %v140_v10 = vld [vmem:[%s3588_s5 + $0x28] sm:$0xff]  ;;  %vm628_vm0 = vcmask 1043456   ;;  %v232_v23 = vlaneseq  ;;  %vm603_vm1 = vcmask 64512  }
  0x4c   :  { %265 = vperm.xlu1 %3110, %v138_v6   ;;  %v145_v11 = vld [vmem:[%s3588_s5 + $0x50] sm:$0xff]  ;;  %v147_v12 = vld [vmem:[%s3588_s5 + $0x60] sm:$0xff]  ;;  %v148_v14 = vld [vmem:[%s3588_s5 + $0x68] sm:$0xff]  ;;  %vm864_vm2 = vcmask 130048   ;;  %vm3564_vm3 = vmmov 0   ;;  %vm2138_vm4 = vcmask 257024  }
  0x4d   :  { %v141_v13 = vld [vmem:[%s3588_s5 + $0x30] sm:$0xff]  ;;  %v143_v15 = vld [vmem:[%s3588_s5 + $0x40] sm:$0xff]  ;;  %v150_v17 = vld [vmem:[%s3588_s5 + $0x78] sm:$0xff]  ;;  %v3800_v26 = vshrl.u32 %v232_v23, 7  ;;  %vm1274_vm5 = vcmask 261120   ;;  %s4892_s0 = sld [smem:[#allocation13_spill]] }
  0x4e   :  { %3123 = vset.pattern.permute.xlu0 %v3562_v8  ;;  %v149_v16 = vld [vmem:[%s3588_s5 + $0x70] sm:$0xff]  ;;  %v146_v18 = vld [vmem:[%s3588_s5 + $0x58] sm:$0xff]  ;;  %v595_v19 = vld [vmem:[%s3603_s17] sm:$0xf]  ;;  %s3565_s5 = smov 120   ;;  %s4894_s17 = sld [smem:[#allocation19_spill]] }
  0x4f   :  { %154 = vperm.xlu0 %3123, %v135_v1   ;;  %3053 = vmatprep.subr.msk.bf16.mxu0 %vm628_vm0, %v595_v19  ;;  %v630_v20 = vsel %vm628_vm0, %v595_v19, 0  ;;  %v318_v29 = vsub.s32 1, %v3800_v26  ;;  %v151_v30 = vld [vmem:[%s3593_s9] sm:$0x7]  ;;  %v418_v31 = vsub.s32 2, %v3800_v26  ;;  %v234_v32 = vsub.s32 0, %v3800_v26 }
  0x50   :  { %3111 = vset.pattern.permute.xlu1 %v3560_v2  ;;  %2938 = vmatpush3.bf16.msra.mxu0 %v630_v20  ;;  %v3820_v45 = vld [vmem:[%s3598_s13] ss:$0 sm:$0xff]  ;;  %s3566_s9 = smov 112   ;;  %s4893_s13 = sld [smem:[#allocation18_spill]]  ;;  %vm2077_vm6 = vcmask 72768   ;;  %vm2406_vm7 = vcmask 517120  }
  0x51   :  { %353 = vperm.xlu1 %3111, %v135_v1   ;;  %v3810_v34 = vrot.slane %v151_v30, %v318_v29  ;;  %v3812_v36 = vrot.slane %v151_v30, %v418_v31  ;;  %v3814_v37 = vrot.slane %v151_v30, %v234_v32  ;;  %vm2450_vm8 = vcmask 523264   ;;  %s3569_s15 = smov [#allocation4]   ;;  %s3570_s18 = smov [#allocation2]  }
  0x52   :  { %vm2520_vm9 = vcmask 60416   ;;  %vm2544_vm10 = vcmask 64516   ;;  %s2575_s16 = sshll.u32 %s3569_s15, 4  ;;  %s2563_s22 = sshll.u32 %s3570_s18, 4  ;;  %s2576_s16 = int_to_ptr.vmem [resolvable:$true] %s2575_s16  ;;  %s2564_s22 = int_to_ptr.vmem [resolvable:$true] %s2563_s22 }
  0x53   :  { %159 = vperm.xlu0 %3123, %v136_v0   ;;  %s3440_s23 = scalar_lea.vmem %s2576_s16, 512  ;;  %p3445_p1 = scmp.lt.s32.totalorder %s2576_s16, %s2576_s16 }
  0x54   :  { %p3441_p0 = scmp.ne.s32.totalorder %s2576_s16, %s3440_s23  ;;  %p3446_p2 = scmp.lt.s32.totalorder %s3440_s23, %s3440_s23 }
  0x55   :  { %361 = vperm.xlu1 %3111, %v137_v9  }
  0x56   :  { %p3447_p3 = por %p3446_p2, %p3445_p1 }
  0x57   :  { %164 = vperm.xlu0 %3123, %v137_v9  }
  0x58   :  { %p3448_p4 = pnand %p3447_p3, %p3441_p0 }
  0x59   :  { %365 = vperm.xlu1 %3111, %v138_v6  }
  0x5b   :  { %174 = vperm.xlu0 %3123, %v139_v4  }
  0x5d   :  { %3113 = vset.pattern.permute.xlu1 %v3562_v8 }
  0x5e   :  { %179 = vperm.xlu1 %3113, %v140_v10  }
  0x5f   :  { %199 = vperm.xlu0 %3123, %v144_v7  }
  0x62   :  { %3114 = vset.pattern.permute.xlu1 %v3561_v3 }
  0x63   :  { %204 = vperm.xlu0 %3123, %v145_v11   ;;  %269 = vperm.xlu1 %3114, %v139_v4  }
  0x67   :  { %214 = vperm.xlu0 %3123, %v147_v12   ;;  %3115 = vset.pattern.permute.xlu1 %v3562_v8 }
  0x68   :  { %184 = vperm.xlu1 %3115, %v141_v13  }
  0x6b   :  { %3124 = vset.pattern.permute.xlu0 %v3561_v3 }
  0x6c   :  { %261 = vperm.xlu0 %3124, %v137_v9   ;;  %189 = vperm.xlu1 %3115, %v142_v5  }
  0x70   :  { %273 = vperm.xlu0 %3124, %v140_v10   ;;  %3116 = vset.pattern.permute.xlu1 %v3561_v3 }
  0x71   :  { %281 = vperm.xlu1 %3116, %v142_v5  }
  0x74   :  { %277 = vperm.xlu0 %3124, %v141_v13  }
  0x75   :  { %3117 = vset.pattern.permute.xlu1 %v3560_v2 }
  0x76   :  { %373 = vperm.xlu1 %3117, %v140_v10  }
  0x78   :  { %293 = vperm.xlu0 %3124, %v145_v11  }
  0x7a   :  { %377 = vperm.xlu1 %3117, %v141_v13  }
  0x7c   :  { %305 = vperm.xlu0 %3124, %v148_v14  }
  0x7e   :  { %3118 = vset.pattern.permute.xlu1 %v3562_v8 }
  0x7f   :  { %194 = vperm.xlu1 %3118, %v143_v15  }
  0x80   :  { %309 = vperm.xlu0 %3124, %v149_v16  }
  0x83   :  { %3119 = vset.pattern.permute.xlu1 %v3561_v3 }
  0x84   :  { %285 = vperm.xlu1 %3119, %v143_v15   ;;  %3129 = vset.pattern.permute.xlu0 %v3560_v2 }
  0x85   :  { %401 = vperm.xlu0 %3129, %v147_v12  }
  0x88   :  { %289 = vperm.xlu1 %3119, %v144_v7  }
  0x89   :  { %413 = vperm.xlu0 %3129, %v150_v17  }
  0x8c   :  { %3120 = vset.pattern.permute.xlu1 %v3562_v8 }
  0x8d   :  { %209 = vperm.xlu1 %3120, %v146_v18  }
  0x91   :  { %3121 = vset.pattern.permute.xlu1 %v3561_v3 }
  0x92   :  { %297 = vperm.xlu1 %3121, %v146_v18  }
  0x96   :  { %3122 = vset.pattern.permute.xlu1 %v3560_v2 }
  0x97   :  { %385 = vperm.xlu1 %3122, %v143_v15  }
  0x9b   :  { %393 = vperm.xlu1 %3122, %v145_v11  }
  0x9f   :  { %397 = vperm.xlu1 %3122, %v146_v18  }
  0xa3   :  { %3125 = vset.pattern.permute.xlu1 %v3562_v8 }
  0xa4   :  { %219 = vperm.xlu1 %3125, %v148_v14  }
  0xa8   :  { %3126 = vset.pattern.permute.xlu1 %v3561_v3 }
  0xa9   :  { %301 = vperm.xlu1 %3126, %v147_v12  }
  0xad   :  { %3127 = vset.pattern.permute.xlu1 %v3562_v8 }
  0xae   :  { %224 = vperm.xlu1 %3127, %v149_v16  }
  0xb2   :  { %229 = vperm.xlu1 %3127, %v150_v17  }
  0xb6   :  { %3128 = vset.pattern.permute.xlu1 %v3561_v3 }
  0xb7   :  { %313 = vperm.xlu1 %3128, %v150_v17  }
  0xb9   :  { %v254_v21 = vpop.permute.xlu1 %253  ;;  %v358_v22 = vpop.permute.xlu0 %357 }
  0xba   :  { %v320_v39 = vmul.f32 %v3810_v34, %v254_v21  ;;  %v421_v46 = vmul.f32 %v3812_v36, %v358_v22 }
  0xbb   :  { %3130 = vset.pattern.permute.xlu1 %v3560_v2 }
  0xbc   :  { %405 = vperm.xlu1 %3130, %v148_v14  }
  0xbd   :  { %v258_v24 = vpop.permute.xlu1 %257  ;;  %v370_v25 = vpop.permute.xlu0 %369 }
  0xbe   :  { %v321_v47 = vmul.f32 %v3810_v34, %v258_v24  ;;  %v424_v11 = vmul.f32 %v3812_v36, %v370_v25 }
  0xc0   :  { %409 = vperm.xlu1 %3130, %v149_v16  }
  0xc1   :  { %v3802_v27 = vpop.permute.xlu0 %381 }
  0xc2   :  { %v170_v28 = vpop.permute.xlu1 %169  ;;  %v427_v30 = vmul.f32 %v3812_v36, %v3802_v27 }
  0xc3   :  { %v239_v63 = vmul.f32 %v3814_v37, %v170_v28 }
  0xc5   :  { %v3808_v33 = vpop.permute.xlu0 %389 }
  0xc7   :  { %v266_v35 = vpop.permute.xlu1 %265 }
  0xc8   :  { %v323_v61 = vmul.f32 %v3810_v34, %v266_v35 }
  0xca   :  { %v155_v38 = vpop.permute.xlu0 %154  ;;  %v339_v1 = vadd.f32 %v323_v61, %v239_v63 }
  0xcb   :  { %v236_v40 = vmul.f32 %v3814_v37, %v155_v38 }
  0xcc   :  { %v354_v41 = vpop.permute.xlu1 %353 }
  0xcd   :  { %v336_v42 = vadd.f32 %v320_v39, %v236_v40  ;;  %v420_v43 = vmul.f32 %v3812_v36, %v354_v41 }
  0xce   :  { %v160_v44 = vpop.permute.xlu0 %159 }
  0xcf   :  { %v436_v48 = vadd.f32 %v420_v43, %v336_v42  ;;  %v237_v49 = vmul.f32 %v3814_v37, %v160_v44 }
  0xd0   :  { %v362_v50 = vpop.permute.xlu1 %361 }
  0xd1   :  { %v337_v51 = vadd.f32 %v321_v47, %v237_v49  ;;  %v3826_v52 = vadd.f32 %v3820_v45, %v436_v48  ;;  %v422_v22 = vmul.f32 %v3812_v36, %v362_v50 }
  0xd2   :  { %v165_v53 = vpop.permute.xlu0 %164 }
  0xd3   :  { %v437_v54 = vadd.f32 %v421_v46, %v337_v51  ;;  %v2668_v55 = vmul.f32 -1.442695, %v3826_v52  ;;  %v238_v15 = vmul.f32 %v3814_v37, %v165_v53 }
  0xd4   :  { %v366_v56 = vpop.permute.xlu1 %365 }
  0xd5   :  { %v3830_v57 = vadd.f32 %v3820_v45, %v437_v54  ;;  %3144 = vpow2.f32 %v2668_v55  ;;  %v423_v0 = vmul.f32 %v3812_v36, %v366_v56 }
  0xd6   :  { %v175_v58 = vpop.permute.xlu0 %174 }
  0xd7   :  { %v2669_v59 = vmul.f32 -1.442695, %v3830_v57  ;;  %v439_v4 = vadd.f32 %v423_v0, %v339_v1  ;;  %v240_v5 = vmul.f32 %v3814_v37, %v175_v58 }
  0xd9   :  { %v180_v60 = vpop.permute.xlu1 %179  ;;  %3146 = vpow2.f32 %v2669_v59  ;;  %v3846_v12 = vadd.f32 %v3820_v45, %v439_v4 }
  0xda   :  { %v3834_v62 = vpop.permute.xlu0 %199  ;;  %v241_v41 = vmul.f32 %v3814_v37, %v180_v60 }
  0xdb   :  { %v2671_v19 = vmul.f32 -1.442695, %v3846_v12 }
  0xde   :  { %v270_v2 = vpop.permute.xlu1 %269  ;;  %v3838_v3 = vpop.permute.xlu0 %204 }
  0xdf   :  { %v324_v6 = vmul.f32 %v3810_v34, %v270_v2 }
  0xe1   :  { %v340_v13 = vadd.f32 %v324_v6, %v240_v5 }
  0xe2   :  { %v3145_v7 = vpop.eup %3144  ;;  %v3842_v8 = vpop.permute.xlu0 %214 }
  0xe3   :  { %v185_v9 = vpop.permute.xlu1 %184  ;;  %v523_v10 = vadd.f32 1.0, %v3145_v7  ;;  %v440_v20 = vadd.f32 %v424_v11, %v340_v13 }
  0xe4   :  { %v242_v51 = vmul.f32 %v3814_v37, %v185_v9 }
  0xe5   :  { %3148 = vrcp.f32 %v523_v10  ;;  %v3853_v25 = vadd.f32 %v3820_v45, %v440_v20  ;;  %v429_v20 = vmul.f32 %v3812_v36, %v3808_v33 }
  0xe6   :  { %v3147_v14 = vpop.eup %3146 }
  0xe7   :  { %v262_v16 = vpop.permute.xlu0 %261  ;;  %v190_v17 = vpop.permute.xlu1 %189  ;;  %v524_v18 = vadd.f32 1.0, %v3147_v14  ;;  %v2672_v42 = vmul.f32 -1.442695, %v3853_v25  ;;  %v245_v14 = vmul.f32 %v3814_v37, %v3834_v62 }
  0xe8   :  { %v322_v21 = vmul.f32 %v3810_v34, %v262_v16  ;;  %v243_v31 = vmul.f32 %v3814_v37, %v190_v17 }
  0xe9   :  { %3150 = vrcp.f32 %v524_v18 }
  0xea   :  { %v338_v23 = vadd.f32 %v322_v21, %v238_v15  ;;  %3152 = vpow2.f32 %v2671_v19 }
  0xeb   :  { %v274_v24 = vpop.permute.xlu0 %273 }
  0xec   :  { %v438_v28 = vadd.f32 %v422_v22, %v338_v23  ;;  %v282_v29 = vpop.permute.xlu1 %281  ;;  %v325_v38 = vmul.f32 %v3810_v34, %v274_v24 }
  0xed   :  { %v327_v32 = vmul.f32 %v3810_v34, %v282_v29 }
  0xee   :  { %v3860_v35 = vadd.f32 %v3820_v45, %v438_v28  ;;  %v341_v27 = vadd.f32 %v325_v38, %v241_v41 }
  0xef   :  { %v343_v39 = vadd.f32 %v327_v32, %v243_v31  ;;  %v278_v40 = vpop.permute.xlu0 %277 }
  0xf0   :  { %v2670_v43 = vmul.f32 -1.442695, %v3860_v35  ;;  %v326_v47 = vmul.f32 %v3810_v34, %v278_v40 }
  0xf1   :  { %v443_v44 = vadd.f32 %v427_v30, %v343_v39  ;;  %v374_v46 = vpop.permute.xlu1 %373 }
  0xf2   :  { %3154 = vpow2.f32 %v2670_v43  ;;  %v425_v48 = vmul.f32 %v3812_v36, %v374_v46  ;;  %v3149_v50 = vpop.eup %3148  ;;  %v342_v56 = vadd.f32 %v326_v47, %v242_v51  ;;  %v246_v46 = vmul.f32 %v3814_v37, %v3838_v3 }
  0xf3   :  { %v3869_v49 = vadd.f32 %v3820_v45, %v443_v44  ;;  %3156 = vpow2.f32 %v2672_v42  ;;  %v571_v61 = vmul.f32 %v3149_v50, %v3826_v52  ;;  %v294_v39 = vpop.permute.xlu0 %293 }
  0xf4   :  { %v441_v53 = vadd.f32 %v425_v48, %v341_v27  ;;  %v330_v47 = vmul.f32 %v3810_v34, %v294_v39 }
  0xf5   :  { %v2675_v54 = vmul.f32 -1.442695, %v3869_v49  ;;  %v378_v55 = vpop.permute.xlu1 %377 }
  0xf6   :  { %v3874_v58 = vadd.f32 %v3820_v45, %v441_v53  ;;  %v426_v59 = vmul.f32 %v3812_v36, %v378_v55  ;;  %v3151_v60 = vpop.eup %3150  ;;  %v346_v53 = vadd.f32 %v330_v47, %v246_v46 }
  0xf7   :  { %3158 = vpow2.f32 %v2675_v54  ;;  %v572_v1 = vmul.f32 %v3151_v60, %v3830_v57  ;;  %v3153_v2 = vpop.eup %3152 }
  0xf8   :  { %v2673_v63 = vmul.f32 -1.442695, %v3874_v58  ;;  %v442_v0 = vadd.f32 %v426_v59, %v342_v56  ;;  %v526_v7 = vadd.f32 1.0, %v3153_v2 }
  0xf9   :  { %v587_v6 = vpack.c.bf16 %v572_v1, %v571_v61 }
  0xfa   :  { %3160 = vpow2.f32 %v2673_v63  ;;  %v3881_v4 = vadd.f32 %v3820_v45, %v442_v0  ;;  %v195_v5 = vpop.permute.xlu1 %194 }
  0xfb   :  { %2939 = vmatprep.mubr.msk.bf16.mxu0 %vm603_vm1, %v587_v6  ;;  %v244_v41 = vmul.f32 %v3814_v37, %v195_v5 }
  0xfc   :  { %v2674_v9 = vmul.f32 -1.442695, %v3881_v4 }
  0xfe   :  { %3162 = vpow2.f32 %v2674_v9 }
  0xff   :  { %v3155_v52 = vpop.eup %3154  ;;  %v286_v10 = vpop.permute.xlu1 %285  ;;  %3164 = vrcp.f32 %v526_v7 }
 0x100   :  { %v525_v11 = vadd.f32 1.0, %v3155_v52  ;;  %v3157_v13 = vpop.eup %3156  ;;  %v328_v38 = vmul.f32 %v3810_v34, %v286_v10  ;;  %v306_v10 = vpop.permute.xlu0 %305 }
 0x101   :  { %v527_v15 = vadd.f32 1.0, %v3157_v13 }
 0x102   :  { %3166 = vrcp.f32 %v525_v11  ;;  %v344_v27 = vadd.f32 %v328_v38, %v244_v41 }
 0x103   :  { %v290_v57 = vpop.permute.xlu1 %289  ;;  %3168 = vrcp.f32 %v527_v15 }
 0x104   :  { %v329_v16 = vmul.f32 %v3810_v34, %v290_v57  ;;  %v3159_v17 = vpop.eup %3158 }
 0x105   :  { %v530_v21 = vadd.f32 1.0, %v3159_v17 }
 0x106   :  { %v345_v18 = vadd.f32 %v329_v16, %v245_v14 }
 0x107   :  { %v3161_v19 = vpop.eup %3160 }
 0x108   :  { %v528_v22 = vadd.f32 1.0, %v3161_v19  ;;  %v210_v23 = vpop.permute.xlu1 %209  ;;  %v445_v24 = vadd.f32 %v429_v20, %v345_v18 }
 0x109   :  { %v247_v61 = vmul.f32 %v3814_v37, %v210_v23 }
 0x10a   :  { %3170 = vrcp.f32 %v528_v22  ;;  %v3891_v62 = vadd.f32 %v3820_v45, %v445_v24 }
 0x10b   :  { %v3163_v28 = vpop.eup %3162  ;;  %3172 = vrcp.f32 %v530_v21  ;;  %v248_v21 = vmul.f32 %v3814_v37, %v3842_v8 }
 0x10c   :  { %v529_v29 = vadd.f32 1.0, %v3163_v28  ;;  %v3165_v30 = vpop.eup %3164  ;;  %v2677_v42 = vmul.f32 -1.442695, %v3891_v62 }
 0x10d   :  { %v298_v31 = vpop.permute.xlu1 %297  ;;  %v574_v33 = vmul.f32 %v3165_v30, %v3846_v12 }
 0x10e   :  { %3174 = vrcp.f32 %v529_v29  ;;  %v331_v54 = vmul.f32 %v3810_v34, %v298_v31 }
 0x10f   :  { %v3167_v32 = vpop.eup %3166  ;;  %3176 = vpow2.f32 %v2677_v42 }
 0x110   :  { %v573_v40 = vmul.f32 %v3167_v32, %v3860_v35  ;;  %v3169_v12 = vpop.eup %3168  ;;  %v347_v6 = vadd.f32 %v331_v54, %v247_v61 }
 0x111   :  { %v575_v59 = vmul.f32 %v3169_v12, %v3853_v25 }
 0x112   :  { %v386_v43 = vpop.permute.xlu1 %385  ;;  %v588_v44 = vpack.c.bf16 %v574_v33, %v573_v40 }
 0x113   :  { %v428_v48 = vmul.f32 %v3812_v36, %v386_v43 }
 0x114   :  { %2940 = vmatmul.mubr.msk.bf16.vlgmr.msra.gmra.mxu0 %vm603_vm1, %v588_v44  ;;  %v333_v44 = vmul.f32 %v3810_v34, %v306_v10 }
 0x115   :  { %v444_v50 = vadd.f32 %v428_v48, %v344_v27 }
 0x116   :  { %v394_v35 = vpop.permute.xlu1 %393 }
 0x117   :  { %v3171_v51 = vpop.eup %3170  ;;  %v3905_v55 = vadd.f32 %v3820_v45, %v444_v50  ;;  %v430_v3 = vmul.f32 %v3812_v36, %v394_v35 }
 0x118   :  { %v576_v56 = vmul.f32 %v3171_v51, %v3874_v58  ;;  %v3173_v60 = vpop.eup %3172 }
 0x119   :  { %v2676_v63 = vmul.f32 -1.442695, %v3905_v55  ;;  %v446_v0 = vadd.f32 %v430_v3, %v346_v53  ;;  %v578_v25 = vmul.f32 %v3173_v60, %v3869_v49 }
 0x11a   :  { %v398_v1 = vpop.permute.xlu1 %397  ;;  %v589_v2 = vpack.c.bf16 %v576_v56, %v575_v59 }
 0x11b   :  { %v3175_v5 = vpop.eup %3174  ;;  %3178 = vpow2.f32 %v2676_v63  ;;  %v3913_v7 = vadd.f32 %v3820_v45, %v446_v0  ;;  %v431_v9 = vmul.f32 %v3812_v36, %v398_v1 }
 0x11c   :  { %v577_v58 = vmul.f32 %v3175_v5, %v3881_v4  ;;  %2943 = vmatprep.mubr.msk.bf16.mxu0 %vm603_vm1, %v589_v2  ;;  %v3177_v16 = vpop.eup %3176  ;;  %v310_v4 = vpop.permute.xlu0 %309 }
 0x11d   :  { %v2678_v52 = vmul.f32 -1.442695, %v3913_v7  ;;  %v447_v11 = vadd.f32 %v431_v9, %v347_v6  ;;  %v532_v18 = vadd.f32 1.0, %v3177_v16  ;;  %v334_v60 = vmul.f32 %v3810_v34, %v310_v4 }
 0x11e   :  { %v590_v13 = vpack.c.bf16 %v578_v25, %v577_v58 }
 0x11f   :  { %v3921_v57 = vadd.f32 %v3820_v45, %v447_v11  ;;  %v220_v14 = vpop.permute.xlu1 %219  ;;  %3180 = vpow2.f32 %v2678_v52 }
 0x120   :  { %2944 = vmatmul.mubr.msk.bf16.gmra.mxu0 %vm603_vm1, %v590_v13  ;;  %v402_v19 = vpop.permute.xlu0 %401  ;;  %v249_v46 = vmul.f32 %v3814_v37, %v220_v14 }
 0x121   :  { %v2679_v15 = vmul.f32 -1.442695, %v3921_v57  ;;  %v432_v28 = vmul.f32 %v3812_v36, %v402_v19 }
 0x122   :  { %v349_v51 = vadd.f32 %v333_v44, %v249_v46 }
 0x123   :  { %3182 = vpow2.f32 %v2679_v15 }
 0x124   :  { %v302_v17 = vpop.permute.xlu1 %301  ;;  %3184 = vrcp.f32 %v532_v18  ;;  %v414_v33 = vpop.permute.xlu0 %413 }
 0x125   :  { %v332_v49 = vmul.f32 %v3810_v34, %v302_v17  ;;  %v435_v43 = vmul.f32 %v3812_v36, %v414_v33 }
 0x127   :  { %v348_v24 = vadd.f32 %v332_v49, %v248_v21 }
 0x128   :  { %v3179_v20 = vpop.eup %3178 }
 0x129   :  { %v531_v22 = vadd.f32 1.0, %v3179_v20  ;;  %v225_v23 = vpop.permute.xlu1 %224  ;;  %v448_v32 = vadd.f32 %v432_v28, %v348_v24  ;;  %v3131_v24 = vld [vmem:[%s3613_s25] sm:$0xff]   ;;  %s4896_s25 = sld [smem:[#allocation15_spill]] }
 0x12a   :  { %v250_v53 = vmul.f32 %v3814_v37, %v225_v23  ;;  %2955 = vmatprep.subr.bf16.mxu1 %v3131_v24  ;;  %v3952_v28 = vld [vmem:[%s3608_s21] ss:$0 sm:$0xff]  ;;  %s4895_s21 = sld [smem:[#allocation17_spill]] }
 0x12b   :  { %3186 = vrcp.f32 %v531_v22  ;;  %v471_v40 = vadd.f32 %v3820_v45, %v448_v32  ;;  %2956 = vmatpush3.bf16.msra.mxu1 %v3131_v24 }
 0x12c   :  { %v3181_v29 = vpop.eup %3180  ;;  %v350_v2 = vadd.f32 %v334_v60, %v250_v53 }
 0x12d   :  { %v230_v30 = vpop.permute.xlu1 %229  ;;  %v533_v31 = vadd.f32 1.0, %v3181_v29  ;;  %v2680_v48 = vmul.f32 -1.442695, %v471_v40 }
 0x12e   :  { %v251_v8 = vmul.f32 %v3814_v37, %v230_v30 }
 0x12f   :  { %3188 = vrcp.f32 %v533_v31 }
 0x130   :  { %v3183_v38 = vpop.eup %3182 }
 0x131   :  { %v534_v39 = vadd.f32 1.0, %v3183_v38  ;;  %v3185_v47 = vpop.eup %3184 }
 0x132   :  { %v314_v41 = vpop.permute.xlu1 %313  ;;  %v580_v59 = vmul.f32 %v3185_v47, %v3891_v62 }
 0x133   :  { %3190 = vrcp.f32 %v534_v39  ;;  %v335_v42 = vmul.f32 %v3810_v34, %v314_v41 }
 0x134   :  { %3192 = vpow2.f32 %v2680_v48 }
 0x135   :  { %v351_v27 = vadd.f32 %v335_v42, %v251_v8 }
 0x137   :  { %v451_v12 = vadd.f32 %v435_v43, %v351_v27  ;;  %v406_v50 = vpop.permute.xlu1 %405 }
 0x138   :  { %v3187_v35 = vpop.eup %3186  ;;  %v433_v54 = vmul.f32 %v3812_v36, %v406_v50 }
 0x139   :  { %v579_v3 = vmul.f32 %v3187_v35, %v3905_v55  ;;  %v474_v56 = vadd.f32 %v3820_v45, %v451_v12 }
 0x13a   :  { %v449_v61 = vadd.f32 %v433_v54, %v349_v51 }
 0x13b   :  { %v2683_v63 = vmul.f32 -1.442695, %v474_v56  ;;  %v410_v0 = vpop.permute.xlu1 %409  ;;  %v591_v1 = vpack.c.bf16 %v580_v59, %v579_v3 }
 0x13c   :  { %v472_v5 = vadd.f32 %v3820_v45, %v449_v61  ;;  %v434_v37 = vmul.f32 %v3812_v36, %v410_v0  ;;  %v3189_v6 = vpop.eup %3188 }
 0x13d   :  { %2947 = vmatprep.mubr.msk.bf16.mxu0 %vm603_vm1, %v591_v1  ;;  %3194 = vpow2.f32 %v2683_v63  ;;  %v581_v62 = vmul.f32 %v3189_v6, %v3913_v7 }
 0x13e   :  { %v2681_v55 = vmul.f32 -1.442695, %v472_v5  ;;  %v450_v9 = vadd.f32 %v434_v37, %v350_v2 }
 0x140   :  { %v3191_v58 = vpop.eup %3190  ;;  %3196 = vpow2.f32 %v2681_v55  ;;  %v473_v34 = vadd.f32 %v3820_v45, %v450_v9 }
 0x141   :  { %v582_v25 = vmul.f32 %v3191_v58, %v3921_v57  ;;  %v3193_v36 = vpop.eup %3192 }
 0x142   :  { %v2682_v52 = vmul.f32 -1.442695, %v473_v34  ;;  %v535_v11 = vadd.f32 1.0, %v3193_v36 }
 0x143   :  { %v592_v10 = vpack.c.bf16 %v582_v25, %v581_v62 }
 0x144   :  { %3198 = vpow2.f32 %v2682_v52 }
 0x145   :  { %2948 = vmatmul.mubr.msk.bf16.gmra.mxu0 %vm603_vm1, %v592_v10  ;;  %3200 = vrcp.f32 %v535_v11 }
 0x14a   :  { %v3195_v13 = vpop.eup %3194 }
 0x14b   :  { %v538_v15 = vadd.f32 1.0, %v3195_v13 }
 0x14d   :  { %v3197_v14 = vpop.eup %3196 }
 0x14e   :  { %v536_v16 = vadd.f32 1.0, %v3197_v14 }
 0x150   :  { %3202 = vrcp.f32 %v536_v16 }
 0x151   :  { %v3199_v4 = vpop.eup %3198  ;;  %3204 = vrcp.f32 %v538_v15 }
 0x152   :  { %v537_v45 = vadd.f32 1.0, %v3199_v4  ;;  %v3201_v7 = vpop.eup %3200 }
 0x153   :  { %v583_v17 = vmul.f32 %v3201_v7, %v471_v40 }
 0x154   :  { %3206 = vrcp.f32 %v537_v45 }
 0x15d   :  { %v3203_v57 = vpop.eup %3202 }
 0x15e   :  { %v584_v18 = vmul.f32 %v3203_v57, %v472_v5  ;;  %v3205_v49 = vpop.eup %3204 }
 0x15f   :  { %v586_v21 = vmul.f32 %v3205_v49, %v474_v56 }
 0x160   :  { %v593_v19 = vpack.c.bf16 %v584_v18, %v583_v17 }
 0x161   :  { %v3207_v20 = vpop.eup %3206 }
 0x162   :  { %v585_v22 = vmul.f32 %v3207_v20, %v473_v34  ;;  %2951 = vmatprep.mubr.msk.bf16.mxu0 %vm603_vm1, %v593_v19 }
 0x164   :  { %v594_v23 = vpack.c.bf16 %v586_v21, %v585_v22 }
 0x166   :  { %2952 = vmatmul.mubr.msk.bf16.gmra.mxu0 %vm603_vm1, %v594_v23 }
 0x1d4   :  { %v2941_v29 = vpop.f32.mrf.mxu0 }
 0x1d5   :  { %v675_v30 = vadd.f32 %v2941_v29, %v3952_v28 }
 0x1d6   :  { %v666_v31 = vpop.f32.mrf.mxu0 }
 0x1d7   :  { %v2695_v32 = vmul.f32 -1.442695, %v675_v30  ;;  %v667_v38 = vadd.f32 %v3952_v28, %v666_v31 }
 0x1d8   :  { %v2942_v33 = vpop.f32.mrf.mxu0 }
 0x1d9   :  { %v2693_v39 = vmul.f32 -1.442695, %v667_v38  ;;  %v678_v40 = vadd.f32 %v2942_v33, %v3952_v28  ;;  %3208 = vpow2.f32 %v2695_v32 }
 0x1da   :  { %v669_v41 = vpop.f32.mrf.mxu0 }
 0x1db   :  { %3210 = vpow2.f32 %v2693_v39  ;;  %v2696_v8 = vmul.f32 -1.442695, %v678_v40  ;;  %v670_v42 = vadd.f32 %v3952_v28, %v669_v41 }
 0x1dd   :  { %3212 = vpow2.f32 %v2696_v8  ;;  %v2694_v43 = vmul.f32 -1.442695, %v670_v42 }
 0x1df   :  { %3214 = vpow2.f32 %v2694_v43 }
 0x1e0   :  { %v2945_v44 = vpop.f32.mrf.mxu0 }
 0x1e1   :  { %v3959_v46 = vadd.f32 %v2945_v44, %v3952_v28 }
 0x1e2   :  { %v682_v27 = vpop.f32.mrf.mxu0 }
 0x1e3   :  { %v2699_v47 = vmul.f32 -1.442695, %v3959_v46  ;;  %v683_v48 = vadd.f32 %v3952_v28, %v682_v27 }
 0x1e4   :  { %v2946_v12 = vpop.f32.mrf.mxu0 }
 0x1e5   :  { %v2697_v50 = vmul.f32 -1.442695, %v683_v48  ;;  %v694_v35 = vadd.f32 %v2946_v12, %v3952_v28  ;;  %3216 = vpow2.f32 %v2699_v47 }
 0x1e6   :  { %v685_v51 = vpop.f32.mrf.mxu0  ;;  %v3209_v53 = vpop.eup %3208 }
 0x1e7   :  { %3218 = vpow2.f32 %v2697_v50  ;;  %v2700_v54 = vmul.f32 -1.442695, %v694_v35  ;;  %v686_v3 = vadd.f32 %v3952_v28, %v685_v51  ;;  %v779_v63 = vadd.f32 1.0, %v3209_v53 }
 0x1e8   :  { %v3211_v56 = vpop.eup %3210 }
 0x1e9   :  { %v777_v59 = vadd.f32 1.0, %v3211_v56  ;;  %v2698_v60 = vmul.f32 -1.442695, %v686_v3  ;;  %3220 = vpow2.f32 %v2700_v54 }
 0x1ea   :  { %v3213_v61 = vpop.eup %3212 }
 0x1eb   :  { %3222 = vrcp.f32 %v777_v59  ;;  %v780_v0 = vadd.f32 1.0, %v3213_v61 }
 0x1ec   :  { %v3215_v1 = vpop.eup %3214  ;;  %3224 = vpow2.f32 %v2698_v60 }
 0x1ed   :  { %3226 = vrcp.f32 %v780_v0  ;;  %v778_v2 = vadd.f32 1.0, %v3215_v1 }
 0x1ee   :  { %3228 = vrcp.f32 %v779_v63 }
 0x1ef   :  { %3230 = vrcp.f32 %v778_v2 }
 0x1f2   :  { %v3217_v5 = vpop.eup %3216 }
 0x1f3   :  { %v783_v9 = vadd.f32 1.0, %v3217_v5 }
 0x1f4   :  { %v3219_v37 = vpop.eup %3218 }
 0x1f5   :  { %v781_v6 = vadd.f32 1.0, %v3219_v37 }
 0x1f6   :  { %v3221_v55 = vpop.eup %3220 }
 0x1f7   :  { %v784_v34 = vadd.f32 1.0, %v3221_v55  ;;  %3232 = vrcp.f32 %v781_v6 }
 0x1f8   :  { %v3223_v58 = vpop.eup %3222 }
 0x1f9   :  { %v3225_v62 = vpop.eup %3224  ;;  %3234 = vrcp.f32 %v784_v34  ;;  %v825_v13 = vmul.f32 %v3223_v58, %v667_v38 }
 0x1fa   :  { %v3227_v25 = vpop.eup %3226  ;;  %v782_v52 = vadd.f32 1.0, %v3225_v62  ;;  %3236 = vrcp.f32 %v783_v9 }
 0x1fb   :  { %v3229_v10 = vpop.eup %3228  ;;  %v828_v11 = vmul.f32 %v3227_v25, %v678_v40 }
 0x1fc   :  { %v3231_v36 = vpop.eup %3230  ;;  %3238 = vrcp.f32 %v782_v52  ;;  %v827_v15 = vmul.f32 %v3229_v10, %v675_v30 }
 0x1fd   :  { %v826_v14 = vmul.f32 %v3231_v36, %v670_v42 }
 0x1fe   :  { %v842_v4 = vpack.c.bf16 %v828_v11, %v827_v15 }
 0x1ff   :  { %v841_v16 = vpack.c.bf16 %v826_v14, %v825_v13 }
 0x201   :  { %2957 = vmatprep.mubr.msk.bf16.mxu1 %vm864_vm2, %v841_v16 }
 0x202   :  { %2958 = vmatmul.mubr.msk.bf16.vlgmr.msra.gmra.mxu1 %vm864_vm2, %v842_v4 }
 0x204   :  { %v3233_v7 = vpop.eup %3232 }
 0x205   :  { %v2949_v45 = vpop.f32.mrf.mxu0  ;;  %v829_v24 = vmul.f32 %v3233_v7, %v683_v48 }
 0x206   :  { %v707_v57 = vadd.f32 %v2949_v45, %v3952_v28  ;;  %v3235_v17 = vpop.eup %3234 }
 0x207   :  { %v698_v18 = vpop.f32.mrf.mxu0  ;;  %v3237_v49 = vpop.eup %3236  ;;  %v832_v22 = vmul.f32 %v3235_v17, %v694_v35 }
 0x208   :  { %v2703_v19 = vmul.f32 -1.442695, %v707_v57  ;;  %v699_v20 = vadd.f32 %v3952_v28, %v698_v18  ;;  %v831_v31 = vmul.f32 %v3237_v49, %v3959_v46 }
 0x209   :  { %v3239_v21 = vpop.eup %3238  ;;  %v2950_v23 = vpop.f32.mrf.mxu0 }
 0x20a   :  { %v830_v29 = vmul.f32 %v3239_v21, %v686_v3  ;;  %3240 = vpow2.f32 %v2703_v19  ;;  %v2701_v30 = vmul.f32 -1.442695, %v699_v20  ;;  %v710_v32 = vadd.f32 %v2950_v23, %v3952_v28 }
 0x20b   :  { %v701_v38 = vpop.f32.mrf.mxu0  ;;  %v844_v40 = vpack.c.bf16 %v832_v22, %v831_v31 }
 0x20c   :  { %v843_v33 = vpack.c.bf16 %v830_v29, %v829_v24  ;;  %3242 = vpow2.f32 %v2701_v30  ;;  %v702_v39 = vadd.f32 %v3952_v28, %v701_v38  ;;  %v2704_v41 = vmul.f32 -1.442695, %v710_v32 }
 0x20e   :  { %v2702_v8 = vmul.f32 -1.442695, %v702_v39  ;;  %2961 = vmatprep.mubr.msk.bf16.mxu1 %vm864_vm2, %v843_v33  ;;  %3244 = vpow2.f32 %v2704_v41 }
 0x20f   :  { %2962 = vmatmul.mubr.msk.bf16.gmra.mxu1 %vm864_vm2, %v844_v40 }
 0x210   :  { %3246 = vpow2.f32 %v2702_v8 }
 0x217   :  { %v3241_v42 = vpop.eup %3240 }
 0x218   :  { %v787_v44 = vadd.f32 1.0, %v3241_v42 }
 0x219   :  { %v3243_v43 = vpop.eup %3242 }
 0x21a   :  { %v785_v46 = vadd.f32 1.0, %v3243_v43  ;;  %3248 = vrcp.f32 %v787_v44 }
 0x21b   :  { %v3245_v27 = vpop.eup %3244 }
 0x21c   :  { %v788_v48 = vadd.f32 1.0, %v3245_v27  ;;  %3250 = vrcp.f32 %v785_v46 }
 0x21d   :  { %v3247_v47 = vpop.eup %3246 }
 0x21e   :  { %v786_v12 = vadd.f32 1.0, %v3247_v47  ;;  %3252 = vrcp.f32 %v788_v48 }
 0x220   :  { %3254 = vrcp.f32 %v786_v12 }
 0x226   :  { %v2953_v50 = vpop.f32.mrf.mxu0 }
 0x227   :  { %v723_v35 = vadd.f32 %v2953_v50, %v3952_v28  ;;  %v3249_v3 = vpop.eup %3248 }
 0x228   :  { %v714_v51 = vpop.f32.mrf.mxu0  ;;  %v835_v9 = vmul.f32 %v3249_v3, %v707_v57 }
 0x229   :  { %v2707_v53 = vmul.f32 -1.442695, %v723_v35  ;;  %v715_v54 = vadd.f32 %v3952_v28, %v714_v51  ;;  %v3251_v59 = vpop.eup %3250 }
 0x22a   :  { %v2954_v56 = vpop.f32.mrf.mxu0  ;;  %v833_v6 = vmul.f32 %v3251_v59, %v699_v20  ;;  %v3983_v20 = vld [vmem:[%s3618_s29] ss:$0 sm:$0xff]  ;;  %s4897_s29 = sld [smem:[#allocation12_spill]] }
 0x22b   :  { %v2705_v60 = vmul.f32 -1.442695, %v715_v54  ;;  %v726_v61 = vadd.f32 %v2954_v56, %v3952_v28  ;;  %v3253_v63 = vpop.eup %3252  ;;  %3256 = vpow2.f32 %v2707_v53 }
 0x22c   :  { %v717_v0 = vpop.f32.mrf.mxu0  ;;  %v836_v2 = vmul.f32 %v3253_v63, %v710_v32  ;;  %v3132_v63 = vld [vmem:[%s3673_s4] sm:$0xff]  }
 0x22d   :  { %v3255_v1 = vpop.eup %3254  ;;  %3258 = vpow2.f32 %v2705_v60  ;;  %v2708_v5 = vmul.f32 -1.442695, %v726_v61  ;;  %v718_v37 = vadd.f32 %v3952_v28, %v717_v0  ;;  %2989 = vmatprep.mubr.bf16.mxu0 %v3132_v63  ;;  %v3134_v0 = vld [vmem:[%s3623_s3] sm:$0xff]   ;;  %s4898_s3 = sld [smem:[#allocation14_spill]] }
 0x22e   :  { %v834_v55 = vmul.f32 %v3255_v1, %v702_v39  ;;  %v846_v62 = vpack.c.bf16 %v836_v2, %v835_v9  ;;  %2993 = vmatprep.subr.bf16.mxu1 %v3134_v0 }
 0x22f   :  { %3260 = vpow2.f32 %v2708_v5  ;;  %v2706_v58 = vmul.f32 -1.442695, %v718_v37  ;;  %2994 = vmatpush3.bf16.msra.mxu1 %v3134_v0 }
 0x230   :  { %v845_v34 = vpack.c.bf16 %v834_v55, %v833_v6 }
 0x231   :  { %3262 = vpow2.f32 %v2706_v58 }
 0x232   :  { %2965 = vmatprep.mubr.msk.bf16.mxu1 %vm864_vm2, %v845_v34 }
 0x233   :  { %2966 = vmatmul.mubr.msk.bf16.gmra.mxu1 %vm864_vm2, %v846_v62 }
 0x238   :  { %v3257_v25 = vpop.eup %3256 }
 0x239   :  { %v791_v11 = vadd.f32 1.0, %v3257_v25 }
 0x23a   :  { %v3259_v52 = vpop.eup %3258 }
 0x23b   :  { %v789_v10 = vadd.f32 1.0, %v3259_v52 }
 0x23c   :  { %v3261_v36 = vpop.eup %3260 }
 0x23d   :  { %v792_v13 = vadd.f32 1.0, %v3261_v36  ;;  %3264 = vrcp.f32 %v789_v10 }
 0x23e   :  { %v3263_v14 = vpop.eup %3262 }
 0x23f   :  { %3266 = vrcp.f32 %v792_v13  ;;  %v790_v28 = vadd.f32 1.0, %v3263_v14 }
 0x240   :  { %3268 = vrcp.f32 %v791_v11 }
 0x241   :  { %3270 = vrcp.f32 %v790_v28 }
 0x24a   :  { %v3265_v15 = vpop.eup %3264 }
 0x24b   :  { %v837_v57 = vmul.f32 %v3265_v15, %v715_v54 }
 0x24c   :  { %v3267_v16 = vpop.eup %3266 }
 0x24d   :  { %v3269_v4 = vpop.eup %3268  ;;  %v840_v7 = vmul.f32 %v3267_v16, %v726_v61 }
 0x24e   :  { %v3271_v45 = vpop.eup %3270  ;;  %v839_v18 = vmul.f32 %v3269_v4, %v723_v35 }
 0x24f   :  { %v838_v17 = vmul.f32 %v3271_v45, %v718_v37 }
 0x250   :  { %v848_v19 = vpack.c.bf16 %v840_v7, %v839_v18 }
 0x251   :  { %v847_v49 = vpack.c.bf16 %v838_v17, %v837_v57 }
 0x253   :  { %2969 = vmatprep.mubr.msk.bf16.mxu1 %vm864_vm2, %v847_v49 }
 0x254   :  { %2970 = vmatmul.mubr.msk.bf16.gmra.mxu1 %vm864_vm2, %v848_v19 }
 0x2c2   :  { %v2959_v21 = vpop.f32.mrf.mxu1 }
 0x2c3   :  { %v932_v22 = vadd.f32 %v2959_v21, %v3983_v20 }
 0x2c4   :  { %v923_v23 = vpop.f32.mrf.mxu1 }
 0x2c5   :  { %v2721_v24 = vmul.f32 -1.442695, %v932_v22  ;;  %v924_v29 = vadd.f32 %v3983_v20, %v923_v23 }
 0x2c6   :  { %v2960_v30 = vpop.f32.mrf.mxu1 }
 0x2c7   :  { %3272 = vpow2.f32 %v2721_v24  ;;  %v2719_v31 = vmul.f32 -1.442695, %v924_v29  ;;  %v935_v32 = vadd.f32 %v2960_v30, %v3983_v20 }
 0x2c8   :  { %v926_v38 = vpop.f32.mrf.mxu1 }
 0x2c9   :  { %3274 = vpow2.f32 %v2719_v31  ;;  %v2722_v33 = vmul.f32 -1.442695, %v935_v32  ;;  %v927_v39 = vadd.f32 %v3983_v20, %v926_v38 }
 0x2cb   :  { %3276 = vpow2.f32 %v2722_v33  ;;  %v2720_v40 = vmul.f32 -1.442695, %v927_v39 }
 0x2cd   :  { %3278 = vpow2.f32 %v2720_v40 }
 0x2cf   :  { %v2963_v41 = vpop.f32.mrf.mxu1 }
 0x2d0   :  { %v948_v8 = vadd.f32 %v2963_v41, %v3983_v20 }
 0x2d1   :  { %v939_v42 = vpop.f32.mrf.mxu1 }
 0x2d2   :  { %v2725_v43 = vmul.f32 -1.442695, %v948_v8  ;;  %v940_v44 = vadd.f32 %v3983_v20, %v939_v42 }
 0x2d3   :  { %v2964_v46 = vpop.f32.mrf.mxu1 }
 0x2d4   :  { %v3273_v27 = vpop.eup %3272  ;;  %3280 = vpow2.f32 %v2725_v43  ;;  %v2723_v47 = vmul.f32 -1.442695, %v940_v44  ;;  %v951_v48 = vadd.f32 %v2964_v46, %v3983_v20 }
 0x2d5   :  { %v1036_v12 = vadd.f32 1.0, %v3273_v27  ;;  %v942_v50 = vpop.f32.mrf.mxu1 }
 0x2d6   :  { %v3275_v35 = vpop.eup %3274  ;;  %3282 = vpow2.f32 %v2723_v47  ;;  %v2726_v51 = vmul.f32 -1.442695, %v951_v48  ;;  %v943_v53 = vadd.f32 %v3983_v20, %v942_v50 }
 0x2d7   :  { %3284 = vrcp.f32 %v1036_v12  ;;  %v1034_v54 = vadd.f32 1.0, %v3275_v35 }
 0x2d8   :  { %v3277_v3 = vpop.eup %3276  ;;  %3286 = vpow2.f32 %v2726_v51  ;;  %v2724_v56 = vmul.f32 -1.442695, %v943_v53 }
 0x2d9   :  { %3288 = vrcp.f32 %v1034_v54  ;;  %v1037_v59 = vadd.f32 1.0, %v3277_v3 }
 0x2da   :  { %v3279_v60 = vpop.eup %3278  ;;  %3290 = vpow2.f32 %v2724_v56 }
 0x2db   :  { %3292 = vrcp.f32 %v1037_v59  ;;  %v1035_v61 = vadd.f32 1.0, %v3279_v60 }
 0x2dd   :  { %3294 = vrcp.f32 %v1035_v61 }
 0x2e1   :  { %v3281_v1 = vpop.eup %3280 }
 0x2e2   :  { %v1040_v2 = vadd.f32 1.0, %v3281_v1 }
 0x2e3   :  { %v3283_v5 = vpop.eup %3282 }
 0x2e4   :  { %v3285_v37 = vpop.eup %3284  ;;  %3296 = vrcp.f32 %v1040_v2  ;;  %v1038_v6 = vadd.f32 1.0, %v3283_v5 }
 0x2e5   :  { %v3287_v55 = vpop.eup %3286  ;;  %v1084_v9 = vmul.f32 %v3285_v37, %v932_v22 }
 0x2e6   :  { %v3289_v58 = vpop.eup %3288  ;;  %3298 = vrcp.f32 %v1038_v6  ;;  %v1041_v34 = vadd.f32 1.0, %v3287_v55 }
 0x2e7   :  { %v3291_v62 = vpop.eup %3290  ;;  %1395 = vst.msk [vmem:[#allocation2 + $0x10] sm:$0xff] %vm864_vm2, %v1084_v9  ;;  %v1082_v25 = vmul.f32 %v3289_v58, %v924_v29 }
 0x2e8   :  { %v3293_v52 = vpop.eup %3292  ;;  %3300 = vrcp.f32 %v1041_v34  ;;  %v1039_v10 = vadd.f32 1.0, %v3291_v62 }
 0x2e9   :  { %1393 = vst.msk [vmem:[#allocation2] sm:$0xff] %vm864_vm2, %v1082_v25  ;;  %v1085_v36 = vmul.f32 %v3293_v52, %v935_v32 }
 0x2ea   :  { %v3295_v11 = vpop.eup %3294  ;;  %3302 = vrcp.f32 %v1039_v10 }
 0x2eb   :  { %1396 = vst.msk [vmem:[#allocation2 + $0x18] sm:$0xff] %vm864_vm2, %v1085_v36  ;;  %v1083_v13 = vmul.f32 %v3295_v11, %v927_v39  ;;  %v3998_v14 = vpack.c.bf16 %v1085_v36, %v1084_v9 }
 0x2ed   :  { %1394 = vst.msk [vmem:[#allocation2 + $0x8] sm:$0xff] %vm864_vm2, %v1083_v13  ;;  %v4001_v28 = vpack.c.bf16 %v1083_v13, %v1082_v25 }
 0x2f1   :  { %v3297_v15 = vpop.eup %3296 }
 0x2f2   :  { %v1088_v16 = vmul.f32 %v3297_v15, %v948_v8 }
 0x2f3   :  { %v3299_v4 = vpop.eup %3298  ;;  %v2967_v45 = vpop.f32.mrf.mxu1 }
 0x2f4   :  { %1399 = vst.msk [vmem:[#allocation2 + $0x30] sm:$0xff] %vm864_vm2, %v1088_v16  ;;  %v1086_v7 = vmul.f32 %v3299_v4, %v940_v44  ;;  %v964_v57 = vadd.f32 %v2967_v45, %v3983_v20 }
 0x2f5   :  { %v3301_v17 = vpop.eup %3300  ;;  %v955_v18 = vpop.f32.mrf.mxu1 }
 0x2f6   :  { %1397 = vst.msk [vmem:[#allocation2 + $0x20] sm:$0xff] %vm864_vm2, %v1086_v7  ;;  %v1089_v49 = vmul.f32 %v3301_v17, %v951_v48  ;;  %v2729_v19 = vmul.f32 -1.442695, %v964_v57  ;;  %v956_v21 = vadd.f32 %v3983_v20, %v955_v18 }
 0x2f7   :  { %v3303_v22 = vpop.eup %3302  ;;  %v2968_v23 = vpop.f32.mrf.mxu1 }
 0x2f8   :  { %1400 = vst.msk [vmem:[#allocation2 + $0x38] sm:$0xff] %vm864_vm2, %v1089_v49  ;;  %v1087_v24 = vmul.f32 %v3303_v22, %v943_v53  ;;  %3304 = vpow2.f32 %v2729_v19  ;;  %v2727_v29 = vmul.f32 -1.442695, %v956_v21  ;;  %v967_v30 = vadd.f32 %v2968_v23, %v3983_v20  ;;  %v3133_v19 = vld [vmem:[%s3673_s4 + $0x8] sm:$0xff]   ;;  %s4905_s4 = sld [smem:[#allocation23_spill]] }
 0x2f9   :  { %v958_v31 = vpop.f32.mrf.mxu1  ;;  %v4009_v32 = vpack.c.bf16 %v1089_v49, %v1088_v16 }
 0x2fa   :  { %1398 = vst.msk [vmem:[#allocation2 + $0x28] sm:$0xff] %vm864_vm2, %v1087_v24  ;;  %3306 = vpow2.f32 %v2727_v29  ;;  %v2730_v38 = vmul.f32 -1.442695, %v967_v30  ;;  %v959_v33 = vadd.f32 %v3983_v20, %v958_v31  ;;  %v4013_v39 = vpack.c.bf16 %v1087_v24, %v1086_v7 }
 0x2fb   :  { %v3563_v31 = vmov 0.0  }
 0x2fc   :  { %3308 = vpow2.f32 %v2730_v38  ;;  %v2728_v40 = vmul.f32 -1.442695, %v959_v33  ;;  %3007 = vmatprep.subr.bf16.mxu1 %v3563_v31  ;;  %v3136_v38 = vld [vmem:[%s3633_s14 + $0x8] sm:$0xff]  }
 0x2fe   :  { %3310 = vpow2.f32 %v2728_v40 }
 0x305   :  { %v3305_v41 = vpop.eup %3304 }
 0x306   :  { %v1044_v8 = vadd.f32 1.0, %v3305_v41 }
 0x307   :  { %v3307_v42 = vpop.eup %3306 }
 0x308   :  { %3312 = vrcp.f32 %v1044_v8  ;;  %v1042_v43 = vadd.f32 1.0, %v3307_v42 }
 0x309   :  { %v3309_v44 = vpop.eup %3308 }
 0x30a   :  { %3314 = vrcp.f32 %v1042_v43  ;;  %v1045_v46 = vadd.f32 1.0, %v3309_v44 }
 0x30b   :  { %v3311_v27 = vpop.eup %3310 }
 0x30c   :  { %3316 = vrcp.f32 %v1045_v46  ;;  %v1043_v47 = vadd.f32 1.0, %v3311_v27 }
 0x30e   :  { %3318 = vrcp.f32 %v1043_v47 }
 0x314   :  { %v2971_v48 = vpop.f32.mrf.mxu1 }
 0x315   :  { %v3313_v12 = vpop.eup %3312  ;;  %v980_v50 = vadd.f32 %v2971_v48, %v3983_v20 }
 0x316   :  { %v1092_v35 = vmul.f32 %v3313_v12, %v964_v57  ;;  %v971_v51 = vpop.f32.mrf.mxu1 }
 0x317   :  { %v3315_v53 = vpop.eup %3314  ;;  %v2733_v54 = vmul.f32 -1.442695, %v980_v50  ;;  %v972_v3 = vadd.f32 %v3983_v20, %v971_v51 }
 0x318   :  { %1403 = vst.msk [vmem:[#allocation2 + $0x50] sm:$0xff] %vm864_vm2, %v1092_v35  ;;  %v1090_v56 = vmul.f32 %v3315_v53, %v956_v21  ;;  %v2972_v59 = vpop.f32.mrf.mxu1 }
 0x319   :  { %v3317_v60 = vpop.eup %3316  ;;  %3320 = vpow2.f32 %v2733_v54  ;;  %v2731_v61 = vmul.f32 -1.442695, %v972_v3  ;;  %v983_v63 = vadd.f32 %v2972_v59, %v3983_v20 }
 0x31a   :  { %1401 = vst.msk [vmem:[#allocation2 + $0x40] sm:$0xff] %vm864_vm2, %v1090_v56  ;;  %v1093_v0 = vmul.f32 %v3317_v60, %v967_v30  ;;  %v974_v1 = vpop.f32.mrf.mxu1 }
 0x31b   :  { %v3319_v2 = vpop.eup %3318  ;;  %3322 = vpow2.f32 %v2731_v61  ;;  %v2734_v5 = vmul.f32 -1.442695, %v983_v63  ;;  %v975_v37 = vadd.f32 %v3983_v20, %v974_v1 }
 0x31c   :  { %1404 = vst.msk [vmem:[#allocation2 + $0x58] sm:$0xff] %vm864_vm2, %v1093_v0  ;;  %v1091_v6 = vmul.f32 %v3319_v2, %v959_v33  ;;  %v4034_v18 = vpack.c.bf16 %v1093_v0, %v1092_v35  ;;  %v2737_v33 = vld [vmem:[%s3628_s8] ss:$0 sm:$0xff]  ;;  %s4899_s8 = sld [smem:[#allocation21_spill]] }
 0x31d   :  { %3324 = vpow2.f32 %v2734_v5  ;;  %v2732_v55 = vmul.f32 -1.442695, %v975_v37 }
 0x31e   :  { %1402 = vst.msk [vmem:[#allocation2 + $0x48] sm:$0xff] %vm864_vm2, %v1091_v6  ;;  %v4038_v49 = vpack.c.bf16 %v1091_v6, %v1090_v56 }
 0x31f   :  { %3326 = vpow2.f32 %v2732_v55 }
 0x326   :  { %v3321_v9 = vpop.eup %3320 }
 0x327   :  { %v1048_v58 = vadd.f32 1.0, %v3321_v9 }
 0x328   :  { %v3323_v34 = vpop.eup %3322 }
 0x329   :  { %3328 = vrcp.f32 %v1048_v58  ;;  %v1046_v62 = vadd.f32 1.0, %v3323_v34 }
 0x32a   :  { %v3325_v25 = vpop.eup %3324 }
 0x32b   :  { %3330 = vrcp.f32 %v1046_v62  ;;  %v1049_v52 = vadd.f32 1.0, %v3325_v25  ;;  %v3135_v25 = vld [vmem:[%s3643_s24] sm:$0xff]   ;;  %s4902_s24 = sld [smem:[#allocation16_spill]] }
 0x32c   :  { %v3327_v10 = vpop.eup %3326 }
 0x32d   :  { %3332 = vrcp.f32 %v1049_v52  ;;  %v1047_v36 = vadd.f32 1.0, %v3327_v10  ;;  %v1273_v10 = vld [vmem:[%s3678_s12] sm:$0xf]  ;;  %s4904_s12 = sld [smem:[#allocation25_spill]] }
 0x32f   :  { %3334 = vrcp.f32 %v1047_v36 }
 0x336   :  { %v3329_v20 = vpop.eup %3328 }
 0x337   :  { %v1096_v11 = vmul.f32 %v3329_v20, %v980_v50 }
 0x338   :  { %v3331_v13 = vpop.eup %3330 }
 0x339   :  { %1407 = vst.msk [vmem:[#allocation2 + $0x70] sm:$0xff] %vm864_vm2, %v1096_v11  ;;  %v1094_v15 = vmul.f32 %v3331_v13, %v972_v3 }
 0x33a   :  { %v3333_v16 = vpop.eup %3332 }
 0x33b   :  { %1405 = vst.msk [vmem:[#allocation2 + $0x60] sm:$0xff] %vm864_vm2, %v1094_v15  ;;  %v1097_v4 = vmul.f32 %v3333_v16, %v983_v63 }
 0x33c   :  { %v3335_v45 = vpop.eup %3334 }
 0x33d   :  { %1408 = vst.msk [vmem:[#allocation2 + $0x78] sm:$0xff] %vm864_vm2, %v1097_v4  ;;  %v1095_v7 = vmul.f32 %v3335_v45, %v975_v37  ;;  %v4026_v57 = vpack.c.bf16 %v1097_v4, %v1096_v11 }
 0x33f   :  { %1406 = vst.msk [vmem:[#allocation2 + $0x68] sm:$0xff] %vm864_vm2, %v1095_v7  ;;  %2973 = vmatprep.subr.bf16.mxu0 %v4026_v57  ;;  %v4030_v17 = vpack.c.bf16 %v1095_v7, %v1094_v15  ;;  %v4097_v15 = vld [vmem:[%s4892_s0] ss:$0 sm:$0xff] }
 0x340   :  { %2974 = vmatpush3.bf16.msra.mxu0 %v4026_v57 }
 0x341   :  { %2975 = vmatprep.subr.bf16.mxu0 %v4030_v17 }
 0x344   :  { %2976 = vmatpush3.bf16.msra.mxu0 %v4030_v17 }
 0x345   :  { %2977 = vmatprep.subr.bf16.mxu0 %v4034_v18 }
 0x348   :  { %2978 = vmatpush3.bf16.msra.mxu0 %v4034_v18 }
 0x349   :  { %2979 = vmatprep.subr.bf16.mxu0 %v4038_v49 }
 0x34c   :  { %2980 = vmatpush3.bf16.msra.mxu0 %v4038_v49 }
 0x34d   :  { %2981 = vmatprep.subr.bf16.mxu0 %v4009_v32 }
 0x350   :  { %2982 = vmatpush3.bf16.msra.mxu0 %v4009_v32 }
 0x351   :  { %2983 = vmatprep.subr.bf16.mxu0 %v4013_v39 }
 0x354   :  { %2984 = vmatpush3.bf16.msra.mxu0 %v4013_v39 }
 0x355   :  { %2985 = vmatprep.subr.bf16.mxu0 %v3998_v14 }
 0x358   :  { %2986 = vmatpush3.bf16.msra.mxu0 %v3998_v14 }
 0x359   :  { %2987 = vmatprep.subr.bf16.mxu0 %v4001_v28 }
 0x35c   :  { %2988 = vmatpush3.bf16.msra.mxu0 %v4001_v28 }
 0x35d   :  { %2999 = vmatprep.subr.bf16.mxu0 %v3563_v31 }
 0x35f   :  { %2990 = vmatmul.mubr.bf16.vlgmr.msra.gmra.mxu0 %v3133_v19 }
 0x360   :  { %3003 = vmatprep.mubr.msk.bf16.mxu0 %vm3564_vm3, %v3563_v31 }
 0x41f   :  { %v2991_v21 = vpop.f32.mrf.mxu0 }
 0x421   :  { %v1156_v22 = vpop.f32.mrf.mxu0 }
 0x423   :  { %v2992_v23 = vpop.f32.mrf.mxu0 }
 0x424   :  { %v1172_v30 = vpack.c.bf16 %v2992_v23, %v2991_v21 }
 0x425   :  { %v1159_v24 = vpop.f32.mrf.mxu0 }
 0x426   :  { %v1171_v29 = vpack.c.bf16 %v1159_v24, %v1156_v22 }
 0x428   :  { %2995 = vmatprep.mubr.msk.bf16.mxu1 %vm864_vm2, %v1171_v29 }
 0x429   :  { %2996 = vmatmul.mubr.msk.bf16.vlgmr.msra.gmra.mxu1 %vm864_vm2, %v1172_v30 }
 0x42a   :  { %3011 = vmatprep.mubr.msk.bf16.mxu1 %vm3564_vm3, %v3563_v31  ;;  %3008 = vmatpush3.bf16.msra.mxu1 %v3136_v38 }
 0x42b   :  { %3009 = vmatprep.subr.bf16.mxu1 %v3563_v31 }
 0x4e9   :  { %v2997_v40 = vpop.f32.mrf.mxu1 }
 0x4ea   :  { %v1237_v41 = vadd.f32 %v2997_v40, %v2737_v33 }
 0x4eb   :  { %v1228_v8 = vpop.f32.mrf.mxu1 }
 0x4ec   :  { %v2743_v42 = vmul.f32 -1.442695, %v1237_v41  ;;  %v1229_v43 = vadd.f32 %v2737_v33, %v1228_v8 }
 0x4ed   :  { %v2998_v44 = vpop.f32.mrf.mxu1 }
 0x4ee   :  { %3336 = vpow2.f32 %v2743_v42  ;;  %v2741_v46 = vmul.f32 -1.442695, %v1229_v43  ;;  %v1240_v27 = vadd.f32 %v2998_v44, %v2737_v33 }
 0x4ef   :  { %v1231_v47 = vpop.f32.mrf.mxu1 }
 0x4f0   :  { %3338 = vpow2.f32 %v2741_v46  ;;  %v2744_v48 = vmul.f32 -1.442695, %v1240_v27  ;;  %v1232_v12 = vadd.f32 %v2737_v33, %v1231_v47 }
 0x4f2   :  { %3340 = vpow2.f32 %v2744_v48  ;;  %v2742_v50 = vmul.f32 -1.442695, %v1232_v12 }
 0x4f4   :  { %3342 = vpow2.f32 %v2742_v50 }
 0x4fb   :  { %v3337_v35 = vpop.eup %3336 }
 0x4fc   :  { %v1257_v51 = vadd.f32 1.0, %v3337_v35 }
 0x4fd   :  { %v3339_v53 = vpop.eup %3338 }
 0x4fe   :  { %3344 = vrcp.f32 %v1257_v51  ;;  %v1255_v54 = vadd.f32 1.0, %v3339_v53 }
 0x4ff   :  { %v3341_v3 = vpop.eup %3340 }
 0x500   :  { %3346 = vrcp.f32 %v1255_v54  ;;  %v1258_v56 = vadd.f32 1.0, %v3341_v3 }
 0x501   :  { %v3343_v59 = vpop.eup %3342 }
 0x502   :  { %3348 = vrcp.f32 %v1258_v56  ;;  %v1256_v60 = vadd.f32 1.0, %v3343_v59 }
 0x504   :  { %3350 = vrcp.f32 %v1256_v60 }
 0x50b   :  { %v3345_v61 = vpop.eup %3344 }
 0x50c   :  { %v1269_v63 = vmul.f32 %v3345_v61, %v1237_v41 }
 0x50d   :  { %v3347_v0 = vpop.eup %3346 }
 0x50e   :  { %v2132_v1 = vcombine.high %v1269_v63, %v1269_v63  ;;  %2143 = vst.msk [vmem:[#allocation4 + $0x10] sm:$0xf] %vm2138_vm4, %v1269_v63  ;;  %v1267_v2 = vmul.f32 %v3347_v0, %v1229_v43 }
 0x50f   :  { %v3349_v5 = vpop.eup %3348 }
 0x510   :  { %2144 = vst.msk [vmem:[#allocation4 + $0x14] sm:$0xf] %vm2138_vm4, %v2132_v1  ;;  %v2130_v37 = vcombine.high %v1267_v2, %v1267_v2  ;;  %2139 = vst.msk [vmem:[#allocation4] sm:$0xf] %vm2138_vm4, %v1267_v2  ;;  %v1270_v6 = vmul.f32 %v3349_v5, %v1240_v27 }
 0x511   :  { %v3351_v55 = vpop.eup %3350 }
 0x512   :  { %2140 = vst.msk [vmem:[#allocation4 + $0x4] sm:$0xf] %vm2138_vm4, %v2130_v37  ;;  %v1272_v9 = vpack.c.bf16 %v1270_v6, %v1269_v63  ;;  %v2133_v58 = vcombine.high %v1270_v6, %v1270_v6  ;;  %2145 = vst.msk [vmem:[#allocation4 + $0x18] sm:$0xf] %vm2138_vm4, %v1270_v6  ;;  %v1268_v34 = vmul.f32 %v3351_v55, %v1232_v12 }
 0x514   :  { %2146 = vst.msk [vmem:[#allocation4 + $0x1c] sm:$0xf] %vm2138_vm4, %v2133_v58  ;;  %v2131_v62 = vcombine.high %v1268_v34, %v1268_v34  ;;  %2141 = vst.msk [vmem:[#allocation4 + $0x8] sm:$0xf] %vm2138_vm4, %v1268_v34  ;;  %3000 = vmatpush3.bf16.msra.mxu0 %v1272_v9  ;;  %v1271_v52 = vpack.c.bf16 %v1268_v34, %v1267_v2 }
 0x515   :  { %3001 = vmatprep.subr.bf16.mxu0 %v3563_v31 }
 0x516   :  { %2142 = vst.msk [vmem:[#allocation4 + $0xc] sm:$0xf] %vm2138_vm4, %v2131_v62 }
 0x518   :  { %3002 = vmatpush3.bf16.msra.mxu0 %v1271_v52 }
 0x519   :  { %3015 = vmatprep.subr.bf16.mxu0 %v3135_v25 }
 0x51b   :  { %3004 = vmatmul.mubr.msk.bf16.vlgmr.msra.gmra.mxu0 %vm1274_vm5, %v1273_v10 }
 0x51c   :  { %3017 = vmatprep.mubr.msk.bf16.mxu0 %vm864_vm2, %v4001_v28  ;;  %3016 = vmatpush3.bf16.msra.mxu0 %v3135_v25  ;;  %v3138_v28 = vld [vmem:[%s3653_s6 + $0x8] sm:$0xff]  }
 0x523   :  { %3018 = vmatmul.mubr.msk.bf16.vlgmr.msra.gmra.mxu0 %vm864_vm2, %v3998_v14  ;;  %v3137_v14 = vld [vmem:[%s3633_s14] sm:$0xff]   ;;  %s4900_s14 = sld [smem:[#allocation22_spill]] }
 0x524   :  { %3021 = vmatprep.mubr.msk.bf16.mxu0 %vm864_vm2, %v4013_v39  ;;  %3010 = vmatpush3.bf16.msra.mxu1 %v3137_v14 }
 0x525   :  { %3033 = vmatprep.subr.bf16.mxu1 %v3138_v28 }
 0x52b   :  { %3022 = vmatmul.mubr.msk.bf16.gmra.mxu0 %vm864_vm2, %v4009_v32  ;;  %v3139_v32 = vld [vmem:[%s3653_s6] sm:$0xff]   ;;  %s4903_s6 = sld [smem:[#allocation24_spill]] }
 0x52c   :  { %3025 = vmatprep.mubr.msk.bf16.mxu0 %vm864_vm2, %v4038_v49 }
 0x533   :  { %3026 = vmatmul.mubr.msk.bf16.gmra.mxu0 %vm864_vm2, %v4034_v18 }
 0x534   :  { %3029 = vmatprep.mubr.msk.bf16.mxu0 %vm864_vm2, %v4030_v17 }
 0x53b   :  { %3030 = vmatmul.mubr.msk.bf16.gmra.mxu0 %vm864_vm2, %v4026_v57 }
 0x5db   :  { %v1312_v39 = vpop.f32.mrf.mxu0 }
 0x5dc   :  { %v1318_v36 = vpack.c.bf16 %v1312_v39, %v1312_v39 }
 0x5dd   :  { %v3005_v20 = vpop.f32.mrf.mxu0 }
 0x5de   :  { %3012 = vmatmul.mubr.msk.bf16.vlgmr.msra.gmra.mxu1 %vm1274_vm5, %v1318_v36 }
 0x5df   :  { %v1315_v11 = vpop.f32.mrf.mxu0  ;;  %3034 = vmatpush3.bf16.msra.mxu1 %v3138_v28  ;;  %3037 = vmatprep.mubr.msk.bf16.mxu1 %vm1274_vm5, %v1271_v52 }
 0x5e0   :  { %3035 = vmatprep.subr.bf16.mxu1 %v3139_v32 }
 0x5e1   :  { %v3006_v13 = vpop.f32.mrf.mxu0 }
 0x5e3   :  { %v3019_v16 = vpop.f32.mrf.mxu0  ;;  %3036 = vmatpush3.bf16.msra.mxu1 %v3139_v32 }
 0x5e4   :  { %v1491_v4 = vadd.f32 %v3019_v16, %v4097_v15  ;;  %3041 = vmatprep.subr.bf16.mxu1 %v3563_v31 }
 0x5e5   :  { %v1482_v45 = vpop.f32.mrf.mxu0 }
 0x5e6   :  { %v2763_v7 = vmul.f32 -1.442695, %v1491_v4  ;;  %1753 = vst.msk [vmem:[%s3743_s19 + $0x10] sm:$0xff] %vm603_vm1, %v1491_v4  ;;  %v1483_v57 = vadd.f32 %v4097_v15, %v1482_v45  ;;  %3038 = vmatmul.mubr.msk.bf16.vlgmr.msra.gmra.mxu1 %vm1274_vm5, %v1272_v9  ;;  %1779 = vrot.lane.b32.xlu1 %v1491_v4, %s3565_s5 }
 0x5e7   :  { %v3020_v17 = vpop.f32.mrf.mxu0  ;;  %3049 = vmatprep.mubr.msk.bf16.mxu1 %vm3564_vm3, %v3563_v31 }
 0x5e8   :  { %3352 = vpow2.f32 %v2763_v7  ;;  %v2761_v18 = vmul.f32 -1.442695, %v1483_v57  ;;  %1751 = vst.msk [vmem:[%s3743_s19] sm:$0xff] %vm603_vm1, %v1483_v57  ;;  %v1494_v49 = vadd.f32 %v3020_v17, %v4097_v15 }
 0x5e9   :  { %v1485_v19 = vpop.f32.mrf.mxu0 }
 0x5ea   :  { %3354 = vpow2.f32 %v2761_v18  ;;  %v2764_v21 = vmul.f32 -1.442695, %v1494_v49  ;;  %1754 = vst.msk [vmem:[%s3743_s19 + $0x18] sm:$0xff] %vm603_vm1, %v1494_v49  ;;  %v1486_v22 = vadd.f32 %v4097_v15, %v1485_v19  ;;  %1852 = vrot.lane.b32.xlu1 %v1491_v4, %s3566_s9  ;;  %1781 = vrot.lane.b32.xlu0 %v1494_v49, %s3565_s5 }
 0x5eb   :  { %v3023_v23 = vpop.f32.mrf.mxu0 }
 0x5ec   :  { %3356 = vpow2.f32 %v2764_v21  ;;  %v2762_v24 = vmul.f32 -1.442695, %v1486_v22  ;;  %1752 = vst.msk [vmem:[%s3743_s19 + $0x8] sm:$0xff] %vm603_vm1, %v1486_v22  ;;  %v1507_v29 = vadd.f32 %v3023_v23, %v4097_v15 }
 0x5ed   :  { %v1498_v30 = vpop.f32.mrf.mxu0 }
 0x5ee   :  { %3358 = vpow2.f32 %v2762_v24  ;;  %v2767_v38 = vmul.f32 -1.442695, %v1507_v29  ;;  %1757 = vst.msk [vmem:[%s3743_s19 + $0x30] sm:$0xff] %vm603_vm1, %v1507_v29  ;;  %v4122_v33 = vadd.f32 %v4097_v15, %v1498_v30  ;;  %1854 = vrot.lane.b32.xlu0 %v1494_v49, %s3566_s9  ;;  %1775 = vrot.lane.b32.xlu1 %v1483_v57, %s3565_s5 }
 0x5ef   :  { %v3024_v40 = vpop.f32.mrf.mxu0 }
 0x5f0   :  { %3360 = vpow2.f32 %v2767_v38  ;;  %v2765_v41 = vmul.f32 -1.442695, %v4122_v33  ;;  %1755 = vst.msk [vmem:[%s3743_s19 + $0x20] sm:$0xff] %vm603_vm1, %v4122_v33  ;;  %v1510_v8 = vadd.f32 %v3024_v40, %v4097_v15  ;;  %v1721_v38 = vld [vmem:[%s4895_s21 + $0x10] sm:$0xff] }
 0x5f1   :  { %v1501_v42 = vpop.f32.mrf.mxu0 }
 0x5f2   :  { %3362 = vpow2.f32 %v2765_v41  ;;  %v2768_v43 = vmul.f32 -1.442695, %v1510_v8  ;;  %1758 = vst.msk [vmem:[%s3743_s19 + $0x38] sm:$0xff] %vm603_vm1, %v1510_v8  ;;  %v4134_v44 = vadd.f32 %v4097_v15, %v1501_v42  ;;  %1777 = vrot.lane.b32.xlu0 %v1486_v22, %s3565_s5  ;;  %1848 = vrot.lane.b32.xlu1 %v1483_v57, %s3566_s9  ;;  %v4210_v57 = vld [vmem:[%s4893_s13] ss:$0 sm:$0xff] }
 0x5f3   :  { %v3027_v46 = vpop.f32.mrf.mxu0 }
 0x5f4   :  { %3364 = vpow2.f32 %v2768_v43  ;;  %v2766_v27 = vmul.f32 -1.442695, %v4134_v44  ;;  %1756 = vst.msk [vmem:[%s3743_s19 + $0x28] sm:$0xff] %vm603_vm1, %v4134_v44  ;;  %v4143_v47 = vadd.f32 %v3027_v46, %v4097_v15 }
 0x5f5   :  { %v3353_v48 = vpop.eup %3352  ;;  %v1514_v12 = vpop.f32.mrf.mxu0 }
 0x5f6   :  { %v1595_v50 = vadd.f32 1.0, %v3353_v48  ;;  %3366 = vpow2.f32 %v2766_v27  ;;  %v2771_v35 = vmul.f32 -1.442695, %v4143_v47  ;;  %2797 = vst.msk [vmem:[%s3743_s19 + $0xd0] sm:$0xff] %vm603_vm1, %v4143_v47  ;;  %v4150_v51 = vadd.f32 %v4097_v15, %v1514_v12  ;;  %1850 = vrot.lane.b32.xlu0 %v1486_v22, %s3566_s9  ;;  %1787 = vrot.lane.b32.xlu1 %v1507_v29, %s3565_s5 }
 0x5f7   :  { %v3355_v53 = vpop.eup %3354  ;;  %v3028_v54 = vpop.f32.mrf.mxu0 }
 0x5f8   :  { %3368 = vrcp.f32 %v1595_v50  ;;  %v1593_v3 = vadd.f32 1.0, %v3355_v53  ;;  %v2769_v56 = vmul.f32 -1.442695, %v4150_v51  ;;  %2795 = vst.msk [vmem:[%s3743_s19 + $0xc0] sm:$0xff] %vm603_vm1, %v4150_v51  ;;  %v4159_v59 = vadd.f32 %v3028_v54, %v4097_v15  ;;  %v1722_v54 = vld [vmem:[%s4895_s21 + $0x18] sm:$0xff] }
 0x5f9   :  { %v3357_v60 = vpop.eup %3356  ;;  %3370 = vpow2.f32 %v2771_v35  ;;  %v1517_v61 = vpop.f32.mrf.mxu0 }
 0x5fa   :  { %3372 = vrcp.f32 %v1593_v3  ;;  %v1596_v63 = vadd.f32 1.0, %v3357_v60  ;;  %v2772_v0 = vmul.f32 -1.442695, %v4159_v59  ;;  %2798 = vst.msk [vmem:[%s3743_s19 + $0xd8] sm:$0xff] %vm603_vm1, %v4159_v59  ;;  %v4166_v1 = vadd.f32 %v4097_v15, %v1517_v61  ;;  %1789 = vrot.lane.b32.xlu0 %v1510_v8, %s3565_s5  ;;  %1860 = vrot.lane.b32.xlu1 %v1507_v29, %s3566_s9 }
 0x5fb   :  { %v3359_v2 = vpop.eup %3358  ;;  %3374 = vpow2.f32 %v2769_v56  ;;  %v3031_v5 = vpop.f32.mrf.mxu0 }
 0x5fc   :  { %3376 = vrcp.f32 %v1596_v63  ;;  %v1594_v37 = vadd.f32 1.0, %v3359_v2  ;;  %v2770_v6 = vmul.f32 -1.442695, %v4166_v1  ;;  %2796 = vst.msk [vmem:[%s3743_s19 + $0xc8] sm:$0xff] %vm603_vm1, %v4166_v1  ;;  %v4175_v55 = vadd.f32 %v3031_v5, %v4097_v15 }
 0x5fd   :  { %v3361_v9 = vpop.eup %3360  ;;  %3378 = vpow2.f32 %v2772_v0  ;;  %v1530_v58 = vpop.f32.mrf.mxu0 }
 0x5fe   :  { %3380 = vrcp.f32 %v1594_v37  ;;  %v1599_v34 = vadd.f32 1.0, %v3361_v9  ;;  %v2775_v62 = vmul.f32 -1.442695, %v4175_v55  ;;  %2801 = vst.msk [vmem:[%s3743_s19 + $0xf0] sm:$0xff] %vm603_vm1, %v4175_v55  ;;  %v4182_v25 = vadd.f32 %v4097_v15, %v1530_v58  ;;  %1862 = vrot.lane.b32.xlu0 %v1510_v8, %s3566_s9  ;;  %1783 = vrot.lane.b32.xlu1 %v4122_v33, %s3565_s5 }
 0x5ff   :  { %v3363_v52 = vpop.eup %3362  ;;  %3382 = vpow2.f32 %v2770_v6  ;;  %v3032_v10 = vpop.f32.mrf.mxu0 }
 0x600   :  { %3384 = vrcp.f32 %v1599_v34  ;;  %v1597_v14 = vadd.f32 1.0, %v3363_v52  ;;  %v2773_v28 = vmul.f32 -1.442695, %v4182_v25  ;;  %2799 = vst.msk [vmem:[%s3743_s19 + $0xe0] sm:$0xff] %vm603_vm1, %v4182_v25  ;;  %v4192_v39 = vadd.f32 %v3032_v10, %v4097_v15 }
 0x601   :  { %v3365_v36 = vpop.eup %3364  ;;  %3386 = vpow2.f32 %v2775_v62  ;;  %v1533_v32 = vpop.f32.mrf.mxu0 }
 0x602   :  { %3388 = vrcp.f32 %v1597_v14  ;;  %v1600_v20 = vadd.f32 1.0, %v3365_v36  ;;  %v2776_v11 = vmul.f32 -1.442695, %v4192_v39  ;;  %2802 = vst.msk [vmem:[%s3743_s19 + $0xf8] sm:$0xff] %vm603_vm1, %v4192_v39  ;;  %v4199_v13 = vadd.f32 %v4097_v15, %v1533_v32  ;;  %1785 = vrot.lane.b32.xlu0 %v4134_v44, %s3565_s5  ;;  %1856 = vrot.lane.b32.xlu1 %v4122_v33, %s3566_s9  ;;  %v4213_v15 = vld [vmem:[%s4894_s17] ss:$0 sm:$0xff] }
 0x603   :  { %v3367_v16 = vpop.eup %3366  ;;  %3390 = vpow2.f32 %v2773_v28  ;;  %v1725_v32 = vld [vmem:[%s4895_s21 + $0x30] sm:$0xff] }
 0x604   :  { %3392 = vrcp.f32 %v1600_v20  ;;  %v1598_v4 = vadd.f32 1.0, %v3367_v16  ;;  %v2774_v45 = vmul.f32 -1.442695, %v4199_v13  ;;  %2800 = vst.msk [vmem:[%s3743_s19 + $0xe8] sm:$0xff] %vm603_vm1, %v4199_v13 }
 0x605   :  { %v3369_v7 = vpop.eup %3368  ;;  %3394 = vpow2.f32 %v2776_v11 }
 0x606   :  { %v3371_v17 = vpop.eup %3370  ;;  %3396 = vrcp.f32 %v1598_v4  ;;  %1858 = vrot.lane.b32.xlu0 %v4134_v44, %s3566_s9  ;;  %1943 = vrot.lane.b32.xlu1 %v4143_v47, %s3565_s5  ;;  %v1667_v18 = vmul.f32 %v3369_v7, %v3369_v7  ;;  %v1650_v22 = vmul.f32 %v3369_v7, %v4210_v57 }
 0x607   :  { %v3373_v49 = vpop.eup %3372  ;;  %v1603_v19 = vadd.f32 1.0, %v3371_v17  ;;  %3398 = vpow2.f32 %v2774_v45 }
 0x608   :  { %v3375_v21 = vpop.eup %3374  ;;  %v1689_v23 = vmul.f32 %v4213_v15, %v1667_v18  ;;  %v1665_v24 = vmul.f32 %v3373_v49, %v3373_v49  ;;  %v1648_v43 = vmul.f32 %v3373_v49, %v4210_v57  ;;  %v1723_v49 = vld [vmem:[%s4895_s21 + $0x20] sm:$0xff] }
 0x609   :  { %v3377_v29 = vpop.eup %3376  ;;  %3400 = vrcp.f32 %v1603_v19  ;;  %v1601_v30 = vadd.f32 1.0, %v3375_v21 }
 0x60a   :  { %v3379_v33 = vpop.eup %3378  ;;  %1945 = vrot.lane.b32.xlu0 %v4159_v59, %s3565_s5  ;;  %2016 = vrot.lane.b32.xlu1 %v4143_v47, %s3566_s9  ;;  %v1705_v40 = vadd.f32 %v1689_v23, %v1650_v22  ;;  %v1668_v41 = vmul.f32 %v3377_v29, %v3377_v29  ;;  %v1687_v44 = vmul.f32 %v4213_v15, %v1665_v24  ;;  %v1719_v47 = vld [vmem:[%s4895_s21] sm:$0xff]  ;;  %v1726_v23 = vld [vmem:[%s4895_s21 + $0x38] sm:$0xff] }
 0x60b   :  { %v3381_v8 = vpop.eup %3380  ;;  %3402 = vrcp.f32 %v1601_v30  ;;  %v1604_v42 = vadd.f32 1.0, %v3379_v33  ;;  %v1651_v48 = vmul.f32 %v3377_v29, %v4210_v57 }
 0x60c   :  { %v3383_v46 = vpop.eup %3382  ;;  %v4228_v27 = vadd.f32 %v1721_v38, %v1705_v40  ;;  %v1690_v12 = vmul.f32 %v4213_v15, %v1668_v41  ;;  %v1666_v50 = vmul.f32 %v3381_v8, %v3381_v8  ;;  %v1703_v3 = vadd.f32 %v1687_v44, %v1648_v43  ;;  %v1724_v41 = vld [vmem:[%s4895_s21 + $0x28] sm:$0xff] }
 0x60d   :  { %v3385_v35 = vpop.eup %3384  ;;  %3404 = vrcp.f32 %v1604_v42  ;;  %v1602_v53 = vadd.f32 1.0, %v3383_v46  ;;  %v1649_v61 = vmul.f32 %v3381_v8, %v4210_v57 }
 0x60e   :  { %v3387_v56 = vpop.eup %3386  ;;  %2018 = vrot.lane.b32.xlu0 %v4159_v59, %s3566_s9  ;;  %1939 = vrot.lane.b32.xlu1 %v4150_v51, %s3565_s5  ;;  %1761 = vst.msk [vmem:[%s3758_s30 + $0x10] sm:$0xff] %vm603_vm1, %v4228_v27  ;;  %v1706_v60 = vadd.f32 %v1690_v12, %v1651_v48  ;;  %v1688_v63 = vmul.f32 %v4213_v15, %v1666_v50  ;;  %v1720_v59 = vld [vmem:[%s4895_s21 + $0x8] sm:$0xff] }
 0x60f   :  { %v3389_v0 = vpop.eup %3388  ;;  %3406 = vrcp.f32 %v1602_v53  ;;  %v1607_v2 = vadd.f32 1.0, %v3387_v56  ;;  %2080 = vst.msk [vmem:[%s3758_s30 + $0x10] sm:$0xff] %vm2077_vm6, %v3563_v31  ;;  %v4246_v5 = vadd.f32 %v1719_v47, %v1703_v3  ;;  %v1671_v37 = vmul.f32 %v3385_v35, %v3385_v35  ;;  %v1729_v50 = vld [vmem:[%s4895_s21 + $0x50] sm:$0xff]  ;;  %v1727_v56 = vld [vmem:[%s4895_s21 + $0x40] sm:$0xff] }
 0x610   :  { %v3391_v6 = vpop.eup %3390  ;;  %v4249_v9 = vadd.f32 %v1722_v54, %v1706_v60  ;;  %v1704_v58 = vadd.f32 %v1688_v63, %v1649_v61  ;;  %v1669_v34 = vmul.f32 %v3389_v0, %v3389_v0  ;;  %v1654_v10 = vmul.f32 %v3385_v35, %v4210_v57 }
 0x611   :  { %v3393_v62 = vpop.eup %3392  ;;  %3408 = vrcp.f32 %v1607_v2  ;;  %v1605_v52 = vadd.f32 1.0, %v3391_v6  ;;  %1759 = vst.msk [vmem:[%s3758_s30] sm:$0xff] %vm603_vm1, %v4246_v5  ;;  %v1693_v14 = vmul.f32 %v4213_v15, %v1671_v37  ;;  %v1652_v11 = vmul.f32 %v3389_v0, %v4210_v57 }
 0x612   :  { %v3395_v28 = vpop.eup %3394  ;;  %1941 = vrot.lane.b32.xlu0 %v4166_v1, %s3565_s5  ;;  %2012 = vrot.lane.b32.xlu1 %v4150_v51, %s3566_s9  ;;  %1762 = vst.msk [vmem:[%s3758_s30 + $0x18] sm:$0xff] %vm603_vm1, %v4249_v9  ;;  %v4266_v36 = vadd.f32 %v1720_v59, %v1704_v58  ;;  %v1672_v20 = vmul.f32 %v3393_v62, %v3393_v62  ;;  %v1730_v59 = vld [vmem:[%s4895_s21 + $0x58] sm:$0xff] }
 0x613   :  { %2078 = vst.msk [vmem:[%s3758_s30] sm:$0xff] %vm2077_vm6, %v3563_v31  ;;  %v3397_v16 = vpop.eup %3396  ;;  %3410 = vrcp.f32 %v1605_v52  ;;  %v1608_v4 = vadd.f32 1.0, %v3395_v28  ;;  %2081 = vst.msk [vmem:[%s3758_s30 + $0x18] sm:$0xff] %vm2077_vm6, %v3563_v31  ;;  %v1709_v51 = vadd.f32 %v1693_v14, %v1654_v10  ;;  %v1691_v45 = vmul.f32 %v4213_v15, %v1669_v34  ;;  %v1728_v14 = vld [vmem:[%s4895_s21 + $0x48] sm:$0xff] }
 0x614   :  { %v3399_v7 = vpop.eup %3398  ;;  %1760 = vst.msk [vmem:[%s3758_s30 + $0x8] sm:$0xff] %vm603_vm1, %v4266_v36  ;;  %v1655_v17 = vmul.f32 %v3393_v62, %v4210_v57  ;;  %v1694_v18 = vmul.f32 %v4213_v15, %v1672_v20  ;;  %v1670_v19 = vmul.f32 %v3397_v16, %v3397_v16  ;;  %v1653_v38 = vmul.f32 %v3397_v16, %v4210_v57 }
 0x615   :  { %3412 = vrcp.f32 %v1608_v4  ;;  %v1606_v21 = vadd.f32 1.0, %v3399_v7  ;;  %2079 = vst.msk [vmem:[%s3758_s30 + $0x8] sm:$0xff] %vm2077_vm6, %v3563_v31  ;;  %v4283_v22 = vadd.f32 %v1725_v32, %v1709_v51  ;;  %v1707_v24 = vadd.f32 %v1691_v45, %v1652_v11  ;;  %v1733_v4 = vld [vmem:[%s4895_s21 + $0x70] sm:$0xff] }
 0x616   :  { %v3401_v29 = vpop.eup %3400  ;;  %2014 = vrot.lane.b32.xlu0 %v4166_v1, %s3566_s9  ;;  %1951 = vrot.lane.b32.xlu1 %v4175_v55, %s3565_s5  ;;  %v1710_v30 = vadd.f32 %v1694_v18, %v1655_v17  ;;  %v1692_v33 = vmul.f32 %v4213_v15, %v1670_v19 }
 0x617   :  { %3414 = vrcp.f32 %v1606_v21  ;;  %1765 = vst.msk [vmem:[%s3758_s30 + $0x30] sm:$0xff] %vm603_vm1, %v4283_v22  ;;  %v4295_v40 = vadd.f32 %v1723_v49, %v1707_v24  ;;  %v1675_v8 = vmul.f32 %v3401_v29, %v3401_v29  ;;  %v1658_v44 = vmul.f32 %v3401_v29, %v4210_v57  ;;  %v1731_v49 = vld [vmem:[%s4895_s21 + $0x60] sm:$0xff]  ;;  %v1734_v29 = vld [vmem:[%s4895_s21 + $0x78] sm:$0xff] }
 0x618   :  { %v3403_v1 = vpop.eup %3402  ;;  %2084 = vst.msk [vmem:[%s3758_s30 + $0x30] sm:$0xff] %vm2077_vm6, %v3563_v31  ;;  %v4301_v42 = vadd.f32 %v1726_v23, %v1710_v30  ;;  %v1708_v43 = vadd.f32 %v1692_v33, %v1653_v38 }
 0x619   :  { %1763 = vst.msk [vmem:[%s3758_s30 + $0x20] sm:$0xff] %vm603_vm1, %v4295_v40  ;;  %v1697_v46 = vmul.f32 %v4213_v15, %v1675_v8  ;;  %v1673_v48 = vmul.f32 %v3403_v1, %v3403_v1  ;;  %v1656_v53 = vmul.f32 %v3403_v1, %v4210_v57  ;;  %v1732_v1 = vld [vmem:[%s4895_s21 + $0x68] sm:$0xff] }
 0x61a   :  { %v3405_v12 = vpop.eup %3404  ;;  %1953 = vrot.lane.b32.xlu0 %v4192_v39, %s3565_s5  ;;  %2024 = vrot.lane.b32.xlu1 %v4175_v55, %s3566_s9  ;;  %1766 = vst.msk [vmem:[%s3758_s30 + $0x38] sm:$0xff] %vm603_vm1, %v4301_v42  ;;  %v4318_v47 = vadd.f32 %v1724_v41, %v1708_v43 }
 0x61b   :  { %2082 = vst.msk [vmem:[%s3758_s30 + $0x20] sm:$0xff] %vm2077_vm6, %v3563_v31  ;;  %2085 = vst.msk [vmem:[%s3758_s30 + $0x38] sm:$0xff] %vm2077_vm6, %v3563_v31  ;;  %v1713_v35 = vadd.f32 %v1697_v46, %v1658_v44  ;;  %v1695_v54 = vmul.f32 %v4213_v15, %v1673_v48  ;;  %v1676_v55 = vmul.f32 %v3405_v12, %v3405_v12 }
 0x61c   :  { %v3407_v3 = vpop.eup %3406  ;;  %1764 = vst.msk [vmem:[%s3758_s30 + $0x28] sm:$0xff] %vm603_vm1, %v4318_v47  ;;  %v1659_v63 = vmul.f32 %v3405_v12, %v4210_v57 }
 0x61d   :  { %2083 = vst.msk [vmem:[%s3758_s30 + $0x28] sm:$0xff] %vm2077_vm6, %v3563_v31  ;;  %v4333_v60 = vadd.f32 %v1729_v50, %v1713_v35  ;;  %v1711_v61 = vadd.f32 %v1695_v54, %v1656_v53  ;;  %v1698_v0 = vmul.f32 %v4213_v15, %v1676_v55  ;;  %v1674_v37 = vmul.f32 %v3407_v3, %v3407_v3 }
 0x61e   :  { %v3409_v2 = vpop.eup %3408  ;;  %2026 = vrot.lane.b32.xlu0 %v4192_v39, %s3566_s9  ;;  %1947 = vrot.lane.b32.xlu1 %v4182_v25, %s3565_s5  ;;  %v1657_v39 = vmul.f32 %v3407_v3, %v4210_v57 }
 0x61f   :  { %2805 = vst.msk [vmem:[%s3758_s30 + $0x110] sm:$0xff] %vm603_vm1, %v4333_v60  ;;  %v4345_v6 = vadd.f32 %v1727_v56, %v1711_v61  ;;  %v1714_v58 = vadd.f32 %v1698_v0, %v1659_v63  ;;  %v1679_v34 = vmul.f32 %v3409_v2, %v3409_v2  ;;  %v1696_v52 = vmul.f32 %v4213_v15, %v1674_v37 }
 0x620   :  { %v3411_v62 = vpop.eup %3410  ;;  %2104 = vst.msk [vmem:[%s3758_s30 + $0x110] sm:$0xff] %vm2077_vm6, %v3563_v31  ;;  %v1662_v28 = vmul.f32 %v3409_v2, %v4210_v57 }
 0x621   :  { %2803 = vst.msk [vmem:[%s3758_s30 + $0x100] sm:$0xff] %vm603_vm1, %v4345_v6  ;;  %v4355_v10 = vadd.f32 %v1730_v59, %v1714_v58  ;;  %v1701_v32 = vmul.f32 %v4213_v15, %v1679_v34  ;;  %v1677_v20 = vmul.f32 %v3411_v62, %v3411_v62  ;;  %v1712_v16 = vadd.f32 %v1696_v52, %v1657_v39 }
 0x622   :  { %v3413_v11 = vpop.eup %3412  ;;  %1949 = vrot.lane.b32.xlu0 %v4199_v13, %s3565_s5  ;;  %2020 = vrot.lane.b32.xlu1 %v4182_v25, %s3566_s9  ;;  %2102 = vst.msk [vmem:[%s3758_s30 + $0x100] sm:$0xff] %vm2077_vm6, %v3563_v31  ;;  %v1660_v45 = vmul.f32 %v3411_v62, %v4210_v57 }
 0x623   :  { %2806 = vst.msk [vmem:[%s3758_s30 + $0x118] sm:$0xff] %vm603_vm1, %v4355_v10  ;;  %v1717_v51 = vadd.f32 %v1701_v32, %v1662_v28  ;;  %v1699_v7 = vmul.f32 %v4213_v15, %v1677_v20  ;;  %v1680_v17 = vmul.f32 %v3413_v11, %v3413_v11  ;;  %v1744_v25 = vadd.f32 %v1728_v14, %v1712_v16  ;;  %v2746_v16 = vld [vmem:[%s4897_s29] ss:$0 sm:$0xff] }
 0x624   :  { %v3415_v18 = vpop.eup %3414  ;;  %2105 = vst.msk [vmem:[%s3758_s30 + $0x118] sm:$0xff] %vm2077_vm6, %v3563_v31  ;;  %v1663_v23 = vmul.f32 %v3413_v11, %v4210_v57 }
 0x625   :  { %v4377_v19 = vadd.f32 %v1733_v4, %v1717_v51  ;;  %v1715_v21 = vadd.f32 %v1699_v7, %v1660_v45  ;;  %v1702_v24 = vmul.f32 %v4213_v15, %v1680_v17  ;;  %2804 = vst.msk [vmem:[%s3758_s30 + $0x108] sm:$0xff] %vm603_vm1, %v1744_v25  ;;  %v1678_v30 = vmul.f32 %v3415_v18, %v3415_v18 }
 0x626   :  { %2022 = vrot.lane.b32.xlu0 %v4199_v13, %s3566_s9  ;;  %1820 = vrot.lane.b32.xlu1 %v4228_v27, %s3565_s5  ;;  %2103 = vst.msk [vmem:[%s3758_s30 + $0x108] sm:$0xff] %vm2077_vm6, %v3563_v31  ;;  %v1661_v13 = vmul.f32 %v3415_v18, %v4210_v57 }
 0x627   :  { %2809 = vst.msk [vmem:[%s3758_s30 + $0x130] sm:$0xff] %vm603_vm1, %v4377_v19  ;;  %v1747_v38 = vadd.f32 %v1731_v49, %v1715_v21  ;;  %v1718_v33 = vadd.f32 %v1702_v24, %v1663_v23  ;;  %v1700_v41 = vmul.f32 %v4213_v15, %v1678_v30  ;;  %v3140_v15 = vld [vmem:[%s4896_s25 + $0x18] sm:$0xff]   ;;  %v2843_v21 = vld [vmem:[%s4898_s3] ss:$0 sm:$0xff] }
 0x628   :  { %2108 = vst.msk [vmem:[%s3758_s30 + $0x130] sm:$0xff] %vm2077_vm6, %v3563_v31  ;;  %3042 = vmatpush3.bf16.msra.mxu1 %v3140_v15 }
 0x629   :  { %2807 = vst.msk [vmem:[%s3758_s30 + $0x120] sm:$0xff] %vm603_vm1, %v1747_v38  ;;  %v1750_v8 = vadd.f32 %v1734_v29, %v1718_v33  ;;  %v1716_v43 = vadd.f32 %v1700_v41, %v1661_v13  ;;  %3043 = vmatprep.subr.bf16.mxu1 %v3563_v31 }
 0x62a   :  { %1822 = vrot.lane.b32.xlu0 %v4249_v9, %s3565_s5  ;;  %1885 = vrot.lane.b32.xlu1 %v4228_v27, %s3566_s9  ;;  %2106 = vst.msk [vmem:[%s3758_s30 + $0x120] sm:$0xff] %vm2077_vm6, %v3563_v31  ;;  %v3141_v27 = vld [vmem:[%s4896_s25 + $0x10] sm:$0xff]  }
 0x62b   :  { %2810 = vst.msk [vmem:[%s3758_s30 + $0x138] sm:$0xff] %vm603_vm1, %v1750_v8  ;;  %v1748_v57 = vadd.f32 %v1732_v1, %v1716_v43 }
 0x62c   :  { %2109 = vst.msk [vmem:[%s3758_s30 + $0x138] sm:$0xff] %vm2077_vm6, %v3563_v31  ;;  %3044 = vmatpush3.bf16.msra.mxu1 %v3141_v27 }
 0x62d   :  { %2808 = vst.msk [vmem:[%s3758_s30 + $0x128] sm:$0xff] %vm603_vm1, %v1748_v57  ;;  %3045 = vmatprep.subr.bf16.mxu1 %v3563_v31 }
 0x62e   :  { %1887 = vrot.lane.b32.xlu0 %v4249_v9, %s3566_s9  ;;  %1816 = vrot.lane.b32.xlu1 %v4246_v5, %s3565_s5  ;;  %2107 = vst.msk [vmem:[%s3758_s30 + $0x128] sm:$0xff] %vm2077_vm6, %v3563_v31  ;;  %v3143_v9 = vld [vmem:[%s4896_s25] sm:$0xff]  }
 0x632   :  { %1818 = vrot.lane.b32.xlu0 %v4266_v36, %s3565_s5  ;;  %1881 = vrot.lane.b32.xlu1 %v4246_v5, %s3566_s9  ;;  %v3142_v5 = vld [vmem:[%s4896_s25 + $0x8] sm:$0xff]  }
 0x633   :  { %3046 = vmatpush3.bf16.msra.mxu1 %v3142_v5 }
 0x634   :  { %3047 = vmatprep.subr.bf16.mxu1 %v3563_v31 }
 0x636   :  { %1883 = vrot.lane.b32.xlu0 %v4266_v36, %s3566_s9  ;;  %1828 = vrot.lane.b32.xlu1 %v4283_v22, %s3565_s5 }
 0x637   :  { %3048 = vmatpush3.bf16.msra.mxu1 %v3143_v9 }
 0x63a   :  { %1830 = vrot.lane.b32.xlu0 %v4301_v42, %s3565_s5  ;;  %1893 = vrot.lane.b32.xlu1 %v4283_v22, %s3566_s9 }
 0x63e   :  { %1895 = vrot.lane.b32.xlu0 %v4301_v42, %s3566_s9  ;;  %1824 = vrot.lane.b32.xlu1 %v4295_v40, %s3565_s5 }
 0x642   :  { %1826 = vrot.lane.b32.xlu0 %v4318_v47, %s3565_s5  ;;  %1889 = vrot.lane.b32.xlu1 %v4295_v40, %s3566_s9 }
 0x646   :  { %1891 = vrot.lane.b32.xlu0 %v4318_v47, %s3566_s9  ;;  %1984 = vrot.lane.b32.xlu1 %v4333_v60, %s3565_s5 }
 0x64a   :  { %2049 = vrot.lane.b32.xlu0 %v4333_v60, %s3566_s9  ;;  %1980 = vrot.lane.b32.xlu1 %v4345_v6, %s3565_s5 }
 0x64e   :  { %2045 = vrot.lane.b32.xlu0 %v4345_v6, %s3566_s9  ;;  %2051 = vrot.lane.b32.xlu1 %v4355_v10, %s3566_s9 }
 0x652   :  { %1986 = vrot.lane.b32.xlu0 %v4355_v10, %s3565_s5  ;;  %2047 = vrot.lane.b32.xlu1 %v1744_v25, %s3566_s9 }
 0x656   :  { %1982 = vrot.lane.b32.xlu0 %v1744_v25, %s3565_s5  ;;  %1992 = vrot.lane.b32.xlu1 %v4377_v19, %s3565_s5 }
 0x658   :  { %v1780_v36 = vpop.permute.xlu1 %1779 }
 0x659   :  { %2781 = vst.msk [vmem:[%s3743_s19 + $0x50] sm:$0xff] %vm603_vm1, %v1780_v36 }
 0x65a   :  { %2057 = vrot.lane.b32.xlu0 %v4377_v19, %s3566_s9  ;;  %1988 = vrot.lane.b32.xlu1 %v1747_v38, %s3565_s5 }
 0x65c   :  { %v1853_v22 = vpop.permute.xlu1 %1852  ;;  %v1782_v40 = vpop.permute.xlu0 %1781 }
 0x65d   :  { %2789 = vst.msk [vmem:[%s3743_s19 + $0x90] sm:$0xff] %vm603_vm1, %v1853_v22  ;;  %2782 = vst.msk [vmem:[%s3743_s19 + $0x58] sm:$0xff] %vm603_vm1, %v1782_v40 }
 0x65e   :  { %2053 = vrot.lane.b32.xlu0 %v1747_v38, %s3566_s9  ;;  %2059 = vrot.lane.b32.xlu1 %v1750_v8, %s3566_s9 }
 0x660   :  { %v1855_v42 = vpop.permute.xlu0 %1854  ;;  %v1776_v44 = vpop.permute.xlu1 %1775 }
 0x661   :  { %2790 = vst.msk [vmem:[%s3743_s19 + $0x98] sm:$0xff] %vm603_vm1, %v1855_v42  ;;  %2779 = vst.msk [vmem:[%s3743_s19 + $0x40] sm:$0xff] %vm603_vm1, %v1776_v44 }
 0x662   :  { %1994 = vrot.lane.b32.xlu0 %v1750_v8, %s3565_s5  ;;  %2055 = vrot.lane.b32.xlu1 %v1748_v57, %s3566_s9 }
 0x664   :  { %v1778_v46 = vpop.permute.xlu0 %1777  ;;  %v1849_v48 = vpop.permute.xlu1 %1848 }
 0x665   :  { %2780 = vst.msk [vmem:[%s3743_s19 + $0x48] sm:$0xff] %vm603_vm1, %v1778_v46  ;;  %2787 = vst.msk [vmem:[%s3743_s19 + $0x80] sm:$0xff] %vm603_vm1, %v1849_v48 }
 0x666   :  { %1990 = vrot.lane.b32.xlu0 %v1748_v57, %s3565_s5 }
 0x668   :  { %v1851_v12 = vpop.permute.xlu0 %1850  ;;  %v1788_v47 = vpop.permute.xlu1 %1787 }
 0x669   :  { %2788 = vst.msk [vmem:[%s3743_s19 + $0x88] sm:$0xff] %vm603_vm1, %v1851_v12  ;;  %2785 = vst.msk [vmem:[%s3743_s19 + $0x70] sm:$0xff] %vm603_vm1, %v1788_v47  ;;  %v3567_v12 = vmov 1983009808  }
 0x66a   :  { %v2387_v47 = vunpack.c.l.s4 %v3567_v12 }
 0x66c   :  { %v1790_v50 = vpop.permute.xlu0 %1789  ;;  %v1861_v35 = vpop.permute.xlu1 %1860 }
 0x66d   :  { %2786 = vst.msk [vmem:[%s3743_s19 + $0x78] sm:$0xff] %vm603_vm1, %v1790_v50  ;;  %2793 = vst.msk [vmem:[%s3743_s19 + $0xb0] sm:$0xff] %vm603_vm1, %v1861_v35 }
 0x670   :  { %v1863_v53 = vpop.permute.xlu0 %1862  ;;  %v1784_v54 = vpop.permute.xlu1 %1783 }
 0x671   :  { %2794 = vst.msk [vmem:[%s3743_s19 + $0xb8] sm:$0xff] %vm603_vm1, %v1863_v53  ;;  %2783 = vst.msk [vmem:[%s3743_s19 + $0x60] sm:$0xff] %vm603_vm1, %v1784_v54 }
 0x674   :  { %v1786_v55 = vpop.permute.xlu0 %1785  ;;  %v1857_v3 = vpop.permute.xlu1 %1856 }
 0x675   :  { %2784 = vst.msk [vmem:[%s3743_s19 + $0x68] sm:$0xff] %vm603_vm1, %v1786_v55  ;;  %2791 = vst.msk [vmem:[%s3743_s19 + $0xa0] sm:$0xff] %vm603_vm1, %v1857_v3  ;;  %v2388_v3 = vunpack.c.0.s8 %v2387_v47 }
 0x678   :  { %v1859_v56 = vpop.permute.xlu0 %1858  ;;  %v1944_v60 = vpop.permute.xlu1 %1943 }
 0x679   :  { %2792 = vst.msk [vmem:[%s3743_s19 + $0xa8] sm:$0xff] %vm603_vm1, %v1859_v56  ;;  %2813 = vst.msk [vmem:[%s3743_s19 + $0x110] sm:$0xff] %vm603_vm1, %v1944_v60 }
 0x67c   :  { %v1946_v61 = vpop.permute.xlu0 %1945  ;;  %v2017_v63 = vpop.permute.xlu1 %2016 }
 0x67d   :  { %2814 = vst.msk [vmem:[%s3743_s19 + $0x118] sm:$0xff] %vm603_vm1, %v1946_v61  ;;  %2829 = vst.msk [vmem:[%s3743_s19 + $0x150] sm:$0xff] %vm603_vm1, %v2017_v63 }
 0x680   :  { %v2019_v0 = vpop.permute.xlu0 %2018  ;;  %v1940_v2 = vpop.permute.xlu1 %1939 }
 0x681   :  { %2830 = vst.msk [vmem:[%s3743_s19 + $0x158] sm:$0xff] %vm603_vm1, %v2019_v0  ;;  %2811 = vst.msk [vmem:[%s3743_s19 + $0x100] sm:$0xff] %vm603_vm1, %v1940_v2 }
 0x684   :  { %v1942_v59 = vpop.permute.xlu0 %1941  ;;  %v2013_v37 = vpop.permute.xlu1 %2012 }
 0x685   :  { %2812 = vst.msk [vmem:[%s3743_s19 + $0x108] sm:$0xff] %vm603_vm1, %v1942_v59  ;;  %2827 = vst.msk [vmem:[%s3743_s19 + $0x140] sm:$0xff] %vm603_vm1, %v2013_v37  ;;  %v2391_v59 = vsub.s32 %v2388_v3, %v3800_v26 }
 0x688   :  { %v2015_v6 = vpop.permute.xlu0 %2014  ;;  %v1952_v58 = vpop.permute.xlu1 %1951 }
 0x689   :  { %2828 = vst.msk [vmem:[%s3743_s19 + $0x148] sm:$0xff] %vm603_vm1, %v2015_v6  ;;  %2817 = vst.msk [vmem:[%s3743_s19 + $0x130] sm:$0xff] %vm603_vm1, %v1952_v58 }
 0x68c   :  { %v1954_v34 = vpop.permute.xlu0 %1953  ;;  %v2025_v62 = vpop.permute.xlu1 %2024 }
 0x68d   :  { %2818 = vst.msk [vmem:[%s3743_s19 + $0x138] sm:$0xff] %vm603_vm1, %v1954_v34  ;;  %2833 = vst.msk [vmem:[%s3743_s19 + $0x170] sm:$0xff] %vm603_vm1, %v2025_v62 }
 0x690   :  { %v2027_v39 = vpop.permute.xlu0 %2026  ;;  %v1948_v52 = vpop.permute.xlu1 %1947 }
 0x691   :  { %2834 = vst.msk [vmem:[%s3743_s19 + $0x178] sm:$0xff] %vm603_vm1, %v2027_v39  ;;  %2815 = vst.msk [vmem:[%s3743_s19 + $0x120] sm:$0xff] %vm603_vm1, %v1948_v52 }
 0x694   :  { %v1950_v10 = vpop.permute.xlu0 %1949  ;;  %v2021_v14 = vpop.permute.xlu1 %2020 }
 0x695   :  { %2816 = vst.msk [vmem:[%s3743_s19 + $0x128] sm:$0xff] %vm603_vm1, %v1950_v10  ;;  %2831 = vst.msk [vmem:[%s3743_s19 + $0x160] sm:$0xff] %vm603_vm1, %v2021_v14 }
 0x698   :  { %v2023_v28 = vpop.permute.xlu0 %2022  ;;  %v1821_v32 = vpop.permute.xlu1 %1820 }
 0x699   :  { %2832 = vst.msk [vmem:[%s3743_s19 + $0x168] sm:$0xff] %vm603_vm1, %v2023_v28  ;;  %1842 = vst.msk [vmem:[%s3758_s30 + $0x50] sm:$0xff] %vm603_vm1, %v1821_v32  ;;  %s4901_s19 = sld [smem:[#allocation20_spill]] }
 0x69a   :  { %2088 = vst.msk [vmem:[%s3758_s30 + $0x50] sm:$0xff] %vm2077_vm6, %v3563_v31 }
 0x69c   :  { %v1823_v20 = vpop.permute.xlu0 %1822  ;;  %v1886_v11 = vpop.permute.xlu1 %1885 }
 0x69d   :  { %1843 = vst.msk [vmem:[%s3758_s30 + $0x58] sm:$0xff] %vm603_vm1, %v1823_v20  ;;  %1907 = vst.msk [vmem:[%s3758_s30 + $0x90] sm:$0xff] %vm603_vm1, %v1886_v11 }
 0x69e   :  { %2089 = vst.msk [vmem:[%s3758_s30 + $0x58] sm:$0xff] %vm2077_vm6, %v3563_v31  ;;  %2096 = vst.msk [vmem:[%s3758_s30 + $0x90] sm:$0xff] %vm2077_vm6, %v3563_v31  ;;  %v1379_v4 = vpop.f32.mrf.mxu1 }
 0x69f   :  { %v4556_v51 = vadd.f32 %v2746_v16, %v1379_v4  ;;  %v2852_v4 = vld [vmem:[%s4899_s8] ss:$0 sm:$0xff]  ;;  %v2280_v47 = vld [vmem:[%s4901_s19 + $0x8] sm:$0xff] }
 0x6a0   :  { %v3013_v45 = vpop.f32.mrf.mxu1  ;;  %v1888_v7 = vpop.permute.xlu0 %1887 }
 0x6a1   :  { %v2750_v17 = vmul.f32 -1.442695, %v4556_v51  ;;  %1908 = vst.msk [vmem:[%s3758_s30 + $0x98] sm:$0xff] %vm603_vm1, %v1888_v7  ;;  %v1817_v18 = vpop.permute.xlu1 %1816 }
 0x6a2   :  { %2097 = vst.msk [vmem:[%s3758_s30 + $0x98] sm:$0xff] %vm2077_vm6, %v3563_v31  ;;  %v1382_v25 = vpop.f32.mrf.mxu1 }
 0x6a3   :  { %1840 = vst.msk [vmem:[%s3758_s30 + $0x40] sm:$0xff] %vm603_vm1, %v1817_v18  ;;  %3416 = vpow2.f32 %v2750_v17 }
 0x6a4   :  { %2086 = vst.msk [vmem:[%s3758_s30 + $0x40] sm:$0xff] %vm2077_vm6, %v3563_v31  ;;  %v3014_v49 = vpop.f32.mrf.mxu1  ;;  %v1819_v19 = vpop.permute.xlu0 %1818 }
 0x6a5   :  { %1841 = vst.msk [vmem:[%s3758_s30 + $0x48] sm:$0xff] %vm603_vm1, %v1819_v19  ;;  %v1882_v23 = vpop.permute.xlu1 %1881 }
 0x6a6   :  { %2087 = vst.msk [vmem:[%s3758_s30 + $0x48] sm:$0xff] %vm2077_vm6, %v3563_v31  ;;  %v3039_v24 = vpop.f32.mrf.mxu1 }
 0x6a7   :  { %1905 = vst.msk [vmem:[%s3758_s30 + $0x80] sm:$0xff] %vm603_vm1, %v1882_v23  ;;  %v4580_v29 = vadd.f32 %v3039_v24, %v2843_v21  ;;  %v2281_v23 = vld [vmem:[%s4901_s19 + $0x10] sm:$0xff] }
 0x6a8   :  { %2094 = vst.msk [vmem:[%s3758_s30 + $0x80] sm:$0xff] %vm2077_vm6, %v3563_v31  ;;  %v2210_v30 = vpop.f32.mrf.mxu1  ;;  %v1884_v38 = vpop.permute.xlu0 %1883 }
 0x6a9   :  { %v2850_v33 = vmul.f32 -1.442695, %v4580_v29  ;;  %2858 = vst.msk [vmem:[%s3748_s27 + $0x30] sm:$0xff] %vm603_vm1, %v4580_v29  ;;  %v2211_v13 = vadd.f32 %v2843_v21, %v2210_v30  ;;  %1906 = vst.msk [vmem:[%s3758_s30 + $0x88] sm:$0xff] %vm603_vm1, %v1884_v38  ;;  %v1829_v41 = vpop.permute.xlu1 %1828  ;;  %2336 = vrot.lane.b32.xlu1 %v4580_v29, %s3565_s5 }
 0x6aa   :  { %2095 = vst.msk [vmem:[%s3758_s30 + $0x88] sm:$0xff] %vm2077_vm6, %v3563_v31  ;;  %v3040_v8 = vpop.f32.mrf.mxu1 }
 0x6ab   :  { %1846 = vst.msk [vmem:[%s3758_s30 + $0x70] sm:$0xff] %vm603_vm1, %v1829_v41  ;;  %3418 = vpow2.f32 %v2850_v33  ;;  %v2848_v1 = vmul.f32 -1.442695, %v2211_v13  ;;  %2287 = vst.msk [vmem:[%s3748_s27] sm:$0xff] %vm603_vm1, %v2211_v13  ;;  %v4600_v43 = vadd.f32 %v3040_v8, %v2843_v21  ;;  %v2279_v8 = vld [vmem:[%s4901_s19] sm:$0xff] }
 0x6ac   :  { %2092 = vst.msk [vmem:[%s3758_s30 + $0x70] sm:$0xff] %vm2077_vm6, %v3563_v31  ;;  %v2213_v57 = vpop.f32.mrf.mxu1  ;;  %v1831_v15 = vpop.permute.xlu0 %1830 }
 0x6ad   :  { %3420 = vpow2.f32 %v2848_v1  ;;  %v2851_v27 = vmul.f32 -1.442695, %v4600_v43  ;;  %2859 = vst.msk [vmem:[%s3748_s27 + $0x38] sm:$0xff] %vm603_vm1, %v4600_v43  ;;  %v2214_v5 = vadd.f32 %v2843_v21, %v2213_v57  ;;  %1847 = vst.msk [vmem:[%s3758_s30 + $0x78] sm:$0xff] %vm603_vm1, %v1831_v15  ;;  %v1894_v9 = vpop.permute.xlu1 %1893  ;;  %2338 = vrot.lane.b32.xlu0 %v4600_v43, %s3565_s5  ;;  %2293 = vrot.lane.b32.xlu1 %v2211_v13, %s3565_s5 }
 0x6ae   :  { %2093 = vst.msk [vmem:[%s3758_s30 + $0x78] sm:$0xff] %vm2077_vm6, %v3563_v31 }
 0x6af   :  { %1911 = vst.msk [vmem:[%s3758_s30 + $0xb0] sm:$0xff] %vm603_vm1, %v1894_v9  ;;  %3422 = vpow2.f32 %v2851_v27  ;;  %v2849_v36 = vmul.f32 -1.442695, %v2214_v5  ;;  %2288 = vst.msk [vmem:[%s3748_s27 + $0x8] sm:$0xff] %vm603_vm1, %v2214_v5  ;;  %v2282_v9 = vld [vmem:[%s4901_s19 + $0x18] sm:$0xff] }
 0x6b0   :  { %2100 = vst.msk [vmem:[%s3758_s30 + $0xb0] sm:$0xff] %vm2077_vm6, %v3563_v31  ;;  %v3417_v22 = vpop.eup %3416  ;;  %v1896_v40 = vpop.permute.xlu0 %1895 }
 0x6b1   :  { %v1388_v42 = vadd.f32 1.0, %v3417_v22  ;;  %3424 = vpow2.f32 %v2849_v36  ;;  %1912 = vst.msk [vmem:[%s3758_s30 + $0xb8] sm:$0xff] %vm603_vm1, %v1896_v40  ;;  %v1825_v44 = vpop.permute.xlu1 %1824  ;;  %2295 = vrot.lane.b32.xlu0 %v2214_v5, %s3565_s5  ;;  %2312 = vrot.lane.b32.xlu1 %v2211_v13, %s3566_s9 }
 0x6b2   :  { %2101 = vst.msk [vmem:[%s3758_s30 + $0xb8] sm:$0xff] %vm2077_vm6, %v3563_v31 }
 0x6b3   :  { %1844 = vst.msk [vmem:[%s3758_s30 + $0x60] sm:$0xff] %vm603_vm1, %v1825_v44  ;;  %3426 = vrcp.f32 %v1388_v42  ;;  %v3568_v44 = vmov 1.0  }
 0x6b4   :  { %2090 = vst.msk [vmem:[%s3758_s30 + $0x60] sm:$0xff] %vm2077_vm6, %v3563_v31  ;;  %v1827_v46 = vpop.permute.xlu0 %1826 }
 0x6b5   :  { %1845 = vst.msk [vmem:[%s3758_s30 + $0x68] sm:$0xff] %vm603_vm1, %v1827_v46  ;;  %v1890_v48 = vpop.permute.xlu1 %1889  ;;  %2314 = vrot.lane.b32.xlu0 %v2214_v5, %s3566_s9 }
 0x6b6   :  { %2091 = vst.msk [vmem:[%s3758_s30 + $0x68] sm:$0xff] %vm2077_vm6, %v3563_v31 }
 0x6b7   :  { %1909 = vst.msk [vmem:[%s3758_s30 + $0xa0] sm:$0xff] %vm603_vm1, %v1890_v48 }
 0x6b8   :  { %2098 = vst.msk [vmem:[%s3758_s30 + $0xa0] sm:$0xff] %vm2077_vm6, %v3563_v31  ;;  %v3419_v50 = vpop.eup %3418  ;;  %v1892_v35 = vpop.permute.xlu0 %1891 }
 0x6b9   :  { %v2239_v53 = vadd.f32 1.0, %v3419_v50  ;;  %1910 = vst.msk [vmem:[%s3758_s30 + $0xa8] sm:$0xff] %vm603_vm1, %v1892_v35  ;;  %v1985_v54 = vpop.permute.xlu1 %1984 }
 0x6ba   :  { %v3421_v55 = vpop.eup %3420  ;;  %2099 = vst.msk [vmem:[%s3758_s30 + $0xa8] sm:$0xff] %vm2077_vm6, %v3563_v31 }
 0x6bb   :  { %2821 = vst.msk [vmem:[%s3758_s30 + $0x150] sm:$0xff] %vm603_vm1, %v1985_v54  ;;  %3428 = vrcp.f32 %v2239_v53  ;;  %v2237_v56 = vadd.f32 1.0, %v3421_v55 }
 0x6bc   :  { %2112 = vst.msk [vmem:[%s3758_s30 + $0x150] sm:$0xff] %vm2077_vm6, %v3563_v31  ;;  %v3423_v60 = vpop.eup %3422  ;;  %v2050_v61 = vpop.permute.xlu0 %2049 }
 0x6bd   :  { %3430 = vrcp.f32 %v2237_v56  ;;  %v2240_v63 = vadd.f32 1.0, %v3423_v60  ;;  %2837 = vst.msk [vmem:[%s3758_s30 + $0x190] sm:$0xff] %vm603_vm1, %v2050_v61  ;;  %v1981_v0 = vpop.permute.xlu1 %1980 }
 0x6be   :  { %v3425_v2 = vpop.eup %3424  ;;  %2120 = vst.msk [vmem:[%s3758_s30 + $0x190] sm:$0xff] %vm2077_vm6, %v3563_v31 }
 0x6bf   :  { %2819 = vst.msk [vmem:[%s3758_s30 + $0x140] sm:$0xff] %vm603_vm1, %v1981_v0  ;;  %3432 = vrcp.f32 %v2240_v63  ;;  %v2238_v37 = vadd.f32 1.0, %v3425_v2 }
 0x6c0   :  { %2110 = vst.msk [vmem:[%s3758_s30 + $0x140] sm:$0xff] %vm2077_vm6, %v3563_v31  ;;  %v3427_v6 = vpop.eup %3426  ;;  %v2046_v58 = vpop.permute.xlu0 %2045 }
 0x6c1   :  { %v1391_v34 = vmul.f32 %v3427_v6, %v4556_v51  ;;  %3434 = vrcp.f32 %v2238_v37  ;;  %2835 = vst.msk [vmem:[%s3758_s30 + $0x180] sm:$0xff] %vm603_vm1, %v2046_v58  ;;  %v2052_v62 = vpop.permute.xlu1 %2051  ;;  %v2853_v51 = vld [vmem:[%s4900_s14] ss:$0 sm:$0xff] }
 0x6c2   :  { %2118 = vst.msk [vmem:[%s3758_s30 + $0x180] sm:$0xff] %vm2077_vm6, %v3563_v31 }
 0x6c3   :  { %2838 = vst.msk [vmem:[%s3758_s30 + $0x198] sm:$0xff] %vm603_vm1, %v2052_v62  ;;  %v1392_v26 = vpack.c.bf16 %v1391_v34, %v1391_v34  ;;  %v2385_v39 = vcombine.high %v1391_v34, %v1391_v34  ;;  %v2392_v52 = vrot.slane %v1391_v34, %v2391_v59 }
 0x6c4   :  { %2121 = vst.msk [vmem:[%s3758_s30 + $0x198] sm:$0xff] %vm2077_vm6, %v3563_v31  ;;  %v1987_v10 = vpop.permute.xlu0 %1986 }
 0x6c5   :  { %v2399_v14 = vrot.slane %v2385_v39, %v2391_v59  ;;  %v2400_v28 = vcombine.high %v2392_v52, %v2392_v52  ;;  %2407 = vst.msk [vmem:[#allocation6] sm:$0x3] %vm2406_vm7, %v2392_v52  ;;  %v2048_v32 = vpop.permute.xlu1 %2047  ;;  %3050 = vmatmul.mubr.msk.bf16.vlgmr.msra.gmra.mxu1 %vm2450_vm8, %v1392_v26  ;;  %v2870_v26 = vld [vmem:[%s4902_s24] ss:$0 sm:$0xff] }
 0x6c6   :  { %2822 = vst.msk [vmem:[%s3758_s30 + $0x158] sm:$0xff] %vm603_vm1, %v1987_v10  ;;  %2836 = vst.msk [vmem:[%s3758_s30 + $0x188] sm:$0xff] %vm603_vm1, %v2048_v32 }
 0x6c7   :  { %2113 = vst.msk [vmem:[%s3758_s30 + $0x158] sm:$0xff] %vm2077_vm6, %v3563_v31  ;;  %v2401_v20 = vcombine.high %v2399_v14, %v2399_v14  ;;  %2119 = vst.msk [vmem:[%s3758_s30 + $0x188] sm:$0xff] %vm2077_vm6, %v3563_v31 }
 0x6c8   :  { %2408 = vst.msk [vmem:[#allocation6 + $0x2] sm:$0x3] %vm2406_vm7, %v2400_v28  ;;  %2409 = vst.msk [vmem:[#allocation6 + $0x4] sm:$0x3] %vm2406_vm7, %v2399_v14  ;;  %v3429_v11 = vpop.eup %3428  ;;  %v1983_v16 = vpop.permute.xlu0 %1982 }
 0x6c9   :  { %2410 = vst.msk [vmem:[#allocation6 + $0x6] sm:$0x3] %vm2406_vm7, %v2401_v20  ;;  %v1993_v45 = vpop.permute.xlu1 %1992  ;;  %v2263_v7 = vmul.f32 %v3429_v11, %v3429_v11  ;;  %v2258_v18 = vmul.f32 %v3429_v11, %v2852_v4 }
 0x6ca   :  { %2820 = vst.msk [vmem:[%s3758_s30 + $0x148] sm:$0xff] %vm603_vm1, %v1983_v16  ;;  %v3431_v17 = vpop.eup %3430  ;;  %2825 = vst.msk [vmem:[%s3758_s30 + $0x170] sm:$0xff] %vm603_vm1, %v1993_v45 }
 0x6cb   :  { %2111 = vst.msk [vmem:[%s3758_s30 + $0x148] sm:$0xff] %vm2077_vm6, %v3563_v31  ;;  %2116 = vst.msk [vmem:[%s3758_s30 + $0x170] sm:$0xff] %vm2077_vm6, %v3563_v31  ;;  %v2273_v25 = vmul.f32 %v2853_v51, %v2263_v7  ;;  %v2261_v49 = vmul.f32 %v3431_v17, %v3431_v17  ;;  %v2256_v33 = vmul.f32 %v3431_v17, %v2852_v4 }
 0x6cc   :  { %v3433_v19 = vpop.eup %3432  ;;  %v2058_v21 = vpop.permute.xlu0 %2057 }
 0x6cd   :  { %2841 = vst.msk [vmem:[%s3758_s30 + $0x1b0] sm:$0xff] %vm603_vm1, %v2058_v21  ;;  %v1989_v24 = vpop.permute.xlu1 %1988  ;;  %v2277_v30 = vadd.f32 %v2273_v25, %v2258_v18  ;;  %v2264_v38 = vmul.f32 %v3433_v19, %v3433_v19  ;;  %v2271_v13 = vmul.f32 %v2853_v51, %v2261_v49  ;;  %v2259_v57 = vmul.f32 %v3433_v19, %v2852_v4  ;;  %v2518_v18 = vld [vmem:[%s4905_s4] sm:$0xff] }
 0x6ce   :  { %v3435_v41 = vpop.eup %3434  ;;  %2124 = vst.msk [vmem:[%s3758_s30 + $0x1b0] sm:$0xff] %vm2077_vm6, %v3563_v31 }
 0x6cf   :  { %2823 = vst.msk [vmem:[%s3758_s30 + $0x160] sm:$0xff] %vm603_vm1, %v1989_v24  ;;  %v2285_v1 = vadd.f32 %v2281_v23, %v2277_v30  ;;  %v2274_v15 = vmul.f32 %v2853_v51, %v2264_v38  ;;  %v2275_v27 = vadd.f32 %v2271_v13, %v2256_v33  ;;  %v2262_v36 = vmul.f32 %v3435_v41, %v3435_v41 }
 0x6d0   :  { %2114 = vst.msk [vmem:[%s3758_s30 + $0x160] sm:$0xff] %vm2077_vm6, %v3563_v31  ;;  %v2054_v5 = vpop.permute.xlu0 %2053  ;;  %v2257_v46 = vmul.f32 %v3435_v41, %v2852_v4  ;;  %v2877_v4 = vld [vmem:[%s4903_s6] ss:$0 sm:$0xff] }
 0x6d1   :  { %2839 = vst.msk [vmem:[%s3758_s30 + $0x1a0] sm:$0xff] %vm603_vm1, %v2054_v5  ;;  %v2060_v22 = vpop.permute.xlu1 %2059  ;;  %2860 = vst.msk [vmem:[%s3758_s30 + $0x1c0] sm:$0xff] %vm603_vm1, %v2285_v1  ;;  %2347 = vrot.lane.b32.xlu0 %v2285_v1, %s3565_s5  ;;  %v2278_v40 = vadd.f32 %v2274_v15, %v2259_v57  ;;  %v2283_v42 = vadd.f32 %v2279_v8, %v2275_v27  ;;  %v2272_v48 = vmul.f32 %v2853_v51, %v2262_v36  ;;  %v2878_v51 = vld [vmem:[%s4904_s12] ss:$0 sm:$0xff] }
 0x6d2   :  { %2122 = vst.msk [vmem:[%s3758_s30 + $0x1a0] sm:$0xff] %vm2077_vm6, %v3563_v31  ;;  %2378 = vst.msk [vmem:[%s3758_s30 + $0x1c0] sm:$0xff] %vm2077_vm6, %v3568_v44 }
 0x6d3   :  { %2842 = vst.msk [vmem:[%s3758_s30 + $0x1b8] sm:$0xff] %vm603_vm1, %v2060_v22  ;;  %v2286_v12 = vadd.f32 %v2282_v9, %v2278_v40  ;;  %2289 = vst.msk [vmem:[%s3758_s30 + $0xc0] sm:$0xff] %vm603_vm1, %v2283_v42  ;;  %v2276_v35 = vadd.f32 %v2272_v48, %v2257_v46 }
 0x6d4   :  { %2125 = vst.msk [vmem:[%s3758_s30 + $0x1b8] sm:$0xff] %vm2077_vm6, %v3563_v31  ;;  %v1995_v50 = vpop.permute.xlu0 %1994  ;;  %2372 = vst.msk [vmem:[%s3758_s30 + $0xc0] sm:$0xff] %vm2077_vm6, %v3568_v44 }
 0x6d5   :  { %2826 = vst.msk [vmem:[%s3758_s30 + $0x178] sm:$0xff] %vm603_vm1, %v1995_v50  ;;  %v2056_v53 = vpop.permute.xlu1 %2055  ;;  %2364 = vrot.lane.b32.xlu0 %v2285_v1, %s3566_s9  ;;  %2861 = vst.msk [vmem:[%s3758_s30 + $0x1c8] sm:$0xff] %vm603_vm1, %v2286_v12  ;;  %2349 = vrot.lane.b32.xlu1 %v2286_v12, %s3565_s5  ;;  %v2284_v54 = vadd.f32 %v2280_v47, %v2276_v35 }
 0x6d6   :  { %2117 = vst.msk [vmem:[%s3758_s30 + $0x178] sm:$0xff] %vm2077_vm6, %v3563_v31  ;;  %2379 = vst.msk [vmem:[%s3758_s30 + $0x1c8] sm:$0xff] %vm2077_vm6, %v3568_v44 }
 0x6d7   :  { %2840 = vst.msk [vmem:[%s3758_s30 + $0x1a8] sm:$0xff] %vm603_vm1, %v2056_v53  ;;  %2290 = vst.msk [vmem:[%s3758_s30 + $0xc8] sm:$0xff] %vm603_vm1, %v2284_v54 }
 0x6d8   :  { %2123 = vst.msk [vmem:[%s3758_s30 + $0x1a8] sm:$0xff] %vm2077_vm6, %v3563_v31  ;;  %v1991_v55 = vpop.permute.xlu0 %1990  ;;  %2373 = vst.msk [vmem:[%s3758_s30 + $0xc8] sm:$0xff] %vm2077_vm6, %v3568_v44 }
 0x6d9   :  { %2824 = vst.msk [vmem:[%s3758_s30 + $0x168] sm:$0xff] %vm603_vm1, %v1991_v55  ;;  %2304 = vrot.lane.b32.xlu0 %v2283_v42, %s3565_s5  ;;  %2366 = vrot.lane.b32.xlu1 %v2286_v12, %s3566_s9 }
 0x6da   :  { %2115 = vst.msk [vmem:[%s3758_s30 + $0x168] sm:$0xff] %vm2077_vm6, %v3563_v31 }
 0x6dd   :  { %2321 = vrot.lane.b32.xlu0 %v2283_v42, %s3566_s9  ;;  %2306 = vrot.lane.b32.xlu1 %v2284_v54, %s3565_s5 }
 0x6e1   :  { %2323 = vrot.lane.b32.xlu1 %v2284_v54, %s3566_s9 }
 0x71b   :  { %v2337_v3 = vpop.permute.xlu1 %2336 }
 0x71c   :  { %2862 = vst.msk [vmem:[%s3748_s27 + $0x40] sm:$0xff] %vm603_vm1, %v2337_v3 }
 0x71f   :  { %v2339_v56 = vpop.permute.xlu0 %2338  ;;  %v2294_v60 = vpop.permute.xlu1 %2293 }
 0x720   :  { %2863 = vst.msk [vmem:[%s3748_s27 + $0x48] sm:$0xff] %vm603_vm1, %v2339_v56  ;;  %2854 = vst.msk [vmem:[%s3748_s27 + $0x10] sm:$0xff] %vm603_vm1, %v2294_v60 }
 0x723   :  { %v2296_v31 = vpop.permute.xlu0 %2295  ;;  %v2313_v61 = vpop.permute.xlu1 %2312 }
 0x724   :  { %2855 = vst.msk [vmem:[%s3748_s27 + $0x18] sm:$0xff] %vm603_vm1, %v2296_v31  ;;  %2856 = vst.msk [vmem:[%s3748_s27 + $0x20] sm:$0xff] %vm603_vm1, %v2313_v61 }
 0x727   :  { %v2315_v63 = vpop.permute.xlu0 %2314 }
 0x728   :  { %2857 = vst.msk [vmem:[%s3748_s27 + $0x28] sm:$0xff] %vm603_vm1, %v2315_v63 }
 0x743   :  { %v2348_v0 = vpop.permute.xlu0 %2347 }
 0x744   :  { %2864 = vst.msk [vmem:[%s3758_s30 + $0x1d0] sm:$0xff] %vm603_vm1, %v2348_v0 }
 0x745   :  { %2380 = vst.msk [vmem:[%s3758_s30 + $0x1d0] sm:$0xff] %vm2077_vm6, %v3568_v44 }
 0x747   :  { %v2365_v2 = vpop.permute.xlu0 %2364  ;;  %v2350_v59 = vpop.permute.xlu1 %2349 }
 0x748   :  { %2868 = vst.msk [vmem:[%s3758_s30 + $0x1e0] sm:$0xff] %vm603_vm1, %v2365_v2  ;;  %2865 = vst.msk [vmem:[%s3758_s30 + $0x1d8] sm:$0xff] %vm603_vm1, %v2350_v59 }
 0x749   :  { %2382 = vst.msk [vmem:[%s3758_s30 + $0x1e0] sm:$0xff] %vm2077_vm6, %v3568_v44  ;;  %2381 = vst.msk [vmem:[%s3758_s30 + $0x1d8] sm:$0xff] %vm2077_vm6, %v3568_v44 }
 0x74b   :  { %v2305_v37 = vpop.permute.xlu0 %2304  ;;  %v2367_v6 = vpop.permute.xlu1 %2366 }
 0x74c   :  { %2310 = vst.msk [vmem:[%s3758_s30 + $0xd0] sm:$0xff] %vm603_vm1, %v2305_v37  ;;  %2869 = vst.msk [vmem:[%s3758_s30 + $0x1e8] sm:$0xff] %vm603_vm1, %v2367_v6 }
 0x74d   :  { %2374 = vst.msk [vmem:[%s3758_s30 + $0xd0] sm:$0xff] %vm2077_vm6, %v3568_v44  ;;  %2383 = vst.msk [vmem:[%s3758_s30 + $0x1e8] sm:$0xff] %vm2077_vm6, %v3568_v44 }
 0x74f   :  { %v2322_v58 = vpop.permute.xlu0 %2321  ;;  %v2307_v34 = vpop.permute.xlu1 %2306 }
 0x750   :  { %2327 = vst.msk [vmem:[%s3758_s30 + $0xe0] sm:$0xff] %vm603_vm1, %v2322_v58  ;;  %2311 = vst.msk [vmem:[%s3758_s30 + $0xd8] sm:$0xff] %vm603_vm1, %v2307_v34 }
 0x751   :  { %2376 = vst.msk [vmem:[%s3758_s30 + $0xe0] sm:$0xff] %vm2077_vm6, %v3568_v44  ;;  %2375 = vst.msk [vmem:[%s3758_s30 + $0xd8] sm:$0xff] %vm2077_vm6, %v3568_v44 }
 0x753   :  { %v2324_v62 = vpop.permute.xlu1 %2323 }
 0x754   :  { %2328 = vst.msk [vmem:[%s3758_s30 + $0xe8] sm:$0xff] %vm603_vm1, %v2324_v62 }
 0x755   :  { %2377 = vst.msk [vmem:[%s3758_s30 + $0xe8] sm:$0xff] %vm2077_vm6, %v3568_v44 }
 0x785   :  { %v2488_v39 = vpop.f32.mrf.mxu1 }
 0x786   :  { %v2489_v52 = vadd.f32 %v2870_v26, %v2488_v39 }
 0x787   :  { %v3051_v10 = vpop.f32.mrf.mxu1 }
 0x788   :  { %v2876_v14 = vmul.f32 -1.442695, %v2489_v52  ;;  %2524 = vrot.lane.b32.xlu0 %v2489_v52, %s3565_s5  ;;  %2521 = vst.msk [vmem:[#allocation7] sm:$0xf] %vm2520_vm9, %v2489_v52 }
 0x789   :  { %2545 = vst.msk [vmem:[#allocation7 + $0x8] sm:$0xf0] %vm2544_vm10, %v2489_v52  ;;  %v2491_v28 = vpop.f32.mrf.mxu1 }
 0x78a   :  { %3436 = vpow2.f32 %v2876_v14 }
 0x78b   :  { %v3052_v32 = vpop.f32.mrf.mxu1 }
 0x78c   :  { %2534 = vrot.lane.b32.xlu0 %v2489_v52, %s3566_s9 }
 0x790   :  { %2357 = vrot.lane.b32.xlu0 %v4600_v43, %s3566_s9 }
 0x797   :  { %v3437_v20 = vpop.eup %3436 }
 0x798   :  { %v2497_v11 = vadd.f32 1.0, %v3437_v20 }
 0x79a   :  { %3438 = vrcp.f32 %v2497_v11 }
 0x7a7   :  { %v3439_v16 = vpop.eup %3438 }
 0x7a8   :  { %v2509_v45 = vmul.f32 %v3439_v16, %v3439_v16  ;;  %v2507_v7 = vmul.f32 %v3439_v16, %v2877_v4 }
 0x7aa   :  { %v2516_v17 = vmul.f32 %v2878_v51, %v2509_v45 }
 0x7ac   :  { %v2517_v25 = vadd.f32 %v2516_v17, %v2507_v7 }
 0x7ad   :  { %3451 = shalt.err (!%p3448_p4)
}
 0x7ae   :  { %s3571_s26 = smov 64   ;;  %s4906_s28 = sld [smem:[#allocation27_spill]]  ;;  %v2519_v43 = vadd.f32 %v2518_v18, %v2517_v25 }
 0x7af   :  { %s3572_s1 = smov 4   ;;  %s3573_s2 = smov [#allocation6]  }
 0x7b0   :  { %2530 = vrot.lane.b32.xlu1 %v2519_v43, %s3565_s5  ;;  %2522 = vst.msk [vmem:[%s3758_s30 + $0xf0] sm:$0xf] %vm2520_vm9, %v2519_v43  ;;  %s2587_s7 = sshll.u32 %s3573_s2, 4  ;;  %s3460_s10 = scalar_lea.vmem %s2564_s22, 2048  ;;  %s2588_s7 = int_to_ptr.vmem [resolvable:$true] %s2587_s7 }
 0x7b1   :  { %2879 = vst.msk [vmem:[%s3758_s30 + $0x1ec] sm:$0xf0] %vm2544_vm10, %v2519_v43  ;;  %p3461_p5 = scmp.ne.s32.totalorder %s2564_s22, %s3460_s10  ;;  %p3465_p6 = scmp.lt.s32.totalorder %s2564_s22, %s2564_s22 }
 0x7b2   :  { %p3466_p7 = scmp.lt.s32.totalorder %s3460_s10, %s3460_s10 }
 0x7b4   :  { %2581 = dma.vmem_to_hbm [thread:$0]  %s2576_s16, 512, %s4906_s28, [#allocation5], %s3571_s26, %s3571_s26, %s3572_s1  }
 0x7b5   :  { %p3467_p8 = por %p3466_p7, %p3465_p6 }
 0x7b7   :  { %p3468_p9 = pnand %p3467_p8, %p3461_p5 }
 0x7b9   :  { %3471 = shalt.err (!%p3468_p9)
}
 0x7ba   :  { %s3574_s11 = smov 128   ;;  %s4907_s0 = sld [smem:[#allocation26_spill]] }
 0x7bb   :  { %s3575_s13 = smov 8   ;;  %s3480_s17 = scalar_lea.vmem %s2588_s7, 128 }
 0x7bc   :  { %p3481_p10 = scmp.ne.s32.totalorder %s2588_s7, %s3480_s17  ;;  %p3485_p11 = scmp.lt.s32.totalorder %s2588_s7, %s2588_s7 }
 0x7bd   :  { %p3486_p12 = scmp.lt.s32.totalorder %s3480_s17, %s3480_s17 }
 0x7bf   :  { %p3487_p13 = por %p3486_p12, %p3485_p11 }
 0x7c0   :  { %2569 = dma.vmem_to_hbm [thread:$0]  %s2564_s22, 2048, %s4907_s0, [#allocation3], %s3574_s11, %s3574_s11, %s3575_s13  }
 0x7c1   :  { %p3488_p0 = pnand %p3487_p13, %p3481_p10 }
 0x7c3   :  { %3491 = shalt.err (!%p3488_p0)
}
 0x7c4   :  { %s3576_s5 = smov 32   ;;  %s4908_s21 = sld [smem:[#allocation28_spill]]  ;;  %2539 = vrot.lane.b32.xlu1 %v2519_v43, %s3566_s9 }
 0x7c5   :  { %s3577_s25 = smov 2   ;;  %s3578_s29 = smov [#allocation7]  }
 0x7c6   :  { %s2603_s3 = sshll.u32 %s3578_s29, 4  ;;  %s2604_s3 = int_to_ptr.vmem [resolvable:$true] %s2603_s3 }
 0x7c7   :  { %s3500_s8 = scalar_lea.vmem %s2604_s3, 384  ;;  %p3505_p2 = scmp.lt.s32.totalorder %s2604_s3, %s2604_s3 }
 0x7c8   :  { %2355 = vrot.lane.b32.xlu1 %v4580_v29, %s3566_s9  ;;  %p3501_p1 = scmp.ne.s32.totalorder %s2604_s3, %s3500_s8  ;;  %p3506_p3 = scmp.lt.s32.totalorder %s3500_s8, %s3500_s8 }
 0x7ca   :  { %2593 = dma.vmem_to_hbm [thread:$0]  %s2588_s7, 128, %s4908_s21, [#allocation5], %s3576_s5, %s3576_s5, %s3577_s25  }
 0x7cb   :  { %p3507_p4 = por %p3506_p3, %p3505_p2 }
 0x7cd   :  { %p3508_p5 = pnand %p3507_p4, %p3501_p1 }
 0x7fa   :  { %v2525_v49 = vpop.permute.xlu0 %2524 }
 0x7fb   :  { %2528 = vst.msk [vmem:[#allocation7 + $0x4] sm:$0xf] %vm2520_vm9, %v2525_v49 }
 0x7fc   :  { %2548 = vst.msk [vmem:[#allocation7 + $0xc] sm:$0xf0] %vm2544_vm10, %v2525_v49 }
 0x7fe   :  { %v2535_v19 = vpop.permute.xlu0 %2534 }
 0x7ff   :  { %2538 = vst.msk [vmem:[#allocation7 + $0x8] sm:$0xf] %vm2520_vm9, %v2535_v19 }
 0x800   :  { %2551 = vst.msk [vmem:[#allocation7 + $0x10] sm:$0xf0] %vm2544_vm10, %v2535_v19 }
 0x801   :  { %3511 = shalt.err (!%p3508_p5)
}
 0x802   :  { %2609 = dma.vmem_to_hbm [thread:$0]  %s2604_s3, 384, %s3753_s20, [#allocation8], %s3571_s26, %s3571_s26, %s3572_s1   ;;  %v2358_v29 = vpop.permute.xlu0 %2357  ;;  %v3579_v23 = vmov 2.0   ;;  %vm2554_vm11 = vcmask 68672  }
 0x803   :  { %2867 = vst.msk [vmem:[%s3748_s27 + $0x58] sm:$0xff] %vm603_vm1, %v2358_v29 }
 0x822   :  { %v2531_v21 = vpop.permute.xlu1 %2530 }
 0x823   :  { %2533 = vst.msk [vmem:[%s3758_s30 + $0xf4] sm:$0xf] %vm2520_vm9, %v2531_v21 }
 0x824   :  { %2880 = vst.msk [vmem:[%s3758_s30 + $0x1f0] sm:$0xf0] %vm2544_vm10, %v2531_v21 }
 0x825   :  { %2553 = vst.msk [vmem:[%s3758_s30 + $0xf0] sm:$0xff] %vm2077_vm6, %v3579_v23  ;;  %2556 = vst.msk [vmem:[%s3758_s30 + $0x1f0] sm:$0xff] %vm2077_vm6, %v3579_v23 }
 0x836   :  { %v2540_v24 = vpop.permute.xlu1 %2539 }
 0x837   :  { %2542 = vst.msk [vmem:[%s3758_s30 + $0xf8] sm:$0xf] %vm2520_vm9, %v2540_v24 }
 0x838   :  { %2881 = vst.msk [vmem:[%s3758_s30 + $0x1f4] sm:$0xf0] %vm2544_vm10, %v2540_v24 }
 0x839   :  { %2555 = vst.msk [vmem:[%s3758_s30 + $0xf8] sm:$0xf] %vm2554_vm11, %v3579_v23  ;;  %2557 = vst.msk [vmem:[%s3758_s30 + $0x1f8] sm:$0xf] %vm2554_vm11, %v3579_v23 }
 0x83a   :  { %v2356_v30 = vpop.permute.xlu1 %2355 }
 0x83b   :  { %2866 = vst.msk [vmem:[%s3748_s27 + $0x50] sm:$0xff] %vm603_vm1, %v2356_v30 }
 0x83c   :  { %3520 = dma.done.wait [#allocation3], 2048  }
 0x83d   :  { %3521 = vsyncadd [#allocation3], 4294965248 }
 0x83e   :  { %3522 = dma.done.wait [#allocation5], 640  }
 0x83f   :  { %3523 = vsyncadd [#allocation5], 4294966656 }
 0x840   :  { %3524 = dma.done.wait [#allocation8], 384  }
 0x841   :  { %3525 = vsyncadd [#allocation8], 4294966912 }
 0x842   :  { %2630 = vsyncpa [#allocation3], 1 }
 0x843   :  { %2631 = vsyncpa [#allocation5], 1 }
 0x844   :  { %2632 = vsyncpa [#allocation8], 1 }

</bundles_post_ra>
